<compile_context>
chip_gen: v6e
topology: v6e:2x2x1
jax: 0.10.0
libtpu: 0.0.40
codegen_flags: <defaults>
</compile_context>

<pallas_src>
import jax
import jax.numpy as jnp
from jax.experimental import pallas as pl
from jax.experimental.pallas import tpu as pltpu

D = 32          # hidden size (hard-coded 32 in the tutorial module)
H = 4           # attention heads
DH = D // H     # head dim = 8
DFF = 64        # FFN hidden size
EPS = 1e-5      # torch.nn.LayerNorm default eps
NEG = -1e30     # large finite negative instead of -inf (same softmax result,
                # no NaN for fully-masked rows)

# ---- 8-row-aligned offsets inside the packed (MISC_ROWS, 32) f32 operand ----
OFF_B1 = 0       # rows  0..3 : bq1*scale, bk1, bv1, bo1
OFF_LN1 = 8      # rows  8..9 : gamma1, beta1
OFF_B2 = 16      # rows 16..19: bq2*scale, bk2, bv2, bo2
OFF_LN2 = 24     # rows 24..25: gamma2, beta2
OFF_BF2 = 32     # row  32    : second FFN bias
OFF_LNF = 40     # rows 40..41: gammaF, betaF
MISC_ROWS = 48

# ---- rows inside the packed 32-column bf16 weight slab (all 8-aligned) ------
#   rows   0..31 : Wo1
#   rows  32..63 : Wq2 * scale
#   rows  64..95 : Wo2
#   rows 96..159 : Wf2
# ---- rows inside the packed 64-column bf16 weight slab ----------------------
#   rows   0..31 : [Wk2 | Wv2]
#   rows  32..63 : Wf1


# ---------------- Pallas kernel: BT batch elements per grid step --------------

def decoder_layer_kernel(x_ref, y_ref, padx_ref, pady_ref,
                         w_qkv1_ref, w_kv2f1_ref, w_32_ref, misc_ref, bf1_ref,
                         out_ref):
    BT, S, _ = y_ref.shape
    N = BT * S
    f32 = jnp.float32
    bf16 = jnp.bfloat16

    # Flatten tokens: all dense matmuls see an (N, 32) slab (big MXU M dim).
    x = x_ref[...].reshape(N, D)
    y = y_ref[...].reshape(N, D)

    misc = misc_ref[...]          # (48, 32)  f32  biases + LN params
    w_qkv1 = w_qkv1_ref[...]      # (32, 96)  bf16 fused [Wq|Wk|Wv] (self-attn)
    w_kv2f1 = w_kv2f1_ref[...]    # (64, 64)  bf16 [Wk2|Wv2] ; Wf1
    w32 = w_32_ref[...]           # (160, 32) bf16 Wo1 ; Wq2 ; Wo2 ; Wf2
    bf1 = bf1_ref[...]            # (1, 64)   f32  first FFN bias

    # ---- additive attention biases rebuilt from O(S) pad vectors (once/step)
    q_ids = jax.lax.broadcasted_iota(jnp.int32, (S, S), 0)
    k_ids = jax.lax.broadcasted_iota(jnp.int32, (S, S), 1)
    causal = (k_ids > q_ids).astype(f32)                            # (S, S)
    bias_tril = causal[None, :, :] * NEG + pady_ref[...] * NEG      # (BT, S, S)
    # hoisted broadcast (JAX does not CSE broadcast_in_dim inside the head loop)
    bias_pad = jnp.broadcast_to(padx_ref[...] * NEG, (BT, S, S))    # (BT, S, S)

    def layer_norm(v, off):
        gamma = misc[off:off + 1, :]
        beta = misc[off + 1:off + 2, :]
        mu = jnp.mean(v, axis=-1, keepdims=True)
        var = jnp.mean(v * v, axis=-1, keepdims=True) - mu * mu     # one-pass variance
        return (v - mu) * jax.lax.rsqrt(var + EPS) * gamma + beta

    def attention(q, k, v, bias, wo, bo, resid):
        # q/k/v: (N, D) f32 (1/sqrt(dh) already folded into the Q projection);
        # bias: (BT, S, S) f32; wo: (D, D) bf16; bo: (1, D) f32; resid: (N, D) f32.
        q3 = q.reshape(BT, S, D).astype(bf16)
        k3 = k.reshape(BT, S, D).astype(bf16)
        v3 = v.reshape(BT, S, D).astype(bf16)
        ctx = []
        # TODO(synk): for large S, tile the softmax over the query dim (or use a
        # fori_loop) to bound the live range of the per-head (BT,S,S) tensors.
        for h in range(H):                      # static unroll, 4 heads
            sl = slice(h * DH, (h + 1) * DH)
            s = jnp.einsum('bqd,bkd->bqk', q3[:, :, sl], k3[:, :, sl],
                           preferred_element_type=f32) + bias
            m = jnp.max(s, axis=-1, keepdims=True)
            p = jnp.exp(s - m)
            p = p / jnp.sum(p, axis=-1, keepdims=True)   # exact normalization
            ctx.append(jnp.einsum('bqk,bkd->bqd', p.astype(bf16), v3[:, :, sl],
                                  preferred_element_type=f32))
        # Heads land in lanes [h*8,(h+1)*8) of one (N,32) slab -> a single K=32
        # matmul with the full W_out instead of 4 accumulating K=8 matmuls.
        ctx32 = jnp.concatenate(ctx, axis=-1).reshape(N, D).astype(bf16)
        return resid + jnp.dot(ctx32, wo, preferred_element_type=f32) + bo

    # ---------------- self-attention (pre-LN, q == k == v == y) ---------------
    yn = layer_norm(y, OFF_LN1).astype(bf16)
    qkv = jnp.dot(yn, w_qkv1, preferred_element_type=f32)           # (N, 96) fused
    q = qkv[:, 0 * D:1 * D] + misc[OFF_B1 + 0:OFF_B1 + 1, :]
    k = qkv[:, 1 * D:2 * D] + misc[OFF_B1 + 1:OFF_B1 + 2, :]
    v = qkv[:, 2 * D:3 * D] + misc[OFF_B1 + 2:OFF_B1 + 3, :]
    y = attention(q, k, v, bias_tril, w32[0:32, :],
                  misc[OFF_B1 + 3:OFF_B1 + 4, :], y)

    # ---------------- cross-attention (q from y, k == v == x) -----------------
    yn = layer_norm(y, OFF_LN2).astype(bf16)
    xn = layer_norm(x, OFF_LN2).astype(bf16)
    q = jnp.dot(yn, w32[32:64, :], preferred_element_type=f32) \
        + misc[OFF_B2 + 0:OFF_B2 + 1, :]
    kv = jnp.dot(xn, w_kv2f1[0:32, :], preferred_element_type=f32)  # (N, 64) fused KV
    k = kv[:, 0:D] + misc[OFF_B2 + 1:OFF_B2 + 2, :]
    v = kv[:, D:2 * D] + misc[OFF_B2 + 2:OFF_B2 + 3, :]
    y = attention(q, k, v, bias_pad, w32[64:96, :],
                  misc[OFF_B2 + 3:OFF_B2 + 4, :], y)

    # ---------------- position-wise FFN (pre-LN, residual) --------------------
    yn = layer_norm(y, OFF_LNF).astype(bf16)
    h1 = jnp.maximum(jnp.dot(yn, w_kv2f1[32:64, :],
                             preferred_element_type=f32) + bf1, 0.0)
    y = y + jnp.dot(h1.astype(bf16), w32[96:160, :],
                    preferred_element_type=f32) + misc[OFF_BF2:OFF_BF2 + 1, :]

    # TODO(synk): a lane-dense (BT, S*D) output slab would make this an unmasked
    # 128-lane store, but needs an in-kernel relayout; gate on a measurement.
    out_ref[...] = y.reshape(BT, S, D)


# ---------------- wrapper ------------------------------------------------------

def _tpu_vmem_bytes():
    try:
        return int(pltpu.get_tpu_info().vmem_capacity_bytes)
    except Exception:
        return 128 * 1024 * 1024


def _step_vmem_bytes(BT, S):
    """Rough per-step VMEM footprint.  Counts the 4x lane padding of (.,.,32)
    f32 blocks (minor dim padded to 128 lanes) and double buffering."""
    LANE = 128
    n = BT * S
    data_block = BT * S * LANE * 4                       # one (BT,S,32) f32 block
    pipelined = 2 * (3 * data_block + 2 * BT * LANE * 4)  # x,y,out + pad vecs, 2-deep
    score = BT * S * max(S, LANE) * 4                    # one (BT,S,S) f32 tile
    live = 6 * n * LANE * 4 + 3 * score                  # QKV/ctx/FFN slabs + biases
    weights = (32 + 64 + 160) * LANE * 2 + (MISC_ROWS + 8) * LANE * 4
    return pipelined + live + weights


def _choose_bt(B, S, vmem_bytes):
    """Batch several sequences per grid step.  64 MiB (v7x-class) parts keep
    >=4 grid steps (>=2 per TensorCore, since 'parallel' shards the grid over
    2 TCs); 128 MiB parts (v5e/v6e) target ~512 token rows per step to get
    near the HBM roofline, while always keeping >= 2 grid steps."""
    small_vmem = vmem_bytes <= 80 * 1024 * 1024
    target_rows = 256 if small_vmem else 512
    min_steps = 4 if small_vmem else 2
    budget = vmem_bytes // 2
    cands = [bt for bt in range(1, B + 1) if B % bt == 0]
    ok = [bt for bt in cands
          if bt * S <= max(target_rows, S) and _step_vmem_bytes(bt, S) <= budget]
    if not ok:
        ok = [1]
    multi = [bt for bt in ok if B // bt >= min_steps]
    return max(multi) if multi else max(ok)


def pack_params(params):
    """Pack the 11 parameter tensors into 5 operands (matmul slabs in bf16,
    biases / LayerNorm params in f32 with 8-row-aligned groups)."""
    scale = 1.0 / (DH ** 0.5)
    wq1, wk1, wv1, wo1 = (params["w_qkvo1"][i] for i in range(4))
    wq2, wk2, wv2, wo2 = (params["w_qkvo2"][i] for i in range(4))

    # fused [Wq|Wk|Wv] for self-attention; 1/sqrt(dh) folded into Wq
    w_qkv1 = jnp.concatenate([wq1 * scale, wk1, wv1], axis=1).astype(jnp.bfloat16)  # (32,96)
    # fused [Wk|Wv] for cross-attention stacked with the first FFN matrix
    w_kv2f1 = jnp.concatenate(
        [jnp.concatenate([wk2, wv2], axis=1), params["wf1"]], axis=0
    ).astype(jnp.bfloat16)                                                           # (64,64)
    # 32-column weights, every group starting on an 8-row boundary
    w_32 = jnp.concatenate([wo1, wq2 * scale, wo2, params["wf2"]],
                           axis=0).astype(jnp.bfloat16)                              # (160,32)

    def group8(a):
        pad = (-a.shape[0]) % 8
        if pad:
            a = jnp.concatenate([a, jnp.zeros((pad, a.shape[1]), jnp.float32)], 0)
        return a

    b1 = jnp.concatenate([params["b_qkvo1"][0:1] * scale, params["b_qkvo1"][1:]], 0)
    b2 = jnp.concatenate([params["b_qkvo2"][0:1] * scale, params["b_qkvo2"][1:]], 0)
    misc = jnp.concatenate([group8(b1), group8(params["ln1"]),
                            group8(b2), group8(params["ln2"]),
                            group8(params["bf2"]), group8(params["lnf"])], axis=0)
    assert misc.shape == (MISC_ROWS, D)
    bf1 = params["bf1"].astype(jnp.float32)                                          # (1,64)
    return w_qkv1, w_kv2f1, w_32, misc, bf1


def decoder_layer(x, y, mask_pad_x, mask_tril_y, params, block_batch=None):
    B, S, _ = x.shape

    # ---- O(S) mask compression.  Assumes the tutorial's mask structure:
    #   mask_pad_x[b,q,k]  = src_pad[b,k]               (independent of q)
    #   mask_tril_y[b,q,k] = (k > q) OR tgt_pad[b,k]
    # so only the per-key pad vectors are shipped to the kernel; the causal part
    # is rebuilt in-kernel.  (B,S)-shaped pad vectors are also accepted directly.
    if mask_pad_x.ndim == 3:
        pad_x = mask_pad_x[:, :1, :]                    # any query row works
    else:
        pad_x = mask_pad_x.reshape(B, 1, S)
    if mask_tril_y.ndim == 3:
        pad_y = mask_tril_y[:, -1:, :]                  # last row: causal part is 0
    else:
        pad_y = mask_tril_y.reshape(B, 1, S)
    pad_x = pad_x.astype(jnp.float32)
    pad_y = pad_y.astype(jnp.float32)

    vmem_cap = _tpu_vmem_bytes()
    BT = block_batch if block_batch is not None else _choose_bt(B, S, vmem_cap)
    assert B % BT == 0
    vmem_limit = min(int(0.75 * vmem_cap), 96 * 1024 * 1024)

    w_qkv1, w_kv2f1, w_32, misc, bf1 = pack_params(params)

    data_spec = pl.BlockSpec((BT, S, D), lambda b: (b, 0, 0))
    pad_spec = pl.BlockSpec((BT, 1, S), lambda b: (b, 0, 0))

    def full_spec(arr):
        n = arr.ndim
        return pl.BlockSpec(arr.shape, lambda b, n=n: (0,) * n)

    grid_spec = pltpu.PrefetchScalarGridSpec(
        num_scalar_prefetch=0,
        grid=(B // BT,),
        in_specs=[data_spec, data_spec, pad_spec, pad_spec,
                  full_spec(w_qkv1), full_spec(w_kv2f1), full_spec(w_32),
                  full_spec(misc), full_spec(bf1)],
        out_specs=data_spec,
    )
    return pl.pallas_call(
        decoder_layer_kernel,
        out_shape=jax.ShapeDtypeStruct((B, S, D), jnp.float32),
        grid_spec=grid_spec,
        compiler_params=pltpu.CompilerParams(
            dimension_semantics=("parallel",),
            vmem_limit_bytes=vmem_limit),
    )(x, y, pad_x, pad_y, w_qkv1, w_kv2f1, w_32, misc, bf1)


# ---------------- pure-JAX reference (same math, f32, no Pallas) --------------

def _layer_norm(v, gamma, beta):
    mu = jnp.mean(v, axis=-1, keepdims=True)
    var = jnp.mean(jnp.square(v - mu), axis=-1, keepdims=True)
    return (v - mu) * jax.lax.rsqrt(var + EPS) * gamma + beta


def _multi_head_ref(q_in, k_in, v_in, mask, w_qkvo, b_qkvo, ln):
    gamma, beta = ln[0:1, :], ln[1:2, :]
    qn = _layer_norm(q_in, gamma, beta)
    kn = _layer_norm(k_in, gamma, beta)
    vn = _layer_norm(v_in, gamma, beta)
    Q = qn @ w_qkvo[0] + b_qkvo[0:1]
    K = kn @ w_qkvo[1] + b_qkvo[1:2]
    V = vn @ w_qkvo[2] + b_qkvo[2:3]
    scale = 1.0 / (DH ** 0.5)
    heads = []
    for h in range(H):
        sl = slice(h * DH, (h + 1) * DH)
        s = (Q[:, sl] @ K[:, sl].T) * scale + mask * NEG
        s = s - jnp.max(s, axis=-1, keepdims=True)
        p = jnp.exp(s)
        p = p / jnp.sum(p, axis=-1, keepdims=True)
        heads.append(p @ V[:, sl])
    att = jnp.concatenate(heads, axis=-1)
    return q_in + att @ w_qkvo[3] + b_qkvo[3:4]


def _ffn_ref(x, w1, b1, w2, b2, ln):
    xn = _layer_norm(x, ln[0:1], ln[1:2])
    h = jnp.maximum(xn @ w1 + b1, 0.0)
    return x + h @ w2 + b2


def reference(x, y, mask_pad_x, mask_tril_y, params):
    def one(xb, yb, mpb, mtb):
        yy = _multi_head_ref(yb, yb, yb, mtb,
                             params["w_qkvo1"], params["b_qkvo1"], params["ln1"])
        yy = _multi_head_ref(yy, xb, xb, mpb,
                             params["w_qkvo2"], params["b_qkvo2"], params["ln2"])
        return _ffn_ref(yy, params["wf1"], params["bf1"],
                        params["wf2"], params["bf2"], params["lnf"])
    return jax.vmap(one)(x, y, mask_pad_x, mask_tril_y)


# ---------------- parameter init & demo --------------------------------------

def init_params(key):
    ks = jax.random.split(key, 8)
    p = {}
    p["w_qkvo1"] = 0.1 * jax.random.normal(ks[0], (4, D, D), jnp.float32)
    p["b_qkvo1"] = 0.1 * jax.random.normal(ks[1], (4, D), jnp.float32)
    p["ln1"] = jnp.stack([jnp.ones((D,), jnp.float32),
                          jnp.zeros((D,), jnp.float32)])        # gamma, beta
    p["w_qkvo2"] = 0.1 * jax.random.normal(ks[2], (4, D, D), jnp.float32)
    p["b_qkvo2"] = 0.1 * jax.random.normal(ks[3], (4, D), jnp.float32)
    p["ln2"] = jnp.stack([jnp.ones((D,), jnp.float32),
                          jnp.zeros((D,), jnp.float32)])
    p["wf1"] = 0.1 * jax.random.normal(ks[4], (D, DFF), jnp.float32)
    p["bf1"] = 0.1 * jax.random.normal(ks[5], (1, DFF), jnp.float32)
    p["wf2"] = 0.1 * jax.random.normal(ks[6], (DFF, D), jnp.float32)
    p["bf2"] = 0.1 * jax.random.normal(ks[7], (1, D), jnp.float32)
    p["lnf"] = jnp.stack([jnp.ones((D,), jnp.float32),
                          jnp.zeros((D,), jnp.float32)])
    return p


if __name__ == "__main__":
    key = jax.random.PRNGKey(0)
    k_x, k_y, k_p = jax.random.split(key, 3)

    B, S = 8, 8
    x = jax.random.normal(k_x, (B, S, D), jnp.float32)   # encoder output
    y = jax.random.normal(k_y, (B, S, D), jnp.float32)   # decoder input

    # self-attention mask: causal (strictly-upper triangle) OR target key-pad
    tril = jnp.triu(jnp.ones((S, S), jnp.float32), k=1)
    pad_y_vec = jnp.zeros((B, S), jnp.float32).at[2::2, S - 1:].set(1.0)
    mask_tril_y = jnp.clip(tril[None, :, :] + pad_y_vec[:, None, :], 0.0, 1.0)

    # cross-attention mask: odd batches pad their last 2 source tokens
    pad_x_vec = jnp.zeros((B, S), jnp.float32).at[1::2, S - 2:].set(1.0)
    mask_pad_x = jnp.broadcast_to(pad_x_vec[:, None, :], (B, S, S))

    params = init_params(k_p)

    out = decoder_layer(x, y, mask_pad_x, mask_tril_y, params)
    out = jax.block_until_ready(out)

    ref = reference(x, y, mask_pad_x, mask_tril_y, params)
    assert out.shape == (B, S, D)
    max_err = float(jnp.max(jnp.abs(out - ref)))
    # tolerance accounts for bf16 matmul operands (f32 accumulation)
    assert jnp.allclose(out, ref, atol=5e-2, rtol=5e-2), \
        f"mismatch vs reference: max_err={max_err}"

    print("KERNEL_OK")
</pallas_src>

<mosaic_0001>
module attributes {stable_mosaic.version = 11 : i64} {
  func.func @decoder_layer_kernel(%arg0: i32, %arg1: memref<4x8x32xf32, #tpu.memory_space<vmem>>, %arg2: memref<4x8x32xf32, #tpu.memory_space<vmem>>, %arg3: memref<4x1x8xf32, #tpu.memory_space<vmem>>, %arg4: memref<4x1x8xf32, #tpu.memory_space<vmem>>, %arg5: memref<32x96xbf16, #tpu.memory_space<vmem>>, %arg6: memref<64x64xbf16, #tpu.memory_space<vmem>>, %arg7: memref<160x32xbf16, #tpu.memory_space<vmem>>, %arg8: memref<48x32xf32, #tpu.memory_space<vmem>>, %arg9: memref<1x64xf32, #tpu.memory_space<vmem>>, %arg10: memref<4x8x32xf32, #tpu.memory_space<vmem>>) attributes {dimension_semantics = [#tpu.dimension_semantics<parallel>], iteration_bounds = array<i64: 2>, scalar_prefetch = 0 : i64, scratch_operands = 0 : i64, tpu.core_type = #tpu.core_type<tc>, window_params = [{transform_indices = @transform_0, window_bounds = array<i64: 4, 8, 32>}, {transform_indices = @transform_1, window_bounds = array<i64: 4, 8, 32>}, {transform_indices = @transform_2, window_bounds = array<i64: 4, 1, 8>}, {transform_indices = @transform_3, window_bounds = array<i64: 4, 1, 8>}, {pipeline_mode = #tpu.pipeline_mode<synchronous>, transform_indices = @transform_4, window_bounds = array<i64: 32, 96>}, {pipeline_mode = #tpu.pipeline_mode<synchronous>, transform_indices = @transform_5, window_bounds = array<i64: 64, 64>}, {pipeline_mode = #tpu.pipeline_mode<synchronous>, transform_indices = @transform_6, window_bounds = array<i64: 160, 32>}, {pipeline_mode = #tpu.pipeline_mode<synchronous>, transform_indices = @transform_7, window_bounds = array<i64: 48, 32>}, {pipeline_mode = #tpu.pipeline_mode<synchronous>, transform_indices = @transform_8, window_bounds = array<i64: 1, 64>}, {transform_indices = @transform_9, window_bounds = array<i64: 4, 8, 32>}]} {
    %c0 = arith.constant 0 : index
    %c0_0 = arith.constant 0 : index
    %c0_1 = arith.constant 0 : index
    %0 = vector.load %arg1[%c0, %c0_0, %c0_1] : memref<4x8x32xf32, #tpu.memory_space<vmem>>, vector<4x8x32xf32>
    %1 = vector.shape_cast %0 : vector<4x8x32xf32> to vector<32x32xf32>
    %c0_2 = arith.constant 0 : index
    %c0_3 = arith.constant 0 : index
    %c0_4 = arith.constant 0 : index
    %2 = vector.load %arg2[%c0_2, %c0_3, %c0_4] : memref<4x8x32xf32, #tpu.memory_space<vmem>>, vector<4x8x32xf32>
    %3 = vector.shape_cast %2 : vector<4x8x32xf32> to vector<32x32xf32>
    %c0_5 = arith.constant 0 : index
    %c0_6 = arith.constant 0 : index
    %4 = vector.load %arg8[%c0_5, %c0_6] : memref<48x32xf32, #tpu.memory_space<vmem>>, vector<48x32xf32>
    %c0_7 = arith.constant 0 : index
    %c0_8 = arith.constant 0 : index
    %5 = vector.load %arg5[%c0_7, %c0_8] : memref<32x96xbf16, #tpu.memory_space<vmem>>, vector<32x96xbf16>
    %c0_9 = arith.constant 0 : index
    %c0_10 = arith.constant 0 : index
    %6 = vector.load %arg6[%c0_9, %c0_10] : memref<64x64xbf16, #tpu.memory_space<vmem>>, vector<64x64xbf16>
    %c0_11 = arith.constant 0 : index
    %c0_12 = arith.constant 0 : index
    %7 = vector.load %arg7[%c0_11, %c0_12] : memref<160x32xbf16, #tpu.memory_space<vmem>>, vector<160x32xbf16>
    %c0_13 = arith.constant 0 : index
    %c0_14 = arith.constant 0 : index
    %8 = vector.load %arg9[%c0_13, %c0_14] : memref<1x64xf32, #tpu.memory_space<vmem>>, vector<1x64xf32>
    %9 = tpu.iota {dimensions = array<i32: 0>} : vector<8x8xi32>
    %10 = tpu.iota {dimensions = array<i32: 1>} : vector<8x8xi32>
    %11 = arith.cmpi sgt, %10, %9 : vector<8x8xi32>
    %12 = arith.extui %11 : vector<8x8xi1> to vector<8x8xi32>
    %13 = arith.sitofp %12 : vector<8x8xi32> to vector<8x8xf32>
    %14 = vector.shape_cast %13 : vector<8x8xf32> to vector<1x8x8xf32>
    %cst = arith.constant -1.000000e+30 : f32
    %15 = vector.broadcast %cst : f32 to vector<1x8x8xf32>
    %16 = arith.mulf %14, %15 : vector<1x8x8xf32>
    %c0_15 = arith.constant 0 : index
    %c0_16 = arith.constant 0 : index
    %c0_17 = arith.constant 0 : index
    %17 = vector.load %arg4[%c0_15, %c0_16, %c0_17] : memref<4x1x8xf32, #tpu.memory_space<vmem>>, vector<4x1x8xf32>
    %cst_18 = arith.constant -1.000000e+30 : f32
    %18 = vector.broadcast %cst_18 : f32 to vector<4x1x8xf32>
    %19 = arith.mulf %17, %18 : vector<4x1x8xf32>
    %20 = vector.broadcast %16 : vector<1x8x8xf32> to vector<4x8x8xf32>
    %21 = vector.broadcast %19 : vector<4x1x8xf32> to vector<4x8x8xf32>
    %22 = arith.addf %20, %21 : vector<4x8x8xf32>
    %c0_19 = arith.constant 0 : index
    %c0_20 = arith.constant 0 : index
    %c0_21 = arith.constant 0 : index
    %23 = vector.load %arg3[%c0_19, %c0_20, %c0_21] : memref<4x1x8xf32, #tpu.memory_space<vmem>>, vector<4x1x8xf32>
    %cst_22 = arith.constant -1.000000e+30 : f32
    %24 = vector.broadcast %cst_22 : f32 to vector<4x1x8xf32>
    %25 = arith.mulf %23, %24 : vector<4x1x8xf32>
    %26 = vector.shape_cast %25 : vector<4x1x8xf32> to vector<4x1x8xf32>
    %27 = vector.broadcast %26 : vector<4x1x8xf32> to vector<4x8x8xf32>
    %28 = vector.extract_strided_slice %4 {offsets = [8, 0], sizes = [1, 32], strides = [1, 1]} : vector<48x32xf32> to vector<1x32xf32>
    %29 = vector.extract_strided_slice %4 {offsets = [9, 0], sizes = [1, 32], strides = [1, 1]} : vector<48x32xf32> to vector<1x32xf32>
    %cst_23 = arith.constant dense<0.000000e+00> : vector<32xf32>
    %30 = vector.multi_reduction <add>, %3, %cst_23 [1] : vector<32x32xf32> to vector<32xf32>
    %31 = vector.shape_cast %30 : vector<32xf32> to vector<32x1xf32>
    %cst_24 = arith.constant 3.200000e+01 : f32
    %32 = vector.broadcast %cst_24 : f32 to vector<32x1xf32>
    %33 = arith.divf %31, %32 : vector<32x1xf32>
    %34 = arith.mulf %3, %3 : vector<32x32xf32>
    %cst_25 = arith.constant dense<0.000000e+00> : vector<32xf32>
    %35 = vector.multi_reduction <add>, %34, %cst_25 [1] : vector<32x32xf32> to vector<32xf32>
    %36 = vector.shape_cast %35 : vector<32xf32> to vector<32x1xf32>
    %cst_26 = arith.constant 3.200000e+01 : f32
    %37 = vector.broadcast %cst_26 : f32 to vector<32x1xf32>
    %38 = arith.divf %36, %37 : vector<32x1xf32>
    %39 = arith.mulf %33, %33 : vector<32x1xf32>
    %40 = arith.subf %38, %39 : vector<32x1xf32>
    %41 = vector.broadcast %33 : vector<32x1xf32> to vector<32x32xf32>
    %42 = arith.subf %3, %41 : vector<32x32xf32>
    %cst_27 = arith.constant 9.99999974E-6 : f32
    %43 = vector.broadcast %cst_27 : f32 to vector<32x1xf32>
    %44 = arith.addf %40, %43 : vector<32x1xf32>
    %45 = math.rsqrt %44 : vector<32x1xf32>
    %46 = vector.broadcast %45 : vector<32x1xf32> to vector<32x32xf32>
    %47 = arith.mulf %42, %46 : vector<32x32xf32>
    %48 = vector.broadcast %28 : vector<1x32xf32> to vector<32x32xf32>
    %49 = arith.mulf %47, %48 : vector<32x32xf32>
    %50 = vector.broadcast %29 : vector<1x32xf32> to vector<32x32xf32>
    %51 = arith.addf %49, %50 : vector<32x32xf32>
    %52 = arith.truncf %51 : vector<32x32xf32> to vector<32x32xbf16>
    %cst_28 = arith.constant dense<0.000000e+00> : vector<32x96xf32>
    %53 = tpu.matmul %52, %5, %cst_28 {dimension_numbers = #tpu.dot_dimension_numbers<[1], [0], [0], [1], [0, 0, 1, 1], [], []>} : vector<32x32xbf16>, vector<32x96xbf16>, vector<32x96xf32> -> vector<32x96xf32>
    %54 = vector.extract_strided_slice %53 {offsets = [0, 0], sizes = [32, 32], strides = [1, 1]} : vector<32x96xf32> to vector<32x32xf32>
    %55 = vector.extract_strided_slice %4 {offsets = [0, 0], sizes = [1, 32], strides = [1, 1]} : vector<48x32xf32> to vector<1x32xf32>
    %56 = vector.broadcast %55 : vector<1x32xf32> to vector<32x32xf32>
    %57 = arith.addf %54, %56 : vector<32x32xf32>
    %58 = vector.extract_strided_slice %53 {offsets = [0, 32], sizes = [32, 32], strides = [1, 1]} : vector<32x96xf32> to vector<32x32xf32>
    %59 = vector.extract_strided_slice %4 {offsets = [1, 0], sizes = [1, 32], strides = [1, 1]} : vector<48x32xf32> to vector<1x32xf32>
    %60 = vector.broadcast %59 : vector<1x32xf32> to vector<32x32xf32>
    %61 = arith.addf %58, %60 : vector<32x32xf32>
    %62 = vector.extract_strided_slice %53 {offsets = [0, 64], sizes = [32, 32], strides = [1, 1]} : vector<32x96xf32> to vector<32x32xf32>
    %63 = vector.extract_strided_slice %4 {offsets = [2, 0], sizes = [1, 32], strides = [1, 1]} : vector<48x32xf32> to vector<1x32xf32>
    %64 = vector.broadcast %63 : vector<1x32xf32> to vector<32x32xf32>
    %65 = arith.addf %62, %64 : vector<32x32xf32>
    %66 = vector.extract_strided_slice %7 {offsets = [0, 0], sizes = [32, 32], strides = [1, 1]} : vector<160x32xbf16> to vector<32x32xbf16>
    %67 = vector.extract_strided_slice %4 {offsets = [3, 0], sizes = [1, 32], strides = [1, 1]} : vector<48x32xf32> to vector<1x32xf32>
    %68 = vector.shape_cast %57 : vector<32x32xf32> to vector<4x8x32xf32>
    %69 = arith.truncf %68 : vector<4x8x32xf32> to vector<4x8x32xbf16>
    %70 = vector.shape_cast %61 : vector<32x32xf32> to vector<4x8x32xf32>
    %71 = arith.truncf %70 : vector<4x8x32xf32> to vector<4x8x32xbf16>
    %72 = vector.shape_cast %65 : vector<32x32xf32> to vector<4x8x32xf32>
    %73 = arith.truncf %72 : vector<4x8x32xf32> to vector<4x8x32xbf16>
    %74 = vector.extract_strided_slice %69 {offsets = [0, 0, 0], sizes = [4, 8, 8], strides = [1, 1, 1]} : vector<4x8x32xbf16> to vector<4x8x8xbf16>
    %75 = vector.extract_strided_slice %71 {offsets = [0, 0, 0], sizes = [4, 8, 8], strides = [1, 1, 1]} : vector<4x8x32xbf16> to vector<4x8x8xbf16>
    "tpu.trace_start"() <{level = 10 : i32, message = "bqd,bkd->bqk"}> : () -> ()
    %cst_29 = arith.constant dense<0.000000e+00> : vector<4x8x8xf32>
    %76 = tpu.matmul %74, %75, %cst_29 {dimension_numbers = #tpu.dot_dimension_numbers<[2], [2], [1], [1], [0, 0, 0, 1, 1, 1], [0], [0]>} : vector<4x8x8xbf16>, vector<4x8x8xbf16>, vector<4x8x8xf32> -> vector<4x8x8xf32>
    "tpu.trace_stop"() : () -> ()
    %77 = arith.addf %76, %22 : vector<4x8x8xf32>
    %cst_30 = arith.constant dense<0xFF800000> : vector<4x8xf32>
    %78 = vector.multi_reduction <maximumf>, %77, %cst_30 [2] : vector<4x8x8xf32> to vector<4x8xf32>
    %79 = vector.shape_cast %78 : vector<4x8xf32> to vector<4x8x1xf32>
    %80 = vector.broadcast %79 : vector<4x8x1xf32> to vector<4x8x8xf32>
    %81 = arith.subf %77, %80 : vector<4x8x8xf32>
    %82 = math.exp %81 : vector<4x8x8xf32>
    %cst_31 = arith.constant dense<0.000000e+00> : vector<4x8xf32>
    %83 = vector.multi_reduction <add>, %82, %cst_31 [2] : vector<4x8x8xf32> to vector<4x8xf32>
    %84 = vector.shape_cast %83 : vector<4x8xf32> to vector<4x8x1xf32>
    %85 = vector.broadcast %84 : vector<4x8x1xf32> to vector<4x8x8xf32>
    %86 = arith.divf %82, %85 : vector<4x8x8xf32>
    %87 = arith.truncf %86 : vector<4x8x8xf32> to vector<4x8x8xbf16>
    %88 = vector.extract_strided_slice %73 {offsets = [0, 0, 0], sizes = [4, 8, 8], strides = [1, 1, 1]} : vector<4x8x32xbf16> to vector<4x8x8xbf16>
    "tpu.trace_start"() <{level = 10 : i32, message = "bqk,bkd->bqd"}> : () -> ()
    %cst_32 = arith.constant dense<0.000000e+00> : vector<4x8x8xf32>
    %89 = tpu.matmul %87, %88, %cst_32 {dimension_numbers = #tpu.dot_dimension_numbers<[2], [1], [1], [2], [0, 0, 0, 1, 1, 2], [0], [0]>} : vector<4x8x8xbf16>, vector<4x8x8xbf16>, vector<4x8x8xf32> -> vector<4x8x8xf32>
    "tpu.trace_stop"() : () -> ()
    %90 = vector.extract_strided_slice %69 {offsets = [0, 0, 8], sizes = [4, 8, 8], strides = [1, 1, 1]} : vector<4x8x32xbf16> to vector<4x8x8xbf16>
    %91 = vector.extract_strided_slice %71 {offsets = [0, 0, 8], sizes = [4, 8, 8], strides = [1, 1, 1]} : vector<4x8x32xbf16> to vector<4x8x8xbf16>
    "tpu.trace_start"() <{level = 10 : i32, message = "bqd,bkd->bqk"}> : () -> ()
    %cst_33 = arith.constant dense<0.000000e+00> : vector<4x8x8xf32>
    %92 = tpu.matmul %90, %91, %cst_33 {dimension_numbers = #tpu.dot_dimension_numbers<[2], [2], [1], [1], [0, 0, 0, 1, 1, 1], [0], [0]>} : vector<4x8x8xbf16>, vector<4x8x8xbf16>, vector<4x8x8xf32> -> vector<4x8x8xf32>
    "tpu.trace_stop"() : () -> ()
    %93 = arith.addf %92, %22 : vector<4x8x8xf32>
    %cst_34 = arith.constant dense<0xFF800000> : vector<4x8xf32>
    %94 = vector.multi_reduction <maximumf>, %93, %cst_34 [2] : vector<4x8x8xf32> to vector<4x8xf32>
    %95 = vector.shape_cast %94 : vector<4x8xf32> to vector<4x8x1xf32>
    %96 = vector.broadcast %95 : vector<4x8x1xf32> to vector<4x8x8xf32>
    %97 = arith.subf %93, %96 : vector<4x8x8xf32>
    %98 = math.exp %97 : vector<4x8x8xf32>
    %cst_35 = arith.constant dense<0.000000e+00> : vector<4x8xf32>
    %99 = vector.multi_reduction <add>, %98, %cst_35 [2] : vector<4x8x8xf32> to vector<4x8xf32>
    %100 = vector.shape_cast %99 : vector<4x8xf32> to vector<4x8x1xf32>
    %101 = vector.broadcast %100 : vector<4x8x1xf32> to vector<4x8x8xf32>
    %102 = arith.divf %98, %101 : vector<4x8x8xf32>
    %103 = arith.truncf %102 : vector<4x8x8xf32> to vector<4x8x8xbf16>
    %104 = vector.extract_strided_slice %73 {offsets = [0, 0, 8], sizes = [4, 8, 8], strides = [1, 1, 1]} : vector<4x8x32xbf16> to vector<4x8x8xbf16>
    "tpu.trace_start"() <{level = 10 : i32, message = "bqk,bkd->bqd"}> : () -> ()
    %cst_36 = arith.constant dense<0.000000e+00> : vector<4x8x8xf32>
    %105 = tpu.matmul %103, %104, %cst_36 {dimension_numbers = #tpu.dot_dimension_numbers<[2], [1], [1], [2], [0, 0, 0, 1, 1, 2], [0], [0]>} : vector<4x8x8xbf16>, vector<4x8x8xbf16>, vector<4x8x8xf32> -> vector<4x8x8xf32>
    "tpu.trace_stop"() : () -> ()
    %106 = vector.extract_strided_slice %69 {offsets = [0, 0, 16], sizes = [4, 8, 8], strides = [1, 1, 1]} : vector<4x8x32xbf16> to vector<4x8x8xbf16>
    %107 = vector.extract_strided_slice %71 {offsets = [0, 0, 16], sizes = [4, 8, 8], strides = [1, 1, 1]} : vector<4x8x32xbf16> to vector<4x8x8xbf16>
    "tpu.trace_start"() <{level = 10 : i32, message = "bqd,bkd->bqk"}> : () -> ()
    %cst_37 = arith.constant dense<0.000000e+00> : vector<4x8x8xf32>
    %108 = tpu.matmul %106, %107, %cst_37 {dimension_numbers = #tpu.dot_dimension_numbers<[2], [2], [1], [1], [0, 0, 0, 1, 1, 1], [0], [0]>} : vector<4x8x8xbf16>, vector<4x8x8xbf16>, vector<4x8x8xf32> -> vector<4x8x8xf32>
    "tpu.trace_stop"() : () -> ()
    %109 = arith.addf %108, %22 : vector<4x8x8xf32>
    %cst_38 = arith.constant dense<0xFF800000> : vector<4x8xf32>
    %110 = vector.multi_reduction <maximumf>, %109, %cst_38 [2] : vector<4x8x8xf32> to vector<4x8xf32>
    %111 = vector.shape_cast %110 : vector<4x8xf32> to vector<4x8x1xf32>
    %112 = vector.broadcast %111 : vector<4x8x1xf32> to vector<4x8x8xf32>
    %113 = arith.subf %109, %112 : vector<4x8x8xf32>
    %114 = math.exp %113 : vector<4x8x8xf32>
    %cst_39 = arith.constant dense<0.000000e+00> : vector<4x8xf32>
    %115 = vector.multi_reduction <add>, %114, %cst_39 [2] : vector<4x8x8xf32> to vector<4x8xf32>
    %116 = vector.shape_cast %115 : vector<4x8xf32> to vector<4x8x1xf32>
    %117 = vector.broadcast %116 : vector<4x8x1xf32> to vector<4x8x8xf32>
    %118 = arith.divf %114, %117 : vector<4x8x8xf32>
    %119 = arith.truncf %118 : vector<4x8x8xf32> to vector<4x8x8xbf16>
    %120 = vector.extract_strided_slice %73 {offsets = [0, 0, 16], sizes = [4, 8, 8], strides = [1, 1, 1]} : vector<4x8x32xbf16> to vector<4x8x8xbf16>
    "tpu.trace_start"() <{level = 10 : i32, message = "bqk,bkd->bqd"}> : () -> ()
    %cst_40 = arith.constant dense<0.000000e+00> : vector<4x8x8xf32>
    %121 = tpu.matmul %119, %120, %cst_40 {dimension_numbers = #tpu.dot_dimension_numbers<[2], [1], [1], [2], [0, 0, 0, 1, 1, 2], [0], [0]>} : vector<4x8x8xbf16>, vector<4x8x8xbf16>, vector<4x8x8xf32> -> vector<4x8x8xf32>
    "tpu.trace_stop"() : () -> ()
    %122 = vector.extract_strided_slice %69 {offsets = [0, 0, 24], sizes = [4, 8, 8], strides = [1, 1, 1]} : vector<4x8x32xbf16> to vector<4x8x8xbf16>
    %123 = vector.extract_strided_slice %71 {offsets = [0, 0, 24], sizes = [4, 8, 8], strides = [1, 1, 1]} : vector<4x8x32xbf16> to vector<4x8x8xbf16>
    "tpu.trace_start"() <{level = 10 : i32, message = "bqd,bkd->bqk"}> : () -> ()
    %cst_41 = arith.constant dense<0.000000e+00> : vector<4x8x8xf32>
    %124 = tpu.matmul %122, %123, %cst_41 {dimension_numbers = #tpu.dot_dimension_numbers<[2], [2], [1], [1], [0, 0, 0, 1, 1, 1], [0], [0]>} : vector<4x8x8xbf16>, vector<4x8x8xbf16>, vector<4x8x8xf32> -> vector<4x8x8xf32>
    "tpu.trace_stop"() : () -> ()
    %125 = arith.addf %124, %22 : vector<4x8x8xf32>
    %cst_42 = arith.constant dense<0xFF800000> : vector<4x8xf32>
    %126 = vector.multi_reduction <maximumf>, %125, %cst_42 [2] : vector<4x8x8xf32> to vector<4x8xf32>
    %127 = vector.shape_cast %126 : vector<4x8xf32> to vector<4x8x1xf32>
    %128 = vector.broadcast %127 : vector<4x8x1xf32> to vector<4x8x8xf32>
    %129 = arith.subf %125, %128 : vector<4x8x8xf32>
    %130 = math.exp %129 : vector<4x8x8xf32>
    %cst_43 = arith.constant dense<0.000000e+00> : vector<4x8xf32>
    %131 = vector.multi_reduction <add>, %130, %cst_43 [2] : vector<4x8x8xf32> to vector<4x8xf32>
    %132 = vector.shape_cast %131 : vector<4x8xf32> to vector<4x8x1xf32>
    %133 = vector.broadcast %132 : vector<4x8x1xf32> to vector<4x8x8xf32>
    %134 = arith.divf %130, %133 : vector<4x8x8xf32>
    %135 = arith.truncf %134 : vector<4x8x8xf32> to vector<4x8x8xbf16>
    %136 = vector.extract_strided_slice %73 {offsets = [0, 0, 24], sizes = [4, 8, 8], strides = [1, 1, 1]} : vector<4x8x32xbf16> to vector<4x8x8xbf16>
    "tpu.trace_start"() <{level = 10 : i32, message = "bqk,bkd->bqd"}> : () -> ()
    %cst_44 = arith.constant dense<0.000000e+00> : vector<4x8x8xf32>
    %137 = tpu.matmul %135, %136, %cst_44 {dimension_numbers = #tpu.dot_dimension_numbers<[2], [1], [1], [2], [0, 0, 0, 1, 1, 2], [0], [0]>} : vector<4x8x8xbf16>, vector<4x8x8xbf16>, vector<4x8x8xf32> -> vector<4x8x8xf32>
    "tpu.trace_stop"() : () -> ()
    %138 = tpu.concatenate %89, %105, %121, %137 in 2 : vector<4x8x8xf32>, vector<4x8x8xf32>, vector<4x8x8xf32>, vector<4x8x8xf32> -> vector<4x8x32xf32>
    %139 = vector.shape_cast %138 : vector<4x8x32xf32> to vector<32x32xf32>
    %140 = arith.truncf %139 : vector<32x32xf32> to vector<32x32xbf16>
    %cst_45 = arith.constant dense<0.000000e+00> : vector<32x32xf32>
    %141 = tpu.matmul %140, %66, %cst_45 {dimension_numbers = #tpu.dot_dimension_numbers<[1], [0], [0], [1], [0, 0, 1, 1], [], []>} : vector<32x32xbf16>, vector<32x32xbf16>, vector<32x32xf32> -> vector<32x32xf32>
    %142 = arith.addf %3, %141 : vector<32x32xf32>
    %143 = vector.broadcast %67 : vector<1x32xf32> to vector<32x32xf32>
    %144 = arith.addf %142, %143 : vector<32x32xf32>
    %145 = vector.extract_strided_slice %4 {offsets = [24, 0], sizes = [1, 32], strides = [1, 1]} : vector<48x32xf32> to vector<1x32xf32>
    %146 = vector.extract_strided_slice %4 {offsets = [25, 0], sizes = [1, 32], strides = [1, 1]} : vector<48x32xf32> to vector<1x32xf32>
    %cst_46 = arith.constant dense<0.000000e+00> : vector<32xf32>
    %147 = vector.multi_reduction <add>, %144, %cst_46 [1] : vector<32x32xf32> to vector<32xf32>
    %148 = vector.shape_cast %147 : vector<32xf32> to vector<32x1xf32>
    %cst_47 = arith.constant 3.200000e+01 : f32
    %149 = vector.broadcast %cst_47 : f32 to vector<32x1xf32>
    %150 = arith.divf %148, %149 : vector<32x1xf32>
    %151 = arith.mulf %144, %144 : vector<32x32xf32>
    %cst_48 = arith.constant dense<0.000000e+00> : vector<32xf32>
    %152 = vector.multi_reduction <add>, %151, %cst_48 [1] : vector<32x32xf32> to vector<32xf32>
    %153 = vector.shape_cast %152 : vector<32xf32> to vector<32x1xf32>
    %cst_49 = arith.constant 3.200000e+01 : f32
    %154 = vector.broadcast %cst_49 : f32 to vector<32x1xf32>
    %155 = arith.divf %153, %154 : vector<32x1xf32>
    %156 = arith.mulf %150, %150 : vector<32x1xf32>
    %157 = arith.subf %155, %156 : vector<32x1xf32>
    %158 = vector.broadcast %150 : vector<32x1xf32> to vector<32x32xf32>
    %159 = arith.subf %144, %158 : vector<32x32xf32>
    %cst_50 = arith.constant 9.99999974E-6 : f32
    %160 = vector.broadcast %cst_50 : f32 to vector<32x1xf32>
    %161 = arith.addf %157, %160 : vector<32x1xf32>
    %162 = math.rsqrt %161 : vector<32x1xf32>
    %163 = vector.broadcast %162 : vector<32x1xf32> to vector<32x32xf32>
    %164 = arith.mulf %159, %163 : vector<32x32xf32>
    %165 = vector.broadcast %145 : vector<1x32xf32> to vector<32x32xf32>
    %166 = arith.mulf %164, %165 : vector<32x32xf32>
    %167 = vector.broadcast %146 : vector<1x32xf32> to vector<32x32xf32>
    %168 = arith.addf %166, %167 : vector<32x32xf32>
    %169 = arith.truncf %168 : vector<32x32xf32> to vector<32x32xbf16>
    %170 = vector.extract_strided_slice %4 {offsets = [24, 0], sizes = [1, 32], strides = [1, 1]} : vector<48x32xf32> to vector<1x32xf32>
    %171 = vector.extract_strided_slice %4 {offsets = [25, 0], sizes = [1, 32], strides = [1, 1]} : vector<48x32xf32> to vector<1x32xf32>
    %cst_51 = arith.constant dense<0.000000e+00> : vector<32xf32>
    %172 = vector.multi_reduction <add>, %1, %cst_51 [1] : vector<32x32xf32> to vector<32xf32>
    %173 = vector.shape_cast %172 : vector<32xf32> to vector<32x1xf32>
    %cst_52 = arith.constant 3.200000e+01 : f32
    %174 = vector.broadcast %cst_52 : f32 to vector<32x1xf32>
    %175 = arith.divf %173, %174 : vector<32x1xf32>
    %176 = arith.mulf %1, %1 : vector<32x32xf32>
    %cst_53 = arith.constant dense<0.000000e+00> : vector<32xf32>
    %177 = vector.multi_reduction <add>, %176, %cst_53 [1] : vector<32x32xf32> to vector<32xf32>
    %178 = vector.shape_cast %177 : vector<32xf32> to vector<32x1xf32>
    %cst_54 = arith.constant 3.200000e+01 : f32
    %179 = vector.broadcast %cst_54 : f32 to vector<32x1xf32>
    %180 = arith.divf %178, %179 : vector<32x1xf32>
    %181 = arith.mulf %175, %175 : vector<32x1xf32>
    %182 = arith.subf %180, %181 : vector<32x1xf32>
    %183 = vector.broadcast %175 : vector<32x1xf32> to vector<32x32xf32>
    %184 = arith.subf %1, %183 : vector<32x32xf32>
    %cst_55 = arith.constant 9.99999974E-6 : f32
    %185 = vector.broadcast %cst_55 : f32 to vector<32x1xf32>
    %186 = arith.addf %182, %185 : vector<32x1xf32>
    %187 = math.rsqrt %186 : vector<32x1xf32>
    %188 = vector.broadcast %187 : vector<32x1xf32> to vector<32x32xf32>
    %189 = arith.mulf %184, %188 : vector<32x32xf32>
    %190 = vector.broadcast %170 : vector<1x32xf32> to vector<32x32xf32>
    %191 = arith.mulf %189, %190 : vector<32x32xf32>
    %192 = vector.broadcast %171 : vector<1x32xf32> to vector<32x32xf32>
    %193 = arith.addf %191, %192 : vector<32x32xf32>
    %194 = arith.truncf %193 : vector<32x32xf32> to vector<32x32xbf16>
    %195 = vector.extract_strided_slice %7 {offsets = [32, 0], sizes = [32, 32], strides = [1, 1]} : vector<160x32xbf16> to vector<32x32xbf16>
    %cst_56 = arith.constant dense<0.000000e+00> : vector<32x32xf32>
    %196 = tpu.matmul %169, %195, %cst_56 {dimension_numbers = #tpu.dot_dimension_numbers<[1], [0], [0], [1], [0, 0, 1, 1], [], []>} : vector<32x32xbf16>, vector<32x32xbf16>, vector<32x32xf32> -> vector<32x32xf32>
    %197 = vector.extract_strided_slice %4 {offsets = [16, 0], sizes = [1, 32], strides = [1, 1]} : vector<48x32xf32> to vector<1x32xf32>
    %198 = vector.broadcast %197 : vector<1x32xf32> to vector<32x32xf32>
    %199 = arith.addf %196, %198 : vector<32x32xf32>
    %200 = vector.extract_strided_slice %6 {offsets = [0, 0], sizes = [32, 64], strides = [1, 1]} : vector<64x64xbf16> to vector<32x64xbf16>
    %cst_57 = arith.constant dense<0.000000e+00> : vector<32x64xf32>
    %201 = tpu.matmul %194, %200, %cst_57 {dimension_numbers = #tpu.dot_dimension_numbers<[1], [0], [0], [1], [0, 0, 1, 1], [], []>} : vector<32x32xbf16>, vector<32x64xbf16>, vector<32x64xf32> -> vector<32x64xf32>
    %202 = vector.extract_strided_slice %201 {offsets = [0, 0], sizes = [32, 32], strides = [1, 1]} : vector<32x64xf32> to vector<32x32xf32>
    %203 = vector.extract_strided_slice %4 {offsets = [17, 0], sizes = [1, 32], strides = [1, 1]} : vector<48x32xf32> to vector<1x32xf32>
    %204 = vector.broadcast %203 : vector<1x32xf32> to vector<32x32xf32>
    %205 = arith.addf %202, %204 : vector<32x32xf32>
    %206 = vector.extract_strided_slice %201 {offsets = [0, 32], sizes = [32, 32], strides = [1, 1]} : vector<32x64xf32> to vector<32x32xf32>
    %207 = vector.extract_strided_slice %4 {offsets = [18, 0], sizes = [1, 32], strides = [1, 1]} : vector<48x32xf32> to vector<1x32xf32>
    %208 = vector.broadcast %207 : vector<1x32xf32> to vector<32x32xf32>
    %209 = arith.addf %206, %208 : vector<32x32xf32>
    %210 = vector.extract_strided_slice %7 {offsets = [64, 0], sizes = [32, 32], strides = [1, 1]} : vector<160x32xbf16> to vector<32x32xbf16>
    %211 = vector.extract_strided_slice %4 {offsets = [19, 0], sizes = [1, 32], strides = [1, 1]} : vector<48x32xf32> to vector<1x32xf32>
    %212 = vector.shape_cast %199 : vector<32x32xf32> to vector<4x8x32xf32>
    %213 = arith.truncf %212 : vector<4x8x32xf32> to vector<4x8x32xbf16>
    %214 = vector.shape_cast %205 : vector<32x32xf32> to vector<4x8x32xf32>
    %215 = arith.truncf %214 : vector<4x8x32xf32> to vector<4x8x32xbf16>
    %216 = vector.shape_cast %209 : vector<32x32xf32> to vector<4x8x32xf32>
    %217 = arith.truncf %216 : vector<4x8x32xf32> to vector<4x8x32xbf16>
    %218 = vector.extract_strided_slice %213 {offsets = [0, 0, 0], sizes = [4, 8, 8], strides = [1, 1, 1]} : vector<4x8x32xbf16> to vector<4x8x8xbf16>
    %219 = vector.extract_strided_slice %215 {offsets = [0, 0, 0], sizes = [4, 8, 8], strides = [1, 1, 1]} : vector<4x8x32xbf16> to vector<4x8x8xbf16>
    "tpu.trace_start"() <{level = 10 : i32, message = "bqd,bkd->bqk"}> : () -> ()
    %cst_58 = arith.constant dense<0.000000e+00> : vector<4x8x8xf32>
    %220 = tpu.matmul %218, %219, %cst_58 {dimension_numbers = #tpu.dot_dimension_numbers<[2], [2], [1], [1], [0, 0, 0, 1, 1, 1], [0], [0]>} : vector<4x8x8xbf16>, vector<4x8x8xbf16>, vector<4x8x8xf32> -> vector<4x8x8xf32>
    "tpu.trace_stop"() : () -> ()
    %221 = arith.addf %220, %27 : vector<4x8x8xf32>
    %cst_59 = arith.constant dense<0xFF800000> : vector<4x8xf32>
    %222 = vector.multi_reduction <maximumf>, %221, %cst_59 [2] : vector<4x8x8xf32> to vector<4x8xf32>
    %223 = vector.shape_cast %222 : vector<4x8xf32> to vector<4x8x1xf32>
    %224 = vector.broadcast %223 : vector<4x8x1xf32> to vector<4x8x8xf32>
    %225 = arith.subf %221, %224 : vector<4x8x8xf32>
    %226 = math.exp %225 : vector<4x8x8xf32>
    %cst_60 = arith.constant dense<0.000000e+00> : vector<4x8xf32>
    %227 = vector.multi_reduction <add>, %226, %cst_60 [2] : vector<4x8x8xf32> to vector<4x8xf32>
    %228 = vector.shape_cast %227 : vector<4x8xf32> to vector<4x8x1xf32>
    %229 = vector.broadcast %228 : vector<4x8x1xf32> to vector<4x8x8xf32>
    %230 = arith.divf %226, %229 : vector<4x8x8xf32>
    %231 = arith.truncf %230 : vector<4x8x8xf32> to vector<4x8x8xbf16>
    %232 = vector.extract_strided_slice %217 {offsets = [0, 0, 0], sizes = [4, 8, 8], strides = [1, 1, 1]} : vector<4x8x32xbf16> to vector<4x8x8xbf16>
    "tpu.trace_start"() <{level = 10 : i32, message = "bqk,bkd->bqd"}> : () -> ()
    %cst_61 = arith.constant dense<0.000000e+00> : vector<4x8x8xf32>
    %233 = tpu.matmul %231, %232, %cst_61 {dimension_numbers = #tpu.dot_dimension_numbers<[2], [1], [1], [2], [0, 0, 0, 1, 1, 2], [0], [0]>} : vector<4x8x8xbf16>, vector<4x8x8xbf16>, vector<4x8x8xf32> -> vector<4x8x8xf32>
    "tpu.trace_stop"() : () -> ()
    %234 = vector.extract_strided_slice %213 {offsets = [0, 0, 8], sizes = [4, 8, 8], strides = [1, 1, 1]} : vector<4x8x32xbf16> to vector<4x8x8xbf16>
    %235 = vector.extract_strided_slice %215 {offsets = [0, 0, 8], sizes = [4, 8, 8], strides = [1, 1, 1]} : vector<4x8x32xbf16> to vector<4x8x8xbf16>
    "tpu.trace_start"() <{level = 10 : i32, message = "bqd,bkd->bqk"}> : () -> ()
    %cst_62 = arith.constant dense<0.000000e+00> : vector<4x8x8xf32>
    %236 = tpu.matmul %234, %235, %cst_62 {dimension_numbers = #tpu.dot_dimension_numbers<[2], [2], [1], [1], [0, 0, 0, 1, 1, 1], [0], [0]>} : vector<4x8x8xbf16>, vector<4x8x8xbf16>, vector<4x8x8xf32> -> vector<4x8x8xf32>
    "tpu.trace_stop"() : () -> ()
    %237 = arith.addf %236, %27 : vector<4x8x8xf32>
    %cst_63 = arith.constant dense<0xFF800000> : vector<4x8xf32>
    %238 = vector.multi_reduction <maximumf>, %237, %cst_63 [2] : vector<4x8x8xf32> to vector<4x8xf32>
    %239 = vector.shape_cast %238 : vector<4x8xf32> to vector<4x8x1xf32>
    %240 = vector.broadcast %239 : vector<4x8x1xf32> to vector<4x8x8xf32>
    %241 = arith.subf %237, %240 : vector<4x8x8xf32>
    %242 = math.exp %241 : vector<4x8x8xf32>
    %cst_64 = arith.constant dense<0.000000e+00> : vector<4x8xf32>
    %243 = vector.multi_reduction <add>, %242, %cst_64 [2] : vector<4x8x8xf32> to vector<4x8xf32>
    %244 = vector.shape_cast %243 : vector<4x8xf32> to vector<4x8x1xf32>
    %245 = vector.broadcast %244 : vector<4x8x1xf32> to vector<4x8x8xf32>
    %246 = arith.divf %242, %245 : vector<4x8x8xf32>
    %247 = arith.truncf %246 : vector<4x8x8xf32> to vector<4x8x8xbf16>
    %248 = vector.extract_strided_slice %217 {offsets = [0, 0, 8], sizes = [4, 8, 8], strides = [1, 1, 1]} : vector<4x8x32xbf16> to vector<4x8x8xbf16>
    "tpu.trace_start"() <{level = 10 : i32, message = "bqk,bkd->bqd"}> : () -> ()
    %cst_65 = arith.constant dense<0.000000e+00> : vector<4x8x8xf32>
    %249 = tpu.matmul %247, %248, %cst_65 {dimension_numbers = #tpu.dot_dimension_numbers<[2], [1], [1], [2], [0, 0, 0, 1, 1, 2], [0], [0]>} : vector<4x8x8xbf16>, vector<4x8x8xbf16>, vector<4x8x8xf32> -> vector<4x8x8xf32>
    "tpu.trace_stop"() : () -> ()
    %250 = vector.extract_strided_slice %213 {offsets = [0, 0, 16], sizes = [4, 8, 8], strides = [1, 1, 1]} : vector<4x8x32xbf16> to vector<4x8x8xbf16>
    %251 = vector.extract_strided_slice %215 {offsets = [0, 0, 16], sizes = [4, 8, 8], strides = [1, 1, 1]} : vector<4x8x32xbf16> to vector<4x8x8xbf16>
    "tpu.trace_start"() <{level = 10 : i32, message = "bqd,bkd->bqk"}> : () -> ()
    %cst_66 = arith.constant dense<0.000000e+00> : vector<4x8x8xf32>
    %252 = tpu.matmul %250, %251, %cst_66 {dimension_numbers = #tpu.dot_dimension_numbers<[2], [2], [1], [1], [0, 0, 0, 1, 1, 1], [0], [0]>} : vector<4x8x8xbf16>, vector<4x8x8xbf16>, vector<4x8x8xf32> -> vector<4x8x8xf32>
    "tpu.trace_stop"() : () -> ()
    %253 = arith.addf %252, %27 : vector<4x8x8xf32>
    %cst_67 = arith.constant dense<0xFF800000> : vector<4x8xf32>
    %254 = vector.multi_reduction <maximumf>, %253, %cst_67 [2] : vector<4x8x8xf32> to vector<4x8xf32>
    %255 = vector.shape_cast %254 : vector<4x8xf32> to vector<4x8x1xf32>
    %256 = vector.broadcast %255 : vector<4x8x1xf32> to vector<4x8x8xf32>
    %257 = arith.subf %253, %256 : vector<4x8x8xf32>
    %258 = math.exp %257 : vector<4x8x8xf32>
    %cst_68 = arith.constant dense<0.000000e+00> : vector<4x8xf32>
    %259 = vector.multi_reduction <add>, %258, %cst_68 [2] : vector<4x8x8xf32> to vector<4x8xf32>
    %260 = vector.shape_cast %259 : vector<4x8xf32> to vector<4x8x1xf32>
    %261 = vector.broadcast %260 : vector<4x8x1xf32> to vector<4x8x8xf32>
    %262 = arith.divf %258, %261 : vector<4x8x8xf32>
    %263 = arith.truncf %262 : vector<4x8x8xf32> to vector<4x8x8xbf16>
    %264 = vector.extract_strided_slice %217 {offsets = [0, 0, 16], sizes = [4, 8, 8], strides = [1, 1, 1]} : vector<4x8x32xbf16> to vector<4x8x8xbf16>
    "tpu.trace_start"() <{level = 10 : i32, message = "bqk,bkd->bqd"}> : () -> ()
    %cst_69 = arith.constant dense<0.000000e+00> : vector<4x8x8xf32>
    %265 = tpu.matmul %263, %264, %cst_69 {dimension_numbers = #tpu.dot_dimension_numbers<[2], [1], [1], [2], [0, 0, 0, 1, 1, 2], [0], [0]>} : vector<4x8x8xbf16>, vector<4x8x8xbf16>, vector<4x8x8xf32> -> vector<4x8x8xf32>
    "tpu.trace_stop"() : () -> ()
    %266 = vector.extract_strided_slice %213 {offsets = [0, 0, 24], sizes = [4, 8, 8], strides = [1, 1, 1]} : vector<4x8x32xbf16> to vector<4x8x8xbf16>
    %267 = vector.extract_strided_slice %215 {offsets = [0, 0, 24], sizes = [4, 8, 8], strides = [1, 1, 1]} : vector<4x8x32xbf16> to vector<4x8x8xbf16>
    "tpu.trace_start"() <{level = 10 : i32, message = "bqd,bkd->bqk"}> : () -> ()
    %cst_70 = arith.constant dense<0.000000e+00> : vector<4x8x8xf32>
    %268 = tpu.matmul %266, %267, %cst_70 {dimension_numbers = #tpu.dot_dimension_numbers<[2], [2], [1], [1], [0, 0, 0, 1, 1, 1], [0], [0]>} : vector<4x8x8xbf16>, vector<4x8x8xbf16>, vector<4x8x8xf32> -> vector<4x8x8xf32>
    "tpu.trace_stop"() : () -> ()
    %269 = arith.addf %268, %27 : vector<4x8x8xf32>
    %cst_71 = arith.constant dense<0xFF800000> : vector<4x8xf32>
    %270 = vector.multi_reduction <maximumf>, %269, %cst_71 [2] : vector<4x8x8xf32> to vector<4x8xf32>
    %271 = vector.shape_cast %270 : vector<4x8xf32> to vector<4x8x1xf32>
    %272 = vector.broadcast %271 : vector<4x8x1xf32> to vector<4x8x8xf32>
    %273 = arith.subf %269, %272 : vector<4x8x8xf32>
    %274 = math.exp %273 : vector<4x8x8xf32>
    %cst_72 = arith.constant dense<0.000000e+00> : vector<4x8xf32>
    %275 = vector.multi_reduction <add>, %274, %cst_72 [2] : vector<4x8x8xf32> to vector<4x8xf32>
    %276 = vector.shape_cast %275 : vector<4x8xf32> to vector<4x8x1xf32>
    %277 = vector.broadcast %276 : vector<4x8x1xf32> to vector<4x8x8xf32>
    %278 = arith.divf %274, %277 : vector<4x8x8xf32>
    %279 = arith.truncf %278 : vector<4x8x8xf32> to vector<4x8x8xbf16>
    %280 = vector.extract_strided_slice %217 {offsets = [0, 0, 24], sizes = [4, 8, 8], strides = [1, 1, 1]} : vector<4x8x32xbf16> to vector<4x8x8xbf16>
    "tpu.trace_start"() <{level = 10 : i32, message = "bqk,bkd->bqd"}> : () -> ()
    %cst_73 = arith.constant dense<0.000000e+00> : vector<4x8x8xf32>
    %281 = tpu.matmul %279, %280, %cst_73 {dimension_numbers = #tpu.dot_dimension_numbers<[2], [1], [1], [2], [0, 0, 0, 1, 1, 2], [0], [0]>} : vector<4x8x8xbf16>, vector<4x8x8xbf16>, vector<4x8x8xf32> -> vector<4x8x8xf32>
    "tpu.trace_stop"() : () -> ()
    %282 = tpu.concatenate %233, %249, %265, %281 in 2 : vector<4x8x8xf32>, vector<4x8x8xf32>, vector<4x8x8xf32>, vector<4x8x8xf32> -> vector<4x8x32xf32>
    %283 = vector.shape_cast %282 : vector<4x8x32xf32> to vector<32x32xf32>
    %284 = arith.truncf %283 : vector<32x32xf32> to vector<32x32xbf16>
    %cst_74 = arith.constant dense<0.000000e+00> : vector<32x32xf32>
    %285 = tpu.matmul %284, %210, %cst_74 {dimension_numbers = #tpu.dot_dimension_numbers<[1], [0], [0], [1], [0, 0, 1, 1], [], []>} : vector<32x32xbf16>, vector<32x32xbf16>, vector<32x32xf32> -> vector<32x32xf32>
    %286 = arith.addf %144, %285 : vector<32x32xf32>
    %287 = vector.broadcast %211 : vector<1x32xf32> to vector<32x32xf32>
    %288 = arith.addf %286, %287 : vector<32x32xf32>
    %289 = vector.extract_strided_slice %4 {offsets = [40, 0], sizes = [1, 32], strides = [1, 1]} : vector<48x32xf32> to vector<1x32xf32>
    %290 = vector.extract_strided_slice %4 {offsets = [41, 0], sizes = [1, 32], strides = [1, 1]} : vector<48x32xf32> to vector<1x32xf32>
    %cst_75 = arith.constant dense<0.000000e+00> : vector<32xf32>
    %291 = vector.multi_reduction <add>, %288, %cst_75 [1] : vector<32x32xf32> to vector<32xf32>
    %292 = vector.shape_cast %291 : vector<32xf32> to vector<32x1xf32>
    %cst_76 = arith.constant 3.200000e+01 : f32
    %293 = vector.broadcast %cst_76 : f32 to vector<32x1xf32>
    %294 = arith.divf %292, %293 : vector<32x1xf32>
    %295 = arith.mulf %288, %288 : vector<32x32xf32>
    %cst_77 = arith.constant dense<0.000000e+00> : vector<32xf32>
    %296 = vector.multi_reduction <add>, %295, %cst_77 [1] : vector<32x32xf32> to vector<32xf32>
    %297 = vector.shape_cast %296 : vector<32xf32> to vector<32x1xf32>
    %cst_78 = arith.constant 3.200000e+01 : f32
    %298 = vector.broadcast %cst_78 : f32 to vector<32x1xf32>
    %299 = arith.divf %297, %298 : vector<32x1xf32>
    %300 = arith.mulf %294, %294 : vector<32x1xf32>
    %301 = arith.subf %299, %300 : vector<32x1xf32>
    %302 = vector.broadcast %294 : vector<32x1xf32> to vector<32x32xf32>
    %303 = arith.subf %288, %302 : vector<32x32xf32>
    %cst_79 = arith.constant 9.99999974E-6 : f32
    %304 = vector.broadcast %cst_79 : f32 to vector<32x1xf32>
    %305 = arith.addf %301, %304 : vector<32x1xf32>
    %306 = math.rsqrt %305 : vector<32x1xf32>
    %307 = vector.broadcast %306 : vector<32x1xf32> to vector<32x32xf32>
    %308 = arith.mulf %303, %307 : vector<32x32xf32>
    %309 = vector.broadcast %289 : vector<1x32xf32> to vector<32x32xf32>
    %310 = arith.mulf %308, %309 : vector<32x32xf32>
    %311 = vector.broadcast %290 : vector<1x32xf32> to vector<32x32xf32>
    %312 = arith.addf %310, %311 : vector<32x32xf32>
    %313 = arith.truncf %312 : vector<32x32xf32> to vector<32x32xbf16>
    %314 = vector.extract_strided_slice %6 {offsets = [32, 0], sizes = [32, 64], strides = [1, 1]} : vector<64x64xbf16> to vector<32x64xbf16>
    %cst_80 = arith.constant dense<0.000000e+00> : vector<32x64xf32>
    %315 = tpu.matmul %313, %314, %cst_80 {dimension_numbers = #tpu.dot_dimension_numbers<[1], [0], [0], [1], [0, 0, 1, 1], [], []>} : vector<32x32xbf16>, vector<32x64xbf16>, vector<32x64xf32> -> vector<32x64xf32>
    %316 = vector.broadcast %8 : vector<1x64xf32> to vector<32x64xf32>
    %317 = arith.addf %315, %316 : vector<32x64xf32>
    %cst_81 = arith.constant 0.000000e+00 : f32
    %318 = vector.broadcast %cst_81 : f32 to vector<32x64xf32>
    %319 = arith.maximumf %317, %318 : vector<32x64xf32>
    %320 = arith.truncf %319 : vector<32x64xf32> to vector<32x64xbf16>
    %321 = vector.extract_strided_slice %7 {offsets = [96, 0], sizes = [64, 32], strides = [1, 1]} : vector<160x32xbf16> to vector<64x32xbf16>
    %cst_82 = arith.constant dense<0.000000e+00> : vector<32x32xf32>
    %322 = tpu.matmul %320, %321, %cst_82 {dimension_numbers = #tpu.dot_dimension_numbers<[1], [0], [0], [1], [0, 0, 1, 1], [], []>} : vector<32x64xbf16>, vector<64x32xbf16>, vector<32x32xf32> -> vector<32x32xf32>
    %323 = arith.addf %288, %322 : vector<32x32xf32>
    %324 = vector.extract_strided_slice %4 {offsets = [32, 0], sizes = [1, 32], strides = [1, 1]} : vector<48x32xf32> to vector<1x32xf32>
    %325 = vector.broadcast %324 : vector<1x32xf32> to vector<32x32xf32>
    %326 = arith.addf %323, %325 : vector<32x32xf32>
    %327 = vector.shape_cast %326 : vector<32x32xf32> to vector<4x8x32xf32>
    %c0_83 = arith.constant 0 : index
    %c0_84 = arith.constant 0 : index
    %c0_85 = arith.constant 0 : index
    %328 = vector.load %arg10[%c0_83, %c0_84, %c0_85] : memref<4x8x32xf32, #tpu.memory_space<vmem>>, vector<4x8x32xf32>
    tpu.vector_store %arg10[%c0_83, %c0_84, %c0_85], %327 {strides = array<i32>} : memref<4x8x32xf32, #tpu.memory_space<vmem>>, vector<4x8x32xf32>,
    return
  }
  func.func @transform_0(%arg0: i32) -> (i32, i32, i32) {
    %c0_i32 = arith.constant 0 : i32
    %c0_i32_0 = arith.constant 0 : i32
    %c0_i32_1 = arith.constant 0 : i32
    return %arg0, %c0_i32, %c0_i32_0 : i32, i32, i32
  }
  func.func @transform_1(%arg0: i32) -> (i32, i32, i32) {
    %c0_i32 = arith.constant 0 : i32
    %c0_i32_0 = arith.constant 0 : i32
    %c0_i32_1 = arith.constant 0 : i32
    return %arg0, %c0_i32, %c0_i32_0 : i32, i32, i32
  }
  func.func @transform_2(%arg0: i32) -> (i32, i32, i32) {
    %c0_i32 = arith.constant 0 : i32
    %c0_i32_0 = arith.constant 0 : i32
    %c0_i32_1 = arith.constant 0 : i32
    return %arg0, %c0_i32, %c0_i32_0 : i32, i32, i32
  }
  func.func @transform_3(%arg0: i32) -> (i32, i32, i32) {
    %c0_i32 = arith.constant 0 : i32
    %c0_i32_0 = arith.constant 0 : i32
    %c0_i32_1 = arith.constant 0 : i32
    return %arg0, %c0_i32, %c0_i32_0 : i32, i32, i32
  }
  func.func @transform_4(%arg0: i32) -> (i32, i32) {
    %c0_i32 = arith.constant 0 : i32
    %c0_i32_0 = arith.constant 0 : i32
    %c0_i32_1 = arith.constant 0 : i32
    return %c0_i32, %c0_i32_0 : i32, i32
  }
  func.func @transform_5(%arg0: i32) -> (i32, i32) {
    %c0_i32 = arith.constant 0 : i32
    %c0_i32_0 = arith.constant 0 : i32
    %c0_i32_1 = arith.constant 0 : i32
    return %c0_i32, %c0_i32_0 : i32, i32
  }
  func.func @transform_6(%arg0: i32) -> (i32, i32) {
    %c0_i32 = arith.constant 0 : i32
    %c0_i32_0 = arith.constant 0 : i32
    %c0_i32_1 = arith.constant 0 : i32
    return %c0_i32, %c0_i32_0 : i32, i32
  }
  func.func @transform_7(%arg0: i32) -> (i32, i32) {
    %c0_i32 = arith.constant 0 : i32
    %c0_i32_0 = arith.constant 0 : i32
    %c0_i32_1 = arith.constant 0 : i32
    return %c0_i32, %c0_i32_0 : i32, i32
  }
  func.func @transform_8(%arg0: i32) -> (i32, i32) {
    %c0_i32 = arith.constant 0 : i32
    %c0_i32_0 = arith.constant 0 : i32
    %c0_i32_1 = arith.constant 0 : i32
    return %c0_i32, %c0_i32_0 : i32, i32
  }
  func.func @transform_9(%arg0: i32) -> (i32, i32, i32) {
    %c0_i32 = arith.constant 0 : i32
    %c0_i32_0 = arith.constant 0 : i32
    %c0_i32_1 = arith.constant 0 : i32
    return %arg0, %c0_i32, %c0_i32_0 : i32, i32, i32
  }
}

</mosaic_0001>

<bundles_post_ra>
// kernel: tpu_custom_call.1
= control target key start
LH: loop header
LB: loop body
LE: loop exit
PB: predicated region body
PF: predicated region fallthrough
CT: control target
= control target key end

     0   :  { %s7957_s0 = inlined_call_operand.vmem [shape: f32[8,8,32], index: 0, kind: input, shape index: {}]   ;;  %s7958_s1 = inlined_call_operand.vmem [shape: f32[8,8,32], index: 1, kind: input, shape index: {}]   ;;  %s7959_s2 = inlined_call_operand.hbm [shape: f32[8,1,8], index: 2, kind: input, shape index: {}]   ;;  %s7960_s3 = inlined_call_operand.hbm [shape: f32[8,1,8], index: 3, kind: input, shape index: {}]   ;;  %s7961_s4 = inlined_call_operand.hbm [shape: bf16[32,96], index: 4, kind: input, shape index: {}]   ;;  %s7962_s5 = inlined_call_operand.vmem [shape: bf16[64,64], index: 5, kind: input, shape index: {}]   ;;  %s7963_s6 = inlined_call_operand.vmem [shape: bf16[160,32], index: 6, kind: input, shape index: {}]   ;;  %s7964_s7 = inlined_call_operand.vmem [shape: f32[48,32], index: 7, kind: input, shape index: {}]   ;;  %s7965_s8 = inlined_call_operand.vmem [shape: f32[1,64], index: 8, kind: input, shape index: {}]   ;;  %s7966_s9 = inlined_call_operand.hbm [shape: f32[8,8,32], index: 9, kind: output, shape index: {}]  }
   0x1   :  { %7981 = sst [smem:[#allocation17_spill]] %s7959_s2 }
   0x2   :  { %7982 = sst [smem:[#allocation18_spill]] %s7961_s4 }
   0x3   :  { %14 = vsyncpa [#allocation3], 0 }
   0x4   :  { %16 = vsyncpa [#allocation3 + $0x1], 0 }
   0x5   :  { %17 = vsyncpa [#allocation6], 0 }
   0x6   :  { %19 = vsyncpa [#allocation6 + $0x1], 0 }
   0x7   :  { %20 = vsyncpa [#allocation4], 0 }
   0x8   :  { %22 = vsyncpa [#allocation4 + $0x1], 0  ;;  %s6570_s30 = smov 0   ;;  %s6572_s10 = smov 0  }
   0x9   :  { %s6574_s11 = smov 0   ;;  %s6576_s12 = smov 0  }
   0xa LB: > { %7983 = sst [smem:[#allocation13_spill]] %s6488_s11  ;;  %s6591_s13 = sadd.s32 4294967295, %s6492_s12   ;;  %s6492_s12 = sphi %s6576_s12, %s8007_s12   ;;  %s6488_s11 = sphi %s6574_s11, %s8009_s11   ;;  %s6484_s10 = sphi %s6572_s10, %s8011_s10   ;;  %s6480_s30 = sphi %s6570_s30, %s8010_s30  }
   0xb   : > { %s5287_s14 = sadd.s32 4294967294, %s6492_s12   ;;  %p100_p0 = scmp.ne.s32.totalorder %s6484_s10, %s6480_s30 }
   0xc   : > { %p7970_p1 = scmp.eq.s32.totalorder %s6591_s13, 0  ;;  %p261_p3 = scmp.eq.s32.totalorder %s5287_s14, 1 }
   0xd   : > { %p5288_p5 = scmp.ge.s32.totalorder %s6492_s12, 1  ;;  %p268_p7 = scmp.lt.s32.totalorder %s6492_s12, 3 }
   0xe   : > { %p6600_p4 = por %p7970_p1, %p100_p0  ;;  %p6605_p6 = por %p261_p3, %p100_p0 }
   0xf   : > { %p6610_p8 = pnand %p5288_p5, %p268_p7  ;;  %s6494_s18 = smov [#allocation7]  }
  0x10   : > { %s7984_s15 = scalar_select %p6600_p4, 1, 0 }
  0x11   : > { %s7985_s16 = scalar_select %p6605_p6, 1, 0 }
  0x12   : > { %s280_s19 = sshll.u32 %s6494_s18, 4  ;;  %p6022_p9 = pneg %p6610_p8  ;;  %s281_s19 = int_to_ptr.vmem [resolvable:$true] %s280_s19 }
  0x13   : > { %7986 = sst [smem:[#allocation14_spill]] %s7985_s16  ;;  %s6624_s21 = sadd.s32 1, %s6492_s12  }
  0x14   : > { %p6619_p11 = pnand %p6022_p9, %p7970_p1  ;;  %7989 = sst [smem:[#allocation15_spill]] %s6624_s21 }
  0x15   : > { %s87_s22 = sadd.s32 1, %s6488_s11  ;;  %s84_s23 = ssub.s32 %s6492_s12, %s6624_s21 }
  0x16   : > { %p6340_p12 = pneg %p6619_p11  ;;  %s6349_s24 = scalar_lea.vmem %s281_s19, 256 }
  0x17   : > { %p6350_p13 = scmp.ne.s32.totalorder %s281_s19, %s6349_s24  ;;  %p6357_p5 = scmp.lt.s32.totalorder %s281_s19, %s281_s19 }
  0x18   : > { %p6358_p7 = scmp.lt.s32.totalorder %s6349_s24, %s6349_s24 }
  0x19   : > { %p6352_p0 = pnand %p6350_p13, %p6340_p12 }
  0x1a   : > { %p6359_p10 = por %p6358_p7, %p6357_p5 }
  0x1b   : > { %p6353_p3 = pneg %p6352_p0 }
  0x1d   : > { %p6360_p2 = pnand %p6359_p10, %p6353_p3 }
  0x1f   : > { %6363 = shalt.err (!%p6360_p2)
}
  0x20   : > { %s6495_s25 = smov 64   ;;  %s6496_s26 = smov 4  }
  0x21   : > { %s7990_s4 = sld [smem:[#allocation18_spill]]  ;;  %p85_p9 = scmp.eq.s32.totalorder %s84_s23, 0 }
  0x22   : > { %p94_p10 = scmp.ne.s32.totalorder %s6488_s11, %s6484_s10  ;;  %p95_p2 = scmp.eq.s32.totalorder %s6492_s12, 0 }
  0x23   : > { %p6038_p12 = scmp.lt.s32.totalorder %s6492_s12, 2  ;;  %p7992_p0 = scmp.eq.s32.totalorder %s6591_s13, 1 }
  0x24   : > { %s6641_s29 = scalar_select %p85_p9, %s6488_s11, %s87_s22  }
  0x25   : > { %p96_p13 = por %p95_p2, %p94_p10  ;;  %p6645_p3 = por %p7992_p0, %p94_p10 }
  0x26   : > { %7991 = sst [smem:[#allocation16_spill]] %s6641_s29  ;;  %s324_s18 = sand.u32 1, %s6488_s11  }
  0x27   : > { %6025 = dma.hbm_to_vmem [thread:$0]  (!%p6619_p11), %s7990_s4, 256, %s281_s19, [#allocation6], %s6495_s25, %s6495_s25, %s6496_s26  }
  0x28   : > { %s7993_s14 = scalar_select %p6645_p3, 1, 0 }
  0x29   : > { %s7969_s24 = sshll.u32 %s6492_s12, 6  ;;  %s6651_s21 = sshll.u32 %s324_s18, 2 }
  0x2a   : > { %s7994_s2 = sld [smem:[#allocation17_spill]]  ;;  %s328_s22 = scalar_lea.vmem [#allocation2], %s6651_s21 }
  0x2b   : > { %s335_s23 = sshll.u32 %s328_s22, 4  ;;  %p6661_p11 = pnand %p6038_p12, %p96_p13  ;;  %s6665_s23 = int_to_ptr.vmem [resolvable:$true] %s335_s23 }
  0x2c   : > { %s6667_s26 = scalar_lea.sflag [#allocation3], %s324_s18 }
  0x2d   : > { %p6366_p7 = pneg %p6661_p11 }
  0x30   : > { %s6658_s19 = scalar_lea.hbm %s7994_s2, %s7969_s24  ;;  %s6369_s22 = scalar_lea.hbm %s7994_s2, 128 }
  0x31   : > { %s6364_s28 = scalar_lea.hbm %s6658_s19, 64  ;;  %p6370_p2 = scmp.lt.s32.totalorder %s6658_s19, %s7994_s2 }
  0x32   : > { %p6365_p5 = scmp.ne.s32.totalorder %s6658_s19, %s6364_s28  ;;  %p6371_p12 = scmp.lt.s32.totalorder %s6369_s22, %s6364_s28 }
  0x34   : > { %p6367_p9 = pnand %p6366_p7, %p6365_p5  ;;  %p6372_p13 = por %p6371_p12, %p6370_p2 }
  0x36   : > { %p6368_p10 = pneg %p6367_p9 }
  0x38   : > { %p6373_p0 = pnand %p6372_p13, %p6368_p10 }
  0x3a   : > { %6376 = shalt.err (!%p6373_p0)
}
  0x3b   : > { %s6377_s18 = scalar_lea.vmem %s6665_s23, 64  ;;  %s6497_s20 = smov [#allocation2]  }
  0x3c   : > { %p6378_p1 = scmp.ne.s32.totalorder %s6665_s23, %s6377_s18  ;;  %s6382_s27 = sshll.u32 %s6497_s20, 4  ;;  %s6383_s27 = int_to_ptr.vmem [resolvable:$false] %s6382_s27 }
  0x3d   : > { %s6384_s29 = scalar_lea.vmem %s6383_s27, 128  ;;  %p6385_p6 = scmp.lt.s32.totalorder %s6665_s23, %s6383_s27 }
  0x3e   : > { %p6380_p5 = pnand %p6378_p1, %p6366_p7  ;;  %p6386_p3 = scmp.lt.s32.totalorder %s6384_s29, %s6377_s18 }
  0x40   : > { %p6381_p9 = pneg %p6380_p5  ;;  %p6387_p4 = por %p6386_p3, %p6385_p6 }
  0x42   : > { %p6388_p2 = pnand %p6387_p4, %p6381_p9 }
  0x44   : > { %6391 = shalt.err (!%p6388_p2)
}
  0x45   : > { %s6498_s4 = smov 16   ;;  %s6499_s24 = smov 1  }
  0x46   : > { %6029 = dma.hbm_to_vmem [thread:$0]  (!%p6661_p11), %s6658_s19, 64, %s6665_s23, %s6667_s26, %s6498_s4, %s6498_s4, %s6499_s24  }
  0x47   : > { %s7996_s28 = sshll.u32 %s6492_s12, 6  ;;  %s349_s20 = scalar_lea.vmem [#allocation5], %s6651_s21 }
  0x48   : > { %s6702_s18 = scalar_lea.hbm %s7960_s3, %s7996_s28  ;;  %s356_s27 = sshll.u32 %s349_s20, 4  ;;  %s6706_s27 = int_to_ptr.vmem [resolvable:$true] %s356_s27 }
  0x49   : > { %s345_s2 = sand.u32 1, %s6492_s12   ;;  %s6392_s16 = scalar_lea.hbm %s6702_s18, 64 }
  0x4a   : > { %s346_s11 = scalar_lea.sflag [#allocation6], %s345_s2  ;;  %p6393_p1 = scmp.ne.s32.totalorder %s6702_s18, %s6392_s16 }
  0x4b   : > { %s6397_s26 = scalar_lea.hbm %s7960_s3, 128  ;;  %p6398_p3 = scmp.lt.s32.totalorder %s6702_s18, %s7960_s3 }
  0x4c   : > { %p6395_p4 = pnand %p6393_p1, %p6366_p7  ;;  %p6399_p10 = scmp.lt.s32.totalorder %s6397_s26, %s6392_s16 }
  0x4e   : > { %p6396_p6 = pneg %p6395_p4  ;;  %p6400_p12 = por %p6399_p10, %p6398_p3 }
  0x50   : > { %p6401_p13 = pnand %p6400_p12, %p6396_p6 }
  0x52   : > { %6404 = shalt.err (!%p6401_p13)
}
  0x53   : > { %s6405_s2 = scalar_lea.vmem %s6706_s27, 64  ;;  %s6500_s21 = smov [#allocation5]  }
  0x54   : > { %p6406_p0 = scmp.ne.s32.totalorder %s6706_s27, %s6405_s2  ;;  %s6410_s22 = sshll.u32 %s6500_s21, 4  ;;  %s6411_s22 = int_to_ptr.vmem [resolvable:$false] %s6410_s22 }
  0x55   : > { %s6412_s20 = scalar_lea.vmem %s6411_s22, 128  ;;  %p6413_p2 = scmp.lt.s32.totalorder %s6706_s27, %s6411_s22 }
  0x56   : > { %p6408_p5 = pnand %p6406_p0, %p6366_p7  ;;  %p6414_p1 = scmp.lt.s32.totalorder %s6412_s20, %s6405_s2 }
  0x58   : > { %p6409_p9 = pneg %p6408_p5  ;;  %p6415_p4 = por %p6414_p1, %p6413_p2 }
  0x5a   : > { %p6416_p3 = pnand %p6415_p4, %p6409_p9 }
  0x5c   : > { %6419 = shalt.err (!%p6416_p3)
}
  0x5d   : > { %6032 = dma.hbm_to_vmem [thread:$0]  (!%p6661_p11), %s6702_s18, 64, %s6706_s27, %s346_s11, %s6498_s4, %s6498_s4, %s6499_s24  }
  0x5e   : > { %368 = sbr.rel (%p6610_p8) target bundleno = 7101 (0x1bbd), region = 56  ;;  %s6736_s16 = sand.u32 (!%p6610_p8), 1, %s6484_s10  }
  0x5f   : > { %s5298_s19 = sshll.u32 (!%p6610_p8), %s6736_s16, 2  ;;  %s371_s23 = scalar_lea.sflag (!%p6610_p8), [#allocation3], %s6736_s16 }
  0x60   : > { %s6740_s26 = scalar_lea.vmem (!%p6610_p8), [#allocation2], %s5298_s19  ;;  %p7997_p7 = scmp.ne.s32.totalorder (!%p6610_p8), %s7984_s15, 0 }
  0x63   : > { %6463 = dma.done.wait (%p7997_p7), %s371_s23, 64  }
  0x64   : > { %6465 = vsyncadd (%p7997_p7), %s371_s23, 4294967232  ;;  %s379_s11 = sand.u32 1, %s6591_s13   ;;  %s6747_s25 = scalar_lea.vmem [#allocation5], %s5298_s19 }
  0x65   : > { %s380_s17 = scalar_lea.sflag [#allocation6], %s379_s11 }
  0x66   : > { %6467 = dma.done.wait (%p7997_p7), %s380_s17, 64  }
  0x67   : > { %6469 = vsyncadd (%p7997_p7), %s380_s17, 4294967232  ;;  %p7998_p8 = scmp.eq.s32.totalorder %s6591_s13, 0 }
  0x69   : > { %6471 = dma.done.wait (%p7998_p8), [#allocation6], 256   ;;  %p7999_p11 = pmov %p7998_p8 }
  0x6a   : > { %s5302_s4 = sshll.u32 %s6591_s13, 2  ;;  %vm576_vm0 = vcmask 261120   ;;  %v6156_v16 = vld [vmem:[#allocation7 + $0x8] sm:$0xff]   ;;  %v6157_v17 = vld [vmem:[#allocation7] sm:$0xff]   ;;  %v500_v18 = vlaneseq  ;;  %v6809_v21 = vld [vmem:[%s7964_s7] sm:$0xff]  ;;  %s6501_s2 = smov 32  }
  0x6b   : > { %6473 = vsyncadd (%p7999_p11), [#allocation6], 4294967040  ;;  %p438_p6 = scmp.lt.s32.totalorder %s5302_s4, 7  ;;  %5568 = vmatprep.subr.bf16.mxu1 %v6156_v16  ;;  %v462_v52 = vld [vmem:[%s7964_s7 + $0x8] sm:$0xff]  ;;  %vm6503_vm1 = vmmov 0   ;;  %s6504_s20 = smov 96  }
  0x6c   : > { %5569 = vmatpush3.bf16.msra.mxu1 %v6156_v16  ;;  %v6801_v19 = vshrl.u32 %v500_v18, 7  ;;  %vm770_vm2 = vcmask 64512   ;;  %s6505_s19 = smov 64   ;;  %s6506_s23 = smov 88   ;;  %vm1018_vm4 = vcmask 1043456   ;;  %vm2585_vm5 = vcmask 130048  }
  0x6d   : > { %s8013_s4 = smov (!%p438_p6, %s5302_s4), 7  ;;  %5570 = vmatprep.subr.bf16.mxu1 %v6157_v17  ;;  %s6507_s11 = smov 120   ;;  %vm2590_vm6 = vcmask 195584   ;;  %vm5072_vm7 = vcmask 523264  }
  0x6e   : > { %s5303_s24 = sshll.u32 %s8013_s4, 3  ;;  %v6804_v20 = vsub.s32 1, %v6801_v19  ;;  %v6815_v51 = vsub.s32 0, %v6801_v19  ;;  %s6508_s17 = smov 56  }
  0x6f   : > { %s6766_s15 = scalar_lea.vmem %s7958_s1, %s5303_s24  ;;  %s6510_s18 = smov 112  }
  0x70   : > { %v6769_v0 = vld [vmem:[%s6766_s15 + $0x10] sm:$0xff]  ;;  %v6772_v1 = vld [vmem:[%s6766_s15] sm:$0xff]  ;;  %v6775_v2 = vld [vmem:[%s6766_s15 + $0x18] sm:$0xff]  ;;  %5571 = vmatpush3.bf16.msra.mxu1 %v6157_v17  ;;  %v734_v22 = vrot.slane %v6809_v21, %v6804_v20  ;;  %v641_v54 = vrot.slane %v462_v52, %v6815_v51  ;;  %v649_v59 = vrot.slane %v462_v52, %v6804_v20  ;;  %s6511_s27 = smov 48   ;;  %s7979_s28 = smov 72  }
  0x71   : > { %v583_v3 = vsel %vm576_vm0, %v6769_v0, 0.0  ;;  %v577_v4 = vsel %vm576_vm0, %v6772_v1, 0.0  ;;  %v6782_v5 = vld [vmem:[%s6766_s15 + $0x8] sm:$0xff]  ;;  %v594_v6 = vmul.f32 %v6772_v1, %v6772_v1  ;;  %v597_v8 = vmul.f32 %v6775_v2, %v6775_v2  ;;  %s6513_s29 = smov 104   ;;  %s6514_s21 = smov 40  }
  0x72   : > { %584 = vadd.xlane.f32.xlu1 %v583_v3  ;;  %578 = vadd.xlane.f32.xlu0 %v577_v4  ;;  %v595_v7 = vmul.f32 %v6782_v5, %v6782_v5  ;;  %v596_v9 = vmul.f32 %v6769_v0, %v6769_v0  ;;  %v586_v10 = vsel %vm576_vm0, %v6775_v2, 0.0  ;;  %v580_v11 = vsel %vm576_vm0, %v6782_v5, 0.0  ;;  %s7977_s22 = smov 8   ;;  %p8003_p12 = scmp.ne.s32.totalorder %s7993_s14, 0 }
  0x73   : > { %v598_v13 = vsel %vm576_vm0, %v594_v6, 0.0  ;;  %v607_v14 = vsel %vm576_vm0, %v597_v8, 0.0 }
  0x74   : > { %v601_v12 = vsel %vm576_vm0, %v595_v7, 0.0  ;;  %v604_v15 = vsel %vm576_vm0, %v596_v9, 0.0 }
  0x76   : > { %587 = vadd.xlane.f32.xlu1 %v586_v10  ;;  %581 = vadd.xlane.f32.xlu0 %v580_v11 }
  0x7a   : > { %602 = vadd.xlane.f32.xlu1 %v601_v12  ;;  %599 = vadd.xlane.f32.xlu0 %v598_v13 }
  0x7e   : > { %608 = vadd.xlane.f32.xlu1 %v607_v14  ;;  %605 = vadd.xlane.f32.xlu0 %v604_v15 }
  0x94   : > { %736 = vrot.lane.b32.xlu0 %v734_v22, %s6501_s2 }
  0xfb   : > { %v585_v23 = vpop.xlane.xlu1 %584  ;;  %v579_v24 = vpop.xlane.xlu0 %578 }
  0xfc   : > { %v590_v27 = vmul.f32 0.03125, %v579_v24  ;;  %v592_v29 = vmul.f32 0.03125, %v585_v23 }
  0xfe   : > { %v614_v33 = vmul.f32 %v590_v27, %v590_v27  ;;  %v616_v39 = vmul.f32 %v592_v29, %v592_v29  ;;  %v622_v56 = vsub.f32 %v6772_v1, %v590_v27  ;;  %v624_v3 = vsub.f32 %v6769_v0, %v592_v29 }
  0xff   : > { %v588_v25 = vpop.xlane.xlu1 %587  ;;  %v582_v26 = vpop.xlane.xlu0 %581 }
 0x100   : > { %v591_v28 = vmul.f32 0.03125, %v582_v26  ;;  %v593_v30 = vmul.f32 0.03125, %v588_v25 }
 0x102   : > { %v615_v34 = vmul.f32 %v591_v28, %v591_v28  ;;  %v617_v40 = vmul.f32 %v593_v30, %v593_v30  ;;  %v623_v53 = vsub.f32 %v6782_v5, %v591_v28  ;;  %v625_v61 = vsub.f32 %v6775_v2, %v593_v30 }
 0x103   : > { %v603_v31 = vpop.xlane.xlu1 %602  ;;  %v600_v32 = vpop.xlane.xlu0 %599  ;;  %v6502_v2 = vmov 0.0  }
 0x104   : > { %v611_v35 = vmul.f32 0.03125, %v603_v31  ;;  %v610_v36 = vmul.f32 0.03125, %v600_v32  ;;  %5576 = vmatprep.subr.bf16.mxu1 %v6502_v2  ;;  %5582 = vmatprep.subr.bf16.mxu0 %v6502_v2  ;;  %v726_v32 = vrot.slane %v6809_v21, %v6815_v51 }
 0x105   : > { %5584 = vmatprep.mubr.msk.bf16.mxu0 %vm6503_vm1, %v6502_v2 }
 0x106   : > { %v619_v37 = vsub.f32 %v611_v35, %v615_v34  ;;  %v618_v38 = vsub.f32 %v610_v36, %v614_v33 }
 0x107   : > { %v609_v41 = vpop.xlane.xlu1 %608  ;;  %v606_v42 = vpop.xlane.xlu0 %605 }
 0x108   : > { %v627_v43 = vadd.f32 1e-05, %v619_v37  ;;  %v626_v44 = vadd.f32 1e-05, %v618_v38  ;;  %v613_v45 = vmul.f32 0.03125, %v609_v41  ;;  %v612_v46 = vmul.f32 0.03125, %v606_v42 }
 0x10a   : > { %6172 = vrsqrt.f32 %v627_v43  ;;  %v621_v47 = vsub.f32 %v613_v45, %v617_v40  ;;  %v620_v48 = vsub.f32 %v612_v46, %v616_v39 }
 0x10b   : > { %6174 = vrsqrt.f32 %v626_v44  ;;  %v737_v15 = vpop.permute.xlu0 %736 }
 0x10c   : > { %v629_v49 = vadd.f32 1e-05, %v621_v47  ;;  %v628_v50 = vadd.f32 1e-05, %v620_v48  ;;  %v503_v48 = vand.u32 127, %v500_v18 }
 0x10e   : > { %6176 = vrsqrt.f32 %v629_v49  ;;  %v508_v49 = vld [vmem:[%s6747_s25] sm:$0x1]  ;;  %vm504_vm3 = vcmp.gt.s32.totalorder %v503_v48, %v6801_v19 }
 0x10f   : > { %6178 = vrsqrt.f32 %v628_v50  ;;  %v512_v50 = vmul.f32 -1e+30, %v508_v49  ;;  %v5306_v52 = vsel %vm504_vm3, 1.0, %v6502_v2 }
 0x117   : > { %v6173_v55 = vpop.eup %6172 }
 0x118   : > { %v6175_v57 = vpop.eup %6174  ;;  %v635_v58 = vmul.f32 %v6173_v55, %v623_v53  ;;  %v509_v53 = vld [vmem:[%s6747_s25 + $0x1] sm:$0x1]  ;;  %v523_v55 = vrot.slane %v512_v50, %v6815_v51 }
 0x119   : > { %v634_v60 = vmul.f32 %v6175_v57, %v622_v56  ;;  %v513_v56 = vmul.f32 -1e+30, %v509_v53  ;;  %v510_v57 = vld [vmem:[%s6747_s25 + $0x2] sm:$0x1] }
 0x11a   : > { %v643_v62 = vmul.f32 %v641_v54, %v635_v58 }
 0x11b   : > { %v6177_v63 = vpop.eup %6176  ;;  %v642_v4 = vmul.f32 %v641_v54, %v634_v60  ;;  %v514_v60 = vmul.f32 -1e+30, %v510_v57 }
 0x11c   : > { %v6179_v6 = vpop.eup %6178  ;;  %v651_v7 = vadd.f32 %v649_v59, %v643_v62  ;;  %v637_v5 = vmul.f32 %v6177_v63, %v625_v61  ;;  %v511_v61 = vld [vmem:[%s6747_s25 + $0x3] sm:$0x1]  ;;  %s6509_s25 = smov 80  }
 0x11d   : > { %v650_v8 = vadd.f32 %v649_v59, %v642_v4  ;;  %v636_v9 = vmul.f32 %v6179_v6, %v624_v3  ;;  %v531_v3 = vrot.slane %v514_v60, %v6815_v51  ;;  %v515_v4 = vmul.f32 -1e+30, %v511_v61 }
 0x11e   : > { %v645_v10 = vmul.f32 %v641_v54, %v637_v5 }
 0x11f   : > { %v654_v11 = vpack.c.bf16 %v651_v7, %v650_v8  ;;  %v644_v1 = vmul.f32 %v641_v54, %v636_v9  ;;  %v507_v54 = vmul.f32 -1e+30, %v5306_v52 }
 0x120   : > { %v653_v12 = vadd.f32 %v649_v59, %v645_v10 }
 0x121   : > { %5572 = vmatprep.mubr.msk.bf16.mxu1 %vm576_vm0, %v654_v11  ;;  %v652_v13 = vadd.f32 %v649_v59, %v644_v1  ;;  %v6907_v58 = vadd.f32 %v523_v55, %v507_v54  ;;  %v527_v59 = vrot.slane %v513_v56, %v6815_v51  ;;  %v6917_v10 = vadd.f32 %v531_v3, %v507_v54 }
 0x122   : > { %v535_v11 = vrot.slane %v515_v4, %v6815_v51 }
 0x123   : > { %v655_v14 = vpack.c.bf16 %v653_v12, %v652_v13  ;;  %v6912_v63 = vadd.f32 %v527_v59, %v507_v54 }
 0x125   : > { %5573 = vmatmul.mubr.msk.bf16.vlgmr.msra.gmra.mxu1 %vm576_vm0, %v655_v14 }
 0x126   : > { %5578 = vmatprep.mubr.msk.bf16.mxu1 %vm6503_vm1, %v6502_v2 }
 0x1e5   : > { %v6830_v0 = vpop.f32.mrf.mxu1 }
 0x1e6   : > { %v741_v29 = vadd.f32 %v6830_v0, %v737_v15  ;;  %v729_v42 = vadd.f32 %v6830_v0, %v726_v32 }
 0x1e7   : > { %v6836_v16 = vpop.f32.mrf.mxu1 }
 0x1e8   : > { %v739_v17 = vadd.f32 %v737_v15, %v6836_v16  ;;  %v6858_v30 = vpack.c.bf16 %v741_v29, %v741_v29  ;;  %v727_v34 = vadd.f32 %v726_v32, %v6836_v16  ;;  %v6886_v45 = vpack.c.bf16 %v729_v42, %v729_v42 }
 0x1e9   : > { %v6839_v22 = vpop.f32.mrf.mxu1 }
 0x1ea   : > { %v6841_v23 = vpack.c.bf16 %v739_v17, %v739_v17  ;;  %v742_v24 = vadd.f32 %v6839_v22, %v737_v15  ;;  %v6868_v37 = vpack.c.bf16 %v727_v34, %v727_v34  ;;  %v730_v46 = vadd.f32 %v6839_v22, %v726_v32 }
 0x1eb   : > { %v6844_v25 = vpop.f32.mrf.mxu1 }
 0x1ec   : > { %v6846_v26 = vpack.c.bf16 %v742_v24, %v742_v24  ;;  %v740_v27 = vadd.f32 %v737_v15, %v6844_v25  ;;  %768 = vrot.lane.b32.xlu1 %v6841_v23, %s6504_s20  ;;  %v728_v38 = vadd.f32 %v726_v32, %v6844_v25  ;;  %v6894_v47 = vpack.c.bf16 %v730_v46, %v730_v46 }
 0x1ed   : > { %v6922_v24 = vadd.f32 %v535_v11, %v507_v54 }
 0x1ee   : > { %v6851_v28 = vpack.c.bf16 %v740_v27, %v740_v27  ;;  %916 = vrot.lane.b32.xlu0 %v6846_v26, %s6504_s20  ;;  %v6878_v43 = vpack.c.bf16 %v728_v38, %v728_v38 }
 0x1f0   : > { %818 = vrot.lane.b32.xlu1 %v6851_v28, %s6504_s20 }
 0x1f4   : > { %867 = vrot.lane.b32.xlu1 %v6858_v30, %s6504_s20 }
 0x25e   : > { %v769_v31 = vpop.permute.xlu1 %768 }
 0x25f   : > { %v775_v33 = vsel %vm770_vm2, %v769_v31, 0 }
 0x260   : > { %5577 = vmatpush3.bf16.xpose.msra.mxu1 %v775_v33  ;;  %v917_v41 = vpop.permute.xlu0 %916 }
 0x261   : > { %5588 = vmatprep.subr.bf16.mxu1 %v6502_v2  ;;  %v922_v44 = vsel %vm770_vm2, %v917_v41, 0 }
 0x262   : > { %v819_v35 = vpop.permute.xlu1 %818 }
 0x263   : > { %v824_v36 = vsel %vm770_vm2, %v819_v35, 0  ;;  %v745_v35 = vsub.s32 2, %v6801_v19 }
 0x264   : > { %5583 = vmatpush3.bf16.xpose.msra.mxu0 %v824_v36 }
 0x265   : > { %5594 = vmatprep.subr.bf16.mxu0 %v6502_v2  ;;  %v746_v41 = vrot.slane %v6809_v21, %v745_v35 }
 0x266   : > { %v868_v39 = vpop.permute.xlu1 %867 }
 0x267   : > { %v873_v40 = vsel %vm770_vm2, %v868_v39, 0  ;;  %5579 = vmatmul.mubr.msk.bf16.vlgmr.msra.gmra.mxu1 %vm770_vm2, %v6868_v37 }
 0x268   : > { %5589 = vmatpush3.bf16.xpose.msra.mxu1 %v873_v40  ;;  %5590 = vmatprep.mubr.msk.bf16.mxu1 %vm6503_vm1, %v6502_v2 }
 0x269   : > { %5600 = vmatprep.subr.bf16.mxu1 %v6502_v2 }
 0x26b   : > { %5585 = vmatmul.mubr.msk.bf16.vlgmr.msra.gmra.mxu0 %vm770_vm2, %v6878_v43 }
 0x26c   : > { %5595 = vmatpush3.bf16.xpose.msra.mxu0 %v922_v44  ;;  %5596 = vmatprep.mubr.msk.bf16.mxu0 %vm6503_vm1, %v6502_v2 }
 0x26d   : > { %5606 = vmatprep.subr.bf16.mxu0 %v6502_v2 }
 0x26f   : > { %5591 = vmatmul.mubr.msk.bf16.vlgmr.msra.gmra.mxu1 %vm770_vm2, %v6886_v45 }
 0x270   : > { %5602 = vmatprep.mubr.msk.bf16.mxu1 %vm6503_vm1, %v6502_v2 }
 0x273   : > { %5597 = vmatmul.mubr.msk.bf16.vlgmr.msra.gmra.mxu0 %vm770_vm2, %v6894_v47 }
 0x274   : > { %5608 = vmatprep.mubr.msk.bf16.mxu0 %vm6503_vm1, %v6502_v2 }
 0x327   : > { %v811_v62 = vpop.f32.mrf.mxu1 }
 0x328   : > { %v812_v18 = vadd.f32 %v811_v62, %v6907_v58 }
 0x329   : > { %v5580_v6 = vpop.f32.mrf.mxu1 }
 0x32a   : > { %v964_v7 = vsel %vm770_vm2, %v812_v18, -inf }
 0x32b   : > { %965 = vmax.xlane.f32.xlu1 %v964_v7  ;;  %v814_v5 = vpop.f32.mrf.mxu1  ;;  %v860_v8 = vpop.f32.mrf.mxu0 }
 0x32c   : > { %v861_v9 = vadd.f32 %v860_v8, %v6912_v63 }
 0x32d   : > { %v5581_v1 = vpop.f32.mrf.mxu1  ;;  %v5586_v12 = vpop.f32.mrf.mxu0 }
 0x32e   : > { %v967_v13 = vsel %vm770_vm2, %v861_v9, -inf }
 0x32f   : > { %968 = vmax.xlane.f32.xlu0 %v967_v13  ;;  %v863_v14 = vpop.f32.mrf.mxu0  ;;  %v909_v15 = vpop.f32.mrf.mxu1 }
 0x330   : > { %v910_v17 = vadd.f32 %v909_v15, %v6917_v10 }
 0x331   : > { %v5587_v27 = vpop.f32.mrf.mxu0  ;;  %v5592_v29 = vpop.f32.mrf.mxu1 }
 0x332   : > { %v970_v31 = vsel %vm770_vm2, %v910_v17, -inf }
 0x333   : > { %v958_v32 = vpop.f32.mrf.mxu0  ;;  %971 = vmax.xlane.f32.xlu0 %v970_v31  ;;  %v912_v33 = vpop.f32.mrf.mxu1 }
 0x334   : > { %v959_v34 = vadd.f32 %v958_v32, %v6922_v24 }
 0x335   : > { %v5593_v36 = vpop.f32.mrf.mxu1  ;;  %v5598_v38 = vpop.f32.mrf.mxu0 }
 0x336   : > { %v973_v39 = vsel %vm770_vm2, %v959_v34, -inf }
 0x337   : > { %v961_v40 = vpop.f32.mrf.mxu0  ;;  %974 = vmax.xlane.f32.xlu0 %v973_v39 }
 0x339   : > { %v5599_v42 = vpop.f32.mrf.mxu0 }
 0x33c   : > { %748 = vrot.lane.b32.xlu1 %v746_v41, %s6505_s19 }
 0x3b4   : > { %v966_v44 = vpop.xlane.xlu1 %965 }
 0x3b5   : > { %v976_v46 = vsub.f32 %v812_v18, %v966_v44 }
 0x3b7   : > { %v980_v48 = vmul.f32 1.442695, %v976_v46 }
 0x3b8   : > { %v969_v49 = vpop.xlane.xlu0 %968  ;;  %v749_v50 = vpop.permute.xlu1 %748 }
 0x3b9   : > { %6180 = vpow2.f32 %v980_v48  ;;  %v977_v52 = vsub.f32 %v861_v9, %v969_v49  ;;  %v751_v53 = vadd.f32 %v749_v50, %v6836_v16  ;;  %v753_v56 = vadd.f32 %v6830_v0, %v749_v50 }
 0x3ba   : > { %v754_v61 = vadd.f32 %v6839_v22, %v749_v50  ;;  %v752_v11 = vadd.f32 %v749_v50, %v6844_v25 }
 0x3bb   : > { %v982_v54 = vmul.f32 1.442695, %v977_v52  ;;  %v6933_v55 = vpack.c.bf16 %v751_v53, %v751_v53  ;;  %v6938_v60 = vpack.c.bf16 %v753_v56, %v753_v56 }
 0x3bc   : > { %v972_v57 = vpop.xlane.xlu0 %971  ;;  %v6943_v3 = vpack.c.bf16 %v754_v61, %v754_v61  ;;  %v6964_v1 = vpack.c.bf16 %v752_v11, %v752_v11 }
 0x3bd   : > { %6182 = vpow2.f32 %v982_v54  ;;  %v978_v21 = vsub.f32 %v910_v17, %v972_v57  ;;  %1013 = vrot.lane.b32.xlu1 %v6933_v55, %s6505_s19 }
 0x3bf   : > { %v984_v59 = vmul.f32 1.442695, %v978_v21 }
 0x3c0   : > { %v975_v62 = vpop.xlane.xlu0 %974 }
 0x3c1   : > { %6184 = vpow2.f32 %v984_v59  ;;  %v979_v18 = vsub.f32 %v959_v34, %v975_v62  ;;  %1112 = vrot.lane.b32.xlu1 %v6938_v60, %s6505_s19 }
 0x3c3   : > { %v986_v16 = vmul.f32 1.442695, %v979_v18 }
 0x3c5   : > { %6186 = vpow2.f32 %v986_v16  ;;  %1161 = vrot.lane.b32.xlu1 %v6943_v3, %s6505_s19 }
 0x3c6   : > { %v6181_v0 = vpop.eup %6180 }
 0x3c7   : > { %v988_v4 = vsel %vm770_vm2, %v6181_v0, 0.0 }
 0x3c8   : > { %989 = vadd.xlane.f32.xlu0 %v988_v4 }
 0x3c9   : > { %1212 = vrot.lane.b32.xlu1 %v6841_v23, %s6506_s23 }
 0x3ca   : > { %v6183_v22 = vpop.eup %6182 }
 0x3cb   : > { %v991_v6 = vsel %vm770_vm2, %v6183_v22, 0.0 }
 0x3cc   : > { %992 = vadd.xlane.f32.xlu0 %v991_v6 }
 0x3cd   : > { %1263 = vrot.lane.b32.xlu1 %v6851_v28, %s6506_s23 }
 0x3ce   : > { %v6185_v7 = vpop.eup %6184 }
 0x3cf   : > { %v994_v5 = vsel %vm770_vm2, %v6185_v7, 0.0 }
 0x3d0   : > { %995 = vadd.xlane.f32.xlu0 %v994_v5 }
 0x3d1   : > { %1210 = vrot.lane.b32.xlu1 %v6868_v37, %s6507_s11 }
 0x3d2   : > { %v6187_v8 = vpop.eup %6186 }
 0x3d3   : > { %v997_v9 = vsel %vm770_vm2, %v6187_v8, 0.0 }
 0x3d4   : > { %998 = vadd.xlane.f32.xlu0 %v997_v9 }
 0x3d5   : > { %1261 = vrot.lane.b32.xlu1 %v6878_v43, %s6507_s11 }
 0x3d9   : > { %1365 = vrot.lane.b32.xlu1 %v6846_v26, %s6506_s23 }
 0x3dd   : > { %1363 = vrot.lane.b32.xlu1 %v6894_v47, %s6507_s11 }
 0x3ea   : > { %1063 = vrot.lane.b32.xlu0 %v6964_v1, %s6505_s19  ;;  %s7975_s19 = smov 16  }
 0x3ee   : > { %1314 = vrot.lane.b32.xlu0 %v6858_v30, %s6506_s23 }
 0x3f2   : > { %1312 = vrot.lane.b32.xlu0 %v6886_v45, %s6507_s11 }
 0x42f   : > { %v1014_v12 = vpop.permute.xlu1 %1013 }
 0x430   : > { %v1020_v13 = vsel %vm1018_vm4, %v1014_v12, 0 }
 0x431   : > { %5601 = vmatpush3.bf16.msra.mxu1 %v1020_v13 }
 0x432   : > { %5612 = vmatprep.subr.bf16.mxu1 %v6502_v2 }
 0x433   : > { %v1113_v14 = vpop.permute.xlu1 %1112 }
 0x434   : > { %v1118_v41 = vsel %vm1018_vm4, %v1113_v14, 0 }
 0x437   : > { %v1162_v17 = vpop.permute.xlu1 %1161 }
 0x438   : > { %v1167_v48 = vsel %vm1018_vm4, %v1162_v17, 0 }
 0x43b   : > { %v1213_v29 = vpop.permute.xlu1 %1212 }
 0x43c   : > { %v1218_v54 = vsel %vm770_vm2, %v1213_v29, 0 }
 0x43f   : > { %v1264_v40 = vpop.permute.xlu1 %1263 }
 0x440   : > { %v1269_v59 = vsel %vm770_vm2, %v1264_v40, 0 }
 0x443   : > { %v1211_v50 = vpop.permute.xlu1 %1210 }
 0x447   : > { %v1262_v21 = vpop.permute.xlu1 %1261 }
 0x44b   : > { %v1366_v18 = vpop.permute.xlu1 %1365 }
 0x44c   : > { %v1371_v16 = vsel %vm770_vm2, %v1366_v18, 0 }
 0x44f   : > { %v1364_v4 = vpop.permute.xlu1 %1363 }
 0x451   : > { %v990_v25 = vpop.xlane.xlu0 %989 }
 0x452   : > { %6188 = vrcp.f32 %v990_v25 }
 0x455   : > { %v993_v15 = vpop.xlane.xlu0 %992 }
 0x456   : > { %6190 = vrcp.f32 %v993_v15 }
 0x459   : > { %v996_v27 = vpop.xlane.xlu0 %995 }
 0x45a   : > { %6192 = vrcp.f32 %v996_v27 }
 0x45d   : > { %v999_v31 = vpop.xlane.xlu0 %998 }
 0x45e   : > { %6194 = vrcp.f32 %v999_v31 }
 0x45f   : > { %v6189_v32 = vpop.eup %6188 }
 0x460   : > { %v1001_v33 = vmul.f32 %v6189_v32, %v6181_v0 }
 0x461   : > { %v1064_v34 = vpop.permute.xlu0 %1063 }
 0x462   : > { %v1069_v36 = vsel %vm1018_vm4, %v1064_v34, 0  ;;  %v1008_v38 = vpack.c.bf16 %v1001_v33, %v1001_v33 }
 0x463   : > { %v6191_v39 = vpop.eup %6190  ;;  %5607 = vmatpush3.bf16.msra.mxu0 %v1069_v36 }
 0x464   : > { %5603 = vmatmul.mubr.msk.bf16.vlgmr.msra.gmra.mxu1 %vm770_vm2, %v1008_v38  ;;  %5618 = vmatprep.subr.bf16.mxu0 %v6502_v2  ;;  %v1003_v42 = vmul.f32 %v6191_v39, %v6183_v22 }
 0x465   : > { %5613 = vmatpush3.bf16.msra.mxu1 %v1118_v41  ;;  %5614 = vmatprep.mubr.msk.bf16.mxu1 %vm6503_vm1, %v6502_v2  ;;  %v1315_v61 = vpop.permute.xlu0 %1314 }
 0x466   : > { %v1009_v44 = vpack.c.bf16 %v1003_v42, %v1003_v42  ;;  %5624 = vmatprep.subr.bf16.mxu1 %v6502_v2  ;;  %v1320_v62 = vsel %vm770_vm2, %v1315_v61, 0 }
 0x467   : > { %v6193_v46 = vpop.eup %6192 }
 0x468   : > { %5609 = vmatmul.mubr.msk.bf16.vlgmr.msra.gmra.mxu0 %vm770_vm2, %v1009_v44  ;;  %v1005_v49 = vmul.f32 %v6193_v46, %v6185_v7 }
 0x469   : > { %5619 = vmatpush3.bf16.msra.mxu0 %v1167_v48  ;;  %5620 = vmatprep.mubr.msk.bf16.mxu0 %vm6503_vm1, %v6502_v2  ;;  %v1313_v0 = vpop.permute.xlu0 %1312 }
 0x46a   : > { %v1010_v52 = vpack.c.bf16 %v1005_v49, %v1005_v49  ;;  %5630 = vmatprep.subr.bf16.mxu0 %v6502_v2 }
 0x46b   : > { %v6195_v53 = vpop.eup %6194 }
 0x46c   : > { %5615 = vmatmul.mubr.msk.bf16.vlgmr.msra.gmra.mxu1 %vm770_vm2, %v1010_v52  ;;  %v1007_v56 = vmul.f32 %v6195_v53, %v6187_v8 }
 0x46d   : > { %5625 = vmatpush3.bf16.xpose.msra.mxu1 %v1218_v54  ;;  %5626 = vmatprep.mubr.msk.bf16.mxu1 %vm6503_vm1, %v6502_v2 }
 0x46e   : > { %v1011_v57 = vpack.c.bf16 %v1007_v56, %v1007_v56  ;;  %5636 = vmatprep.subr.bf16.mxu1 %v6502_v2 }
 0x470   : > { %5621 = vmatmul.mubr.msk.bf16.vlgmr.msra.gmra.mxu0 %vm770_vm2, %v1011_v57 }
 0x471   : > { %5631 = vmatpush3.bf16.xpose.msra.mxu0 %v1269_v59  ;;  %5632 = vmatprep.mubr.msk.bf16.mxu0 %vm6503_vm1, %v6502_v2 }
 0x472   : > { %5642 = vmatprep.subr.bf16.mxu0 %v6502_v2 }
 0x474   : > { %5627 = vmatmul.mubr.msk.bf16.vlgmr.msra.gmra.mxu1 %vm770_vm2, %v1211_v50 }
 0x475   : > { %5637 = vmatpush3.bf16.xpose.msra.mxu1 %v1320_v62  ;;  %5638 = vmatprep.mubr.msk.bf16.mxu1 %vm6503_vm1, %v6502_v2 }
 0x476   : > { %5648 = vmatprep.subr.bf16.mxu1 %v6502_v2 }
 0x478   : > { %5633 = vmatmul.mubr.msk.bf16.vlgmr.msra.gmra.mxu0 %vm770_vm2, %v1262_v21 }
 0x479   : > { %5643 = vmatpush3.bf16.xpose.msra.mxu0 %v1371_v16  ;;  %5644 = vmatprep.mubr.msk.bf16.mxu0 %vm6503_vm1, %v6502_v2 }
 0x47a   : > { %5654 = vmatprep.subr.bf16.mxu0 %v6502_v2 }
 0x47c   : > { %5639 = vmatmul.mubr.msk.bf16.vlgmr.msra.gmra.mxu1 %vm770_vm2, %v1313_v0 }
 0x47d   : > { %5650 = vmatprep.mubr.msk.bf16.mxu1 %vm6503_vm1, %v6502_v2 }
 0x480   : > { %5645 = vmatmul.mubr.msk.bf16.vlgmr.msra.gmra.mxu0 %vm770_vm2, %v1364_v4 }
 0x481   : > { %5656 = vmatprep.mubr.msk.bf16.mxu0 %vm6503_vm1, %v6502_v2 }
 0x524   : > { %v7012_v22 = vpop.f32.mrf.mxu1 }
 0x526   : > { %v5604_v6 = vpop.f32.mrf.mxu1 }
 0x528   : > { %v1059_v7 = vpop.f32.mrf.mxu1  ;;  %v7014_v5 = vpop.f32.mrf.mxu0 }
 0x52a   : > { %v5605_v8 = vpop.f32.mrf.mxu1  ;;  %v5610_v9 = vpop.f32.mrf.mxu0 }
 0x52c   : > { %v1108_v11 = vpop.f32.mrf.mxu0  ;;  %v7016_v12 = vpop.f32.mrf.mxu1 }
 0x52e   : > { %v5611_v13 = vpop.f32.mrf.mxu0  ;;  %v5616_v14 = vpop.f32.mrf.mxu1 }
 0x530   : > { %v1157_v25 = vpop.f32.mrf.mxu1  ;;  %v7018_v15 = vpop.f32.mrf.mxu0 }
 0x532   : > { %v5617_v17 = vpop.f32.mrf.mxu1  ;;  %v5622_v27 = vpop.f32.mrf.mxu0 }
 0x534   : > { %v1206_v29 = vpop.f32.mrf.mxu0  ;;  %v1254_v31 = vpop.f32.mrf.mxu1 }
 0x535   : > { %v1255_v32 = vadd.f32 %v1254_v31, %v6907_v58 }
 0x536   : > { %v5623_v33 = vpop.f32.mrf.mxu0  ;;  %v5628_v34 = vpop.f32.mrf.mxu1 }
 0x537   : > { %v1413_v36 = vsel %vm770_vm2, %v1255_v32, -inf }
 0x538   : > { %1414 = vmax.xlane.f32.xlu0 %v1413_v36  ;;  %v1257_v38 = vpop.f32.mrf.mxu1  ;;  %v1305_v39 = vpop.f32.mrf.mxu0 }
 0x539   : > { %v1306_v40 = vadd.f32 %v1305_v39, %v6912_v63 }
 0x53a   : > { %v5629_v41 = vpop.f32.mrf.mxu1  ;;  %v5634_v42 = vpop.f32.mrf.mxu0 }
 0x53b   : > { %v1416_v44 = vsel %vm770_vm2, %v1306_v40, -inf }
 0x53c   : > { %v1356_v46 = vpop.f32.mrf.mxu1  ;;  %1417 = vmax.xlane.f32.xlu1 %v1416_v44  ;;  %v1308_v48 = vpop.f32.mrf.mxu0 }
 0x53d   : > { %v1357_v49 = vadd.f32 %v1356_v46, %v6917_v10 }
 0x53e   : > { %v5635_v50 = vpop.f32.mrf.mxu0  ;;  %v5640_v52 = vpop.f32.mrf.mxu1 }
 0x53f   : > { %v1419_v53 = vsel %vm770_vm2, %v1357_v49, -inf }
 0x540   : > { %1420 = vmax.xlane.f32.xlu0 %v1419_v53  ;;  %v1359_v54 = vpop.f32.mrf.mxu1  ;;  %v1407_v56 = vpop.f32.mrf.mxu0 }
 0x541   : > { %v1408_v57 = vadd.f32 %v1407_v56, %v6922_v24 }
 0x542   : > { %v5641_v21 = vpop.f32.mrf.mxu1  ;;  %v5646_v59 = vpop.f32.mrf.mxu0 }
 0x543   : > { %v1422_v61 = vsel %vm770_vm2, %v1408_v57, -inf }
 0x544   : > { %1423 = vmax.xlane.f32.xlu0 %v1422_v61  ;;  %v1410_v62 = vpop.f32.mrf.mxu0 }
 0x546   : > { %v5647_v18 = vpop.f32.mrf.mxu0 }
 0x54d   : > { %1509 = vrot.lane.b32.xlu1 %v6964_v1, %s6508_s17 }
 0x551   : > { %1557 = vrot.lane.b32.xlu1 %v6938_v60, %s6508_s17 }
 0x555   : > { %1605 = vrot.lane.b32.xlu1 %v6943_v3, %s6508_s17 }
 0x5c1   : > { %v1415_v16 = vpop.xlane.xlu0 %1414 }
 0x5c2   : > { %v1425_v0 = vsub.f32 %v1255_v32, %v1415_v16 }
 0x5c4   : > { %v1429_v4 = vmul.f32 1.442695, %v1425_v0 }
 0x5c5   : > { %v1418_v6 = vpop.xlane.xlu1 %1417 }
 0x5c6   : > { %6196 = vpow2.f32 %v1429_v4  ;;  %v1426_v7 = vsub.f32 %v1306_v40, %v1418_v6 }
 0x5c8   : > { %v1431_v8 = vmul.f32 1.442695, %v1426_v7 }
 0x5c9   : > { %v1510_v9 = vpop.permute.xlu1 %1509  ;;  %v1421_v27 = vpop.xlane.xlu0 %1420 }
 0x5ca   : > { %6198 = vpow2.f32 %v1431_v8  ;;  %v1515_v11 = vsel %vm1018_vm4, %v1510_v9, 0  ;;  %v1427_v29 = vsub.f32 %v1357_v49, %v1421_v27 }
 0x5cb   : > { %5655 = vmatpush3.bf16.msra.mxu0 %v1515_v11 }
 0x5cc   : > { %5666 = vmatprep.subr.bf16.mxu0 %v6502_v2  ;;  %v1433_v32 = vmul.f32 1.442695, %v1427_v29 }
 0x5cd   : > { %v1424_v31 = vpop.xlane.xlu0 %1423  ;;  %v1558_v41 = vpop.permute.xlu1 %1557 }
 0x5ce   : > { %v1428_v33 = vsub.f32 %v1408_v57, %v1424_v31  ;;  %6200 = vpow2.f32 %v1433_v32  ;;  %v1563_v56 = vsel %vm1018_vm4, %v1558_v41, 0 }
 0x5d0   : > { %v1435_v34 = vmul.f32 1.442695, %v1428_v33 }
 0x5d1   : > { %v1606_v42 = vpop.permute.xlu1 %1605 }
 0x5d2   : > { %6202 = vpow2.f32 %v1435_v34  ;;  %v1611_v59 = vsel %vm1018_vm4, %v1606_v42, 0 }
 0x5d3   : > { %v6197_v13 = vpop.eup %6196 }
 0x5d4   : > { %v1437_v14 = vsel %vm770_vm2, %v6197_v13, 0.0 }
 0x5d5   : > { %1438 = vadd.xlane.f32.xlu0 %v1437_v14 }
 0x5d7   : > { %v6199_v25 = vpop.eup %6198 }
 0x5d8   : > { %v1440_v17 = vsel %vm770_vm2, %v6199_v25, 0.0 }
 0x5d9   : > { %1441 = vadd.xlane.f32.xlu1 %v1440_v17 }
 0x5db   : > { %v6201_v36 = vpop.eup %6200 }
 0x5dc   : > { %v1443_v38 = vsel %vm770_vm2, %v6201_v36, 0.0 }
 0x5df   : > { %v6203_v39 = vpop.eup %6202 }
 0x5e0   : > { %v1446_v40 = vsel %vm770_vm2, %v6203_v39, 0.0 }
 0x5ea   : > { %1705 = vrot.lane.b32.xlu1 %v6851_v28, %s6509_s25 }
 0x5eb   : > { %1461 = vrot.lane.b32.xlu0 %v6933_v55, %s6508_s17 }
 0x60a   : > { %1444 = vadd.xlane.f32.xlu0 %v1443_v38 }
 0x60e   : > { %1447 = vadd.xlane.f32.xlu1 %v1446_v40 }
 0x61f   : > { %1703 = vrot.lane.b32.xlu1 %v6878_v43, %s6510_s18 }
 0x620   : > { %1655 = vrot.lane.b32.xlu0 %v6841_v23, %s6509_s25 }
 0x623   : > { %1805 = vrot.lane.b32.xlu1 %v6846_v26, %s6509_s25 }
 0x624   : > { %1653 = vrot.lane.b32.xlu0 %v6868_v37, %s6510_s18 }
 0x627   : > { %1803 = vrot.lane.b32.xlu1 %v6894_v47, %s6510_s18 }
 0x628   : > { %1755 = vrot.lane.b32.xlu0 %v6858_v30, %s6509_s25 }
 0x62c   : > { %1753 = vrot.lane.b32.xlu0 %v6886_v45, %s6510_s18 }
 0x65e   : > { %v1439_v44 = vpop.xlane.xlu0 %1438 }
 0x65f   : > { %6204 = vrcp.f32 %v1439_v44 }
 0x662   : > { %v1462_v46 = vpop.permute.xlu0 %1461  ;;  %v1442_v48 = vpop.xlane.xlu1 %1441 }
 0x663   : > { %v1467_v49 = vsel %vm1018_vm4, %v1462_v46, 0  ;;  %6206 = vrcp.f32 %v1442_v48 }
 0x664   : > { %5649 = vmatpush3.bf16.msra.mxu1 %v1467_v49 }
 0x665   : > { %5660 = vmatprep.subr.bf16.mxu1 %v6502_v2 }
 0x666   : > { %v1706_v61 = vpop.permute.xlu1 %1705 }
 0x66c   : > { %v6205_v50 = vpop.eup %6204 }
 0x66d   : > { %v1450_v52 = vmul.f32 %v6205_v50, %v6197_v13 }
 0x66f   : > { %v1457_v53 = vpack.c.bf16 %v1450_v52, %v1450_v52 }
 0x670   : > { %v6207_v54 = vpop.eup %6206 }
 0x671   : > { %5651 = vmatmul.mubr.msk.bf16.vlgmr.msra.gmra.mxu1 %vm770_vm2, %v1457_v53  ;;  %v1452_v57 = vmul.f32 %v6207_v54, %v6199_v25  ;;  %v1711_v25 = vsel %vm770_vm2, %v1706_v61, 0 }
 0x672   : > { %5661 = vmatpush3.bf16.msra.mxu1 %v1563_v56  ;;  %5662 = vmatprep.mubr.msk.bf16.mxu1 %vm6503_vm1, %v6502_v2 }
 0x673   : > { %v1458_v21 = vpack.c.bf16 %v1452_v57, %v1452_v57  ;;  %5672 = vmatprep.subr.bf16.mxu1 %v6502_v2 }
 0x675   : > { %5657 = vmatmul.mubr.msk.bf16.vlgmr.msra.gmra.mxu0 %vm770_vm2, %v1458_v21 }
 0x676   : > { %5667 = vmatpush3.bf16.msra.mxu0 %v1611_v59  ;;  %5668 = vmatprep.mubr.msk.bf16.mxu0 %vm6503_vm1, %v6502_v2 }
 0x677   : > { %5678 = vmatprep.subr.bf16.mxu0 %v6502_v2 }
 0x693   : > { %v1445_v62 = vpop.xlane.xlu0 %1444 }
 0x694   : > { %6208 = vrcp.f32 %v1445_v62 }
 0x697   : > { %v1448_v18 = vpop.xlane.xlu1 %1447  ;;  %v1656_v16 = vpop.permute.xlu0 %1655 }
 0x698   : > { %6210 = vrcp.f32 %v1448_v18  ;;  %v1661_v9 = vsel %vm770_vm2, %v1656_v16, 0 }
 0x69b   : > { %v1654_v8 = vpop.permute.xlu0 %1653  ;;  %v1704_v14 = vpop.permute.xlu1 %1703 }
 0x69f   : > { %v1756_v17 = vpop.permute.xlu0 %1755  ;;  %v1806_v29 = vpop.permute.xlu1 %1805 }
 0x6a0   : > { %v1761_v27 = vsel %vm770_vm2, %v1756_v17, 0  ;;  %v1811_v31 = vsel %vm770_vm2, %v1806_v29, 0 }
 0x6a1   : > { %v6209_v0 = vpop.eup %6208 }
 0x6a2   : > { %v1454_v4 = vmul.f32 %v6209_v0, %v6201_v36 }
 0x6a3   : > { %v1754_v32 = vpop.permute.xlu0 %1753  ;;  %v1804_v33 = vpop.permute.xlu1 %1803 }
 0x6a4   : > { %v1459_v6 = vpack.c.bf16 %v1454_v4, %v1454_v4 }
 0x6a5   : > { %v6211_v7 = vpop.eup %6210 }
 0x6a6   : > { %5663 = vmatmul.mubr.msk.bf16.vlgmr.msra.gmra.mxu1 %vm770_vm2, %v1459_v6  ;;  %v1456_v11 = vmul.f32 %v6211_v7, %v6203_v39 }
 0x6a7   : > { %5673 = vmatpush3.bf16.xpose.msra.mxu1 %v1661_v9  ;;  %5674 = vmatprep.mubr.msk.bf16.mxu1 %vm6503_vm1, %v6502_v2 }
 0x6a8   : > { %v1460_v13 = vpack.c.bf16 %v1456_v11, %v1456_v11  ;;  %5684 = vmatprep.subr.bf16.mxu1 %v6502_v2 }
 0x6aa   : > { %5669 = vmatmul.mubr.msk.bf16.vlgmr.msra.gmra.mxu0 %vm770_vm2, %v1460_v13 }
 0x6ab   : > { %5679 = vmatpush3.bf16.xpose.msra.mxu0 %v1711_v25  ;;  %5680 = vmatprep.mubr.msk.bf16.mxu0 %vm6503_vm1, %v6502_v2 }
 0x6ac   : > { %5690 = vmatprep.subr.bf16.mxu0 %v6502_v2 }
 0x6ae   : > { %5675 = vmatmul.mubr.msk.bf16.vlgmr.msra.gmra.mxu1 %vm770_vm2, %v1654_v8 }
 0x6af   : > { %5685 = vmatpush3.bf16.xpose.msra.mxu1 %v1761_v27  ;;  %5686 = vmatprep.mubr.msk.bf16.mxu1 %vm6503_vm1, %v6502_v2 }
 0x6b0   : > { %5696 = vmatprep.subr.bf16.mxu1 %v6502_v2 }
 0x6b2   : > { %5681 = vmatmul.mubr.msk.bf16.vlgmr.msra.gmra.mxu0 %vm770_vm2, %v1704_v14 }
 0x6b3   : > { %5691 = vmatpush3.bf16.xpose.msra.mxu0 %v1811_v31  ;;  %5692 = vmatprep.mubr.msk.bf16.mxu0 %vm6503_vm1, %v6502_v2 }
 0x6b4   : > { %5702 = vmatprep.subr.bf16.mxu0 %v6502_v2 }
 0x6b6   : > { %5687 = vmatmul.mubr.msk.bf16.vlgmr.msra.gmra.mxu1 %vm770_vm2, %v1754_v32 }
 0x6b7   : > { %5698 = vmatprep.mubr.msk.bf16.mxu1 %vm6503_vm1, %v6502_v2 }
 0x6ba   : > { %5693 = vmatmul.mubr.msk.bf16.vlgmr.msra.gmra.mxu0 %vm770_vm2, %v1804_v33 }
 0x6bb   : > { %5704 = vmatprep.mubr.msk.bf16.mxu0 %vm6503_vm1, %v6502_v2 }
 0x731   : > { %v7092_v34 = vpop.f32.mrf.mxu1 }
 0x733   : > { %v5652_v36 = vpop.f32.mrf.mxu1 }
 0x735   : > { %v1506_v38 = vpop.f32.mrf.mxu1  ;;  %v7094_v39 = vpop.f32.mrf.mxu0 }
 0x736   : > { %v6096_v40 = vpack.i.bf16 %v7094_v39, %v7092_v34 }
 0x737   : > { %v5653_v41 = vpop.f32.mrf.mxu1  ;;  %v5658_v42 = vpop.f32.mrf.mxu0 }
 0x739   : > { %v1554_v44 = vpop.f32.mrf.mxu0 }
 0x73b   : > { %v5659_v46 = vpop.f32.mrf.mxu0 }
 0x766   : > { %v7098_v48 = vpop.f32.mrf.mxu1 }
 0x768   : > { %v5664_v49 = vpop.f32.mrf.mxu1 }
 0x76a   : > { %v1602_v50 = vpop.f32.mrf.mxu1  ;;  %v7100_v52 = vpop.f32.mrf.mxu0 }
 0x76b   : > { %v6101_v53 = vpack.i.bf16 %v7100_v52, %v7098_v48 }
 0x76c   : > { %v5665_v54 = vpop.f32.mrf.mxu1  ;;  %v5670_v56 = vpop.f32.mrf.mxu0 }
 0x76e   : > { %v1650_v57 = vpop.f32.mrf.mxu0  ;;  %v1697_v21 = vpop.f32.mrf.mxu1 }
 0x76f   : > { %v1698_v59 = vadd.f32 %v1697_v21, %v6907_v58 }
 0x770   : > { %v5671_v61 = vpop.f32.mrf.mxu0  ;;  %v5676_v62 = vpop.f32.mrf.mxu1 }
 0x771   : > { %v1853_v18 = vsel %vm770_vm2, %v1698_v59, -inf }
 0x772   : > { %1854 = vmax.xlane.f32.xlu0 %v1853_v18  ;;  %v1700_v16 = vpop.f32.mrf.mxu1  ;;  %v1747_v0 = vpop.f32.mrf.mxu0 }
 0x773   : > { %v1748_v4 = vadd.f32 %v1747_v0, %v6912_v63 }
 0x774   : > { %v5677_v6 = vpop.f32.mrf.mxu1  ;;  %v5682_v7 = vpop.f32.mrf.mxu0 }
 0x775   : > { %v1856_v8 = vsel %vm770_vm2, %v1748_v4, -inf }
 0x776   : > { %v1797_v9 = vpop.f32.mrf.mxu1  ;;  %1857 = vmax.xlane.f32.xlu1 %v1856_v8  ;;  %v1750_v11 = vpop.f32.mrf.mxu0 }
 0x777   : > { %v1798_v13 = vadd.f32 %v1797_v9, %v6917_v10 }
 0x778   : > { %v5683_v14 = vpop.f32.mrf.mxu0  ;;  %v5688_v25 = vpop.f32.mrf.mxu1 }
 0x779   : > { %v1859_v17 = vsel %vm770_vm2, %v1798_v13, -inf }
 0x77a   : > { %1860 = vmax.xlane.f32.xlu0 %v1859_v17  ;;  %v1800_v27 = vpop.f32.mrf.mxu1  ;;  %v1847_v29 = vpop.f32.mrf.mxu0 }
 0x77b   : > { %v1848_v31 = vadd.f32 %v1847_v29, %v6922_v24 }
 0x77c   : > { %v5689_v32 = vpop.f32.mrf.mxu1  ;;  %v5694_v33 = vpop.f32.mrf.mxu0 }
 0x77d   : > { %v1862_v36 = vsel %vm770_vm2, %v1848_v31, -inf }
 0x77e   : > { %1863 = vmax.xlane.f32.xlu0 %v1862_v36  ;;  %v1850_v38 = vpop.f32.mrf.mxu0 }
 0x780   : > { %v5695_v41 = vpop.f32.mrf.mxu0 }
 0x787   : > { %1949 = vrot.lane.b32.xlu1 %v6964_v1, %s6511_s27 }
 0x78b   : > { %1997 = vrot.lane.b32.xlu1 %v6938_v60, %s6511_s27 }
 0x78f   : > { %2045 = vrot.lane.b32.xlu1 %v6943_v3, %s6511_s27 }
 0x7fb   : > { %v1855_v42 = vpop.xlane.xlu0 %1854 }
 0x7fc   : > { %v1865_v44 = vsub.f32 %v1698_v59, %v1855_v42 }
 0x7fe   : > { %v1869_v46 = vmul.f32 1.442695, %v1865_v44 }
 0x7ff   : > { %v1858_v49 = vpop.xlane.xlu1 %1857 }
 0x800   : > { %6212 = vpow2.f32 %v1869_v46  ;;  %v1866_v50 = vsub.f32 %v1748_v4, %v1858_v49 }
 0x802   : > { %v1871_v54 = vmul.f32 1.442695, %v1866_v50 }
 0x803   : > { %v1950_v56 = vpop.permute.xlu1 %1949  ;;  %v1861_v59 = vpop.xlane.xlu0 %1860 }
 0x804   : > { %6214 = vpow2.f32 %v1871_v54  ;;  %v1955_v57 = vsel %vm1018_vm4, %v1950_v56, 0  ;;  %v1867_v16 = vsub.f32 %v1798_v13, %v1861_v59 }
 0x805   : > { %5703 = vmatpush3.bf16.msra.mxu0 %v1955_v57 }
 0x806   : > { %5714 = vmatprep.subr.bf16.mxu0 %v6502_v2  ;;  %v1873_v4 = vmul.f32 1.442695, %v1867_v16 }
 0x807   : > { %v1864_v0 = vpop.xlane.xlu0 %1863 }
 0x808   : > { %v1868_v6 = vsub.f32 %v1848_v31, %v1864_v0  ;;  %6216 = vpow2.f32 %v1873_v4 }
 0x80a   : > { %v1875_v7 = vmul.f32 1.442695, %v1868_v6 }
 0x80c   : > { %6218 = vpow2.f32 %v1875_v7 }
 0x80d   : > { %v6213_v21 = vpop.eup %6212 }
 0x80e   : > { %v1877_v61 = vsel %vm770_vm2, %v6213_v21, 0.0 }
 0x80f   : > { %1878 = vadd.xlane.f32.xlu0 %v1877_v61 }
 0x811   : > { %v6215_v62 = vpop.eup %6214 }
 0x812   : > { %v1880_v18 = vsel %vm770_vm2, %v6215_v62, 0.0 }
 0x813   : > { %1881 = vadd.xlane.f32.xlu1 %v1880_v18 }
 0x815   : > { %v6217_v8 = vpop.eup %6216 }
 0x816   : > { %v1883_v9 = vsel %vm770_vm2, %v6217_v8, 0.0 }
 0x819   : > { %v6219_v11 = vpop.eup %6218 }
 0x81a   : > { %v1886_v14 = vsel %vm770_vm2, %v6219_v11, 0.0 }
 0x824   : > { %2145 = vrot.lane.b32.xlu1 %v6851_v28, %s7979_s28  ;;  %v1998_v28 = vpop.permute.xlu1 %1997 }
 0x825   : > { %1901 = vrot.lane.b32.xlu0 %v6933_v55, %s6511_s27 }
 0x844   : > { %1884 = vadd.xlane.f32.xlu0 %v1883_v9 }
 0x848   : > { %1887 = vadd.xlane.f32.xlu1 %v1886_v14 }
 0x859   : > { %2143 = vrot.lane.b32.xlu1 %v6878_v43, %s6513_s29  ;;  %v2046_v43 = vpop.permute.xlu1 %2045 }
 0x85a   : > { %2095 = vrot.lane.b32.xlu0 %v6841_v23, %s7979_s28  ;;  %v2051_v31 = vsel %vm1018_vm4, %v2046_v43, 0 }
 0x85d   : > { %2245 = vrot.lane.b32.xlu1 %v6846_v26, %s7979_s28 }
 0x85e   : > { %2093 = vrot.lane.b32.xlu0 %v6868_v37, %s6513_s29 }
 0x861   : > { %2243 = vrot.lane.b32.xlu1 %v6894_v47, %s6513_s29 }
 0x862   : > { %2195 = vrot.lane.b32.xlu0 %v6858_v30, %s7979_s28  ;;  %v2003_v30 = vsel %vm1018_vm4, %v1998_v28, 0  ;;  %s441_s28 = scalar_lea.vmem %s7957_s0, %s5303_s24 }
 0x866   : > { %2193 = vrot.lane.b32.xlu0 %v6886_v45, %s6513_s29 }
 0x898   : > { %v1879_v13 = vpop.xlane.xlu0 %1878 }
 0x899   : > { %6220 = vrcp.f32 %v1879_v13 }
 0x89c   : > { %v1902_v23 = vpop.permute.xlu0 %1901  ;;  %v1882_v25 = vpop.xlane.xlu1 %1881 }
 0x89d   : > { %v1907_v26 = vsel %vm1018_vm4, %v1902_v23, 0  ;;  %6222 = vrcp.f32 %v1882_v25 }
 0x89e   : > { %5697 = vmatpush3.bf16.msra.mxu1 %v1907_v26 }
 0x89f   : > { %5708 = vmatprep.subr.bf16.mxu1 %v6502_v2 }
 0x8a0   : > { %v2146_v32 = vpop.permute.xlu1 %2145 }
 0x8a6   : > { %v6221_v37 = vpop.eup %6220 }
 0x8a7   : > { %v1890_v47 = vmul.f32 %v6221_v37, %v6213_v21  ;;  %v2151_v21 = vsel %vm770_vm2, %v2146_v32, 0 }
 0x8a9   : > { %v1897_v17 = vpack.c.bf16 %v1890_v47, %v1890_v47 }
 0x8aa   : > { %v6223_v27 = vpop.eup %6222 }
 0x8ab   : > { %5699 = vmatmul.mubr.msk.bf16.vlgmr.msra.gmra.mxu1 %vm770_vm2, %v1897_v17  ;;  %v1892_v45 = vmul.f32 %v6223_v27, %v6215_v62 }
 0x8ac   : > { %5709 = vmatpush3.bf16.msra.mxu1 %v2003_v30  ;;  %5710 = vmatprep.mubr.msk.bf16.mxu1 %vm6503_vm1, %v6502_v2 }
 0x8ad   : > { %v1898_v29 = vpack.c.bf16 %v1892_v45, %v1892_v45  ;;  %5720 = vmatprep.subr.bf16.mxu1 %v6502_v2 }
 0x8af   : > { %5705 = vmatmul.mubr.msk.bf16.vlgmr.msra.gmra.mxu0 %vm770_vm2, %v1898_v29 }
 0x8b0   : > { %5715 = vmatpush3.bf16.msra.mxu0 %v2051_v31  ;;  %5716 = vmatprep.mubr.msk.bf16.mxu0 %vm6503_vm1, %v6502_v2 }
 0x8b1   : > { %5726 = vmatprep.subr.bf16.mxu0 %v6502_v2 }
 0x8cd   : > { %v1885_v33 = vpop.xlane.xlu0 %1884 }
 0x8ce   : > { %6224 = vrcp.f32 %v1885_v33 }
 0x8d1   : > { %v1888_v36 = vpop.xlane.xlu1 %1887  ;;  %v2096_v38 = vpop.permute.xlu0 %2095 }
 0x8d2   : > { %6226 = vrcp.f32 %v1888_v36  ;;  %v2101_v50 = vsel %vm770_vm2, %v2096_v38, 0 }
 0x8d5   : > { %v2094_v49 = vpop.permute.xlu0 %2093  ;;  %v2144_v57 = vpop.permute.xlu1 %2143 }
 0x8d9   : > { %v2196_v61 = vpop.permute.xlu0 %2195  ;;  %v2246_v18 = vpop.permute.xlu1 %2245 }
 0x8da   : > { %v2201_v62 = vsel %vm770_vm2, %v2196_v61, 0  ;;  %v2251_v59 = vsel %vm770_vm2, %v2246_v18, 0 }
 0x8db   : > { %v6225_v41 = vpop.eup %6224 }
 0x8dc   : > { %v1894_v42 = vmul.f32 %v6225_v41, %v6217_v8 }
 0x8dd   : > { %v2194_v16 = vpop.permute.xlu0 %2193  ;;  %v2244_v0 = vpop.permute.xlu1 %2243 }
 0x8de   : > { %v1899_v44 = vpack.c.bf16 %v1894_v42, %v1894_v42 }
 0x8df   : > { %v6227_v46 = vpop.eup %6226 }
 0x8e0   : > { %5711 = vmatmul.mubr.msk.bf16.vlgmr.msra.gmra.mxu1 %vm770_vm2, %v1899_v44  ;;  %v1896_v54 = vmul.f32 %v6227_v46, %v6219_v11 }
 0x8e1   : > { %5721 = vmatpush3.bf16.xpose.msra.mxu1 %v2101_v50  ;;  %5722 = vmatprep.mubr.msk.bf16.mxu1 %vm6503_vm1, %v6502_v2 }
 0x8e2   : > { %v1900_v56 = vpack.c.bf16 %v1896_v54, %v1896_v54  ;;  %5732 = vmatprep.subr.bf16.mxu1 %v6502_v2 }
 0x8e4   : > { %5717 = vmatmul.mubr.msk.bf16.vlgmr.msra.gmra.mxu0 %vm770_vm2, %v1900_v56 }
 0x8e5   : > { %5727 = vmatpush3.bf16.xpose.msra.mxu0 %v2151_v21  ;;  %5728 = vmatprep.mubr.msk.bf16.mxu0 %vm6503_vm1, %v6502_v2 }
 0x8e6   : > { %5738 = vmatprep.subr.bf16.mxu0 %v6502_v2 }
 0x8e8   : > { %5723 = vmatmul.mubr.msk.bf16.vlgmr.msra.gmra.mxu1 %vm770_vm2, %v2094_v49 }
 0x8e9   : > { %5733 = vmatpush3.bf16.xpose.msra.mxu1 %v2201_v62  ;;  %5734 = vmatprep.mubr.msk.bf16.mxu1 %vm6503_vm1, %v6502_v2 }
 0x8ea   : > { %5744 = vmatprep.subr.bf16.mxu1 %v6502_v2 }
 0x8ec   : > { %5729 = vmatmul.mubr.msk.bf16.vlgmr.msra.gmra.mxu0 %vm770_vm2, %v2144_v57 }
 0x8ed   : > { %5739 = vmatpush3.bf16.xpose.msra.mxu0 %v2251_v59  ;;  %5740 = vmatprep.mubr.msk.bf16.mxu0 %vm6503_vm1, %v6502_v2 }
 0x8ee   : > { %5750 = vmatprep.subr.bf16.mxu0 %v6502_v2 }
 0x8f0   : > { %5735 = vmatmul.mubr.msk.bf16.vlgmr.msra.gmra.mxu1 %vm770_vm2, %v2194_v16 }
 0x8f1   : > { %5746 = vmatprep.mubr.msk.bf16.mxu1 %vm6503_vm1, %v6502_v2 }
 0x8f4   : > { %5741 = vmatmul.mubr.msk.bf16.vlgmr.msra.gmra.mxu0 %vm770_vm2, %v2244_v0 }
 0x8f5   : > { %5752 = vmatprep.mubr.msk.bf16.mxu0 %vm6503_vm1, %v6502_v2 }
 0x96b   : > { %v7176_v4 = vpop.f32.mrf.mxu1 }
 0x96d   : > { %v5700_v6 = vpop.f32.mrf.mxu1 }
 0x96f   : > { %v1946_v7 = vpop.f32.mrf.mxu1  ;;  %v7178_v8 = vpop.f32.mrf.mxu0 }
 0x970   : > { %v6106_v9 = vpack.i.bf16 %v7178_v8, %v7176_v4 }
 0x971   : > { %v5701_v11 = vpop.f32.mrf.mxu1  ;;  %v5706_v14 = vpop.f32.mrf.mxu0 }
 0x973   : > { %v1994_v28 = vpop.f32.mrf.mxu0 }
 0x975   : > { %v5707_v43 = vpop.f32.mrf.mxu0 }
 0x9a0   : > { %v7182_v13 = vpop.f32.mrf.mxu1 }
 0x9a2   : > { %v5712_v23 = vpop.f32.mrf.mxu1 }
 0x9a4   : > { %v2042_v25 = vpop.f32.mrf.mxu1  ;;  %v7184_v26 = vpop.f32.mrf.mxu0 }
 0x9a5   : > { %v6111_v37 = vpack.i.bf16 %v7184_v26, %v7182_v13 }
 0x9a6   : > { %v5713_v47 = vpop.f32.mrf.mxu1  ;;  %v5718_v17 = vpop.f32.mrf.mxu0 }
 0x9a8   : > { %v2090_v27 = vpop.f32.mrf.mxu0  ;;  %v2137_v30 = vpop.f32.mrf.mxu1 }
 0x9a9   : > { %v2138_v45 = vadd.f32 %v2137_v30, %v6907_v58 }
 0x9aa   : > { %v5719_v29 = vpop.f32.mrf.mxu0  ;;  %v5724_v31 = vpop.f32.mrf.mxu1 }
 0x9ab   : > { %v2293_v32 = vsel %vm770_vm2, %v2138_v45, -inf }
 0x9ac   : > { %2294 = vmax.xlane.f32.xlu0 %v2293_v32  ;;  %v2140_v33 = vpop.f32.mrf.mxu1  ;;  %v2187_v36 = vpop.f32.mrf.mxu0 }
 0x9ad   : > { %v2188_v38 = vadd.f32 %v2187_v36, %v6912_v63 }
 0x9ae   : > { %v5725_v41 = vpop.f32.mrf.mxu1  ;;  %v5730_v42 = vpop.f32.mrf.mxu0 }
 0x9af   : > { %v2296_v44 = vsel %vm770_vm2, %v2188_v38, -inf }
 0x9b0   : > { %v2237_v46 = vpop.f32.mrf.mxu1  ;;  %2297 = vmax.xlane.f32.xlu1 %v2296_v44  ;;  %v2190_v49 = vpop.f32.mrf.mxu0 }
 0x9b1   : > { %v2238_v50 = vadd.f32 %v2237_v46, %v6917_v10 }
 0x9b2   : > { %v5731_v54 = vpop.f32.mrf.mxu0  ;;  %v5736_v58 = vpop.f32.mrf.mxu1 }
 0x9b3   : > { %v2299_v56 = vsel %vm770_vm2, %v2238_v50, -inf  ;;  %v6158_v54 = vld [vmem:[%s7963_s6 + $0x8] sm:$0xff]  }
 0x9b4   : > { %2300 = vmax.xlane.f32.xlu0 %v2299_v56  ;;  %v2240_v57 = vpop.f32.mrf.mxu1  ;;  %v2287_v21 = vpop.f32.mrf.mxu0 }
 0x9b5   : > { %v2288_v61 = vadd.f32 %v2287_v21, %v6922_v24 }
 0x9b6   : > { %v5737_v62 = vpop.f32.mrf.mxu1  ;;  %v5742_v63 = vpop.f32.mrf.mxu0 }
 0x9b7   : > { %v2302_v18 = vsel %vm770_vm2, %v2288_v61, -inf }
 0x9b8   : > { %2303 = vmax.xlane.f32.xlu0 %v2302_v18  ;;  %v2290_v59 = vpop.f32.mrf.mxu0 }
 0x9ba   : > { %v5743_v16 = vpop.f32.mrf.mxu0 }
 0xa35   : > { %v2295_v0 = vpop.xlane.xlu0 %2294 }
 0xa36   : > { %v2305_v6 = vsub.f32 %v2138_v45, %v2295_v0 }
 0xa38   : > { %v2309_v7 = vmul.f32 1.442695, %v2305_v6 }
 0xa39   : > { %v2298_v10 = vpop.xlane.xlu1 %2297 }
 0xa3a   : > { %6228 = vpow2.f32 %v2309_v7  ;;  %v2306_v11 = vsub.f32 %v2188_v38, %v2298_v10  ;;  %v6159_v10 = vld [vmem:[%s7963_s6] sm:$0xff]  }
 0xa3c   : > { %v2311_v14 = vmul.f32 1.442695, %v2306_v11  ;;  %v7246_v11 = vld [vmem:[%s441_s28] sm:$0xff] }
 0xa3d   : > { %v2301_v28 = vpop.xlane.xlu0 %2300 }
 0xa3e   : > { %6230 = vpow2.f32 %v2311_v14  ;;  %v2307_v43 = vsub.f32 %v2238_v50, %v2301_v28  ;;  %v7248_v14 = vld [vmem:[%s441_s28 + $0x10] sm:$0xff]  ;;  %v2754_v28 = vsel %vm576_vm0, %v7246_v11, 0.0 }
 0xa40   : > { %v2313_v23 = vmul.f32 1.442695, %v2307_v43  ;;  %v2760_v43 = vsel %vm576_vm0, %v7248_v14, 0.0 }
 0xa41   : > { %v2304_v45 = vpop.xlane.xlu0 %2303 }
 0xa42   : > { %6232 = vpow2.f32 %v2313_v23  ;;  %v2308_v29 = vsub.f32 %v2288_v61, %v2304_v45 }
 0xa44   : > { %v2315_v31 = vmul.f32 1.442695, %v2308_v29 }
 0xa46   : > { %6234 = vpow2.f32 %v2315_v31  ;;  %v2772_v31 = vmul.f32 %v7248_v14, %v7248_v14 }
 0xa47   : > { %v6229_v24 = vpop.eup %6228 }
 0xa48   : > { %v2317_v25 = vsel %vm770_vm2, %v6229_v24, 0.0 }
 0xa49   : > { %2318 = vadd.xlane.f32.xlu0 %v2317_v25 }
 0xa4b   : > { %v6231_v47 = vpop.eup %6230 }
 0xa4c   : > { %v2320_v17 = vsel %vm770_vm2, %v6231_v47, 0.0 }
 0xa4d   : > { %2321 = vadd.xlane.f32.xlu1 %v2320_v17 }
 0xa4f   : > { %v6233_v27 = vpop.eup %6232 }
 0xa50   : > { %v2323_v30 = vsel %vm770_vm2, %v6233_v27, 0.0 }
 0xa51   : > { %2324 = vadd.xlane.f32.xlu0 %v2323_v30 }
 0xa5e   : > { %2389 = vrot.lane.b32.xlu1 %v6964_v1, %s6514_s21  ;;  %v6235_v1 = vpop.eup %6234 }
 0xa62   : > { %2437 = vrot.lane.b32.xlu1 %v6938_v60, %s6514_s21  ;;  %v2326_v60 = vsel %vm770_vm2, %v6235_v1, 0.0 }
 0xa67   : > { %2341 = vrot.lane.b32.xlu0 %v6933_v55, %s6514_s21 }
 0xa6b   : > { %6097 = vrot.lane.b32.xlu0 %v6096_v40, %s7977_s22 }
 0xa6f   : > { %6107 = vrot.lane.b32.xlu0 %v6106_v9, %s7975_s19 }
 0xa86   : > { %2327 = vadd.xlane.f32.xlu1 %v2326_v60  ;;  %v7265_v60 = vld [vmem:[%s441_s28 + $0x8] sm:$0xff] }
 0xa97   : > { %2485 = vrot.lane.b32.xlu1 %v6943_v3, %s6514_s21  ;;  %s6517_s21 = smov 24  }
 0xa9b   : > { %6102 = vrot.lane.b32.xlu1 %v6101_v53, %s7977_s22  ;;  %s5409_s22 = sshll.u32 %s6591_s13, 9  ;;  %s5145_s13 = scalar_lea.sflag [#allocation4], %s6736_s16 }
 0xa9f   : > { %6112 = vrot.lane.b32.xlu1 %v6111_v37, %s7975_s19 }
 0xad2   : > { %v2319_v55 = vpop.xlane.xlu0 %2318 }
 0xad3   : > { %6236 = vrcp.f32 %v2319_v55  ;;  %v2757_v55 = vsel %vm576_vm0, %v7265_v60, 0.0 }
 0xad6   : > { %v2322_v34 = vpop.xlane.xlu1 %2321 }
 0xad7   : > { %6238 = vrcp.f32 %v2322_v34  ;;  %v2771_v34 = vmul.f32 %v7265_v60, %v7265_v60 }
 0xada   : > { %v2325_v39 = vpop.xlane.xlu0 %2324  ;;  %v2390_v40 = vpop.permute.xlu1 %2389 }
 0xadb   : > { %6240 = vrcp.f32 %v2325_v39  ;;  %v2395_v4 = vsel %vm1018_vm4, %v2390_v40, 0  ;;  %v2777_v39 = vsel %vm576_vm0, %v2771_v34, 0.0 }
 0xadc   : > { %5751 = vmatpush3.bf16.msra.mxu0 %v2395_v4 }
 0xadd   : > { %5762 = vmatprep.subr.bf16.mxu0 %v6502_v2 }
 0xade   : > { %v2342_v3 = vpop.permute.xlu0 %2341  ;;  %v2438_v8 = vpop.permute.xlu1 %2437 }
 0xadf   : > { %v2347_v48 = vsel %vm1018_vm4, %v2342_v3, 0  ;;  %v2443_v26 = vsel %vm1018_vm4, %v2438_v8, 0 }
 0xae0   : > { %v6237_v52 = vpop.eup %6236  ;;  %5745 = vmatpush3.bf16.msra.mxu1 %v2347_v48 }
 0xae1   : > { %5756 = vmatprep.subr.bf16.mxu1 %v6502_v2  ;;  %v2330_v53 = vmul.f32 %v6237_v52, %v6229_v24  ;;  %v7254_v24 = vld [vmem:[%s441_s28 + $0x18] sm:$0xff] }
 0xae2   : > { %v2763_v17 = vsel %vm576_vm0, %v7254_v24, 0.0  ;;  %v2773_v40 = vmul.f32 %v7254_v24, %v7254_v24  ;;  %v6098_v3 = vpop.permute.xlu0 %6097 }
 0xae3   : > { %v2337_v9 = vpack.c.bf16 %v2330_v53, %v2330_v53  ;;  %v6100_v52 = vunpack.i.h.bf16 %v6098_v3  ;;  %v6099_v53 = vunpack.i.l.bf16 %v6098_v3 }
 0xae4   : > { %v6239_v13 = vpop.eup %6238  ;;  %v2783_v4 = vsel %vm576_vm0, %v2773_v40, 0.0 }
 0xae5   : > { %5747 = vmatmul.mubr.msk.bf16.vlgmr.msra.gmra.mxu1 %vm770_vm2, %v2337_v9  ;;  %v2332_v37 = vmul.f32 %v6239_v13, %v6231_v47 }
 0xae6   : > { %5757 = vmatpush3.bf16.msra.mxu1 %v2443_v26  ;;  %5758 = vmatprep.mubr.msk.bf16.mxu1 %vm6503_vm1, %v6502_v2  ;;  %v6108_v48 = vpop.permute.xlu0 %6107  ;;  %v2582_v26 = vsel %vm770_vm2, %v7014_v5, %v6100_v52 }
 0xae7   : > { %v2338_v32 = vpack.c.bf16 %v2332_v37, %v2332_v37  ;;  %5768 = vmatprep.subr.bf16.mxu1 %v6158_v54  ;;  %v6110_v8 = vunpack.i.h.bf16 %v6108_v48  ;;  %v6109_v9 = vunpack.i.l.bf16 %v6108_v48  ;;  %v2581_v37 = vsel %vm770_vm2, %v7012_v22, %v6099_v53 }
 0xae8   : > { %v6241_v33 = vpop.eup %6240 }
 0xae9   : > { %5753 = vmatmul.mubr.msk.bf16.vlgmr.msra.gmra.mxu0 %vm770_vm2, %v2338_v32  ;;  %v2334_v36 = vmul.f32 %v6241_v33, %v6233_v27  ;;  %v2770_v27 = vmul.f32 %v7246_v11, %v7246_v11 }
 0xaea   : > { %5764 = vmatprep.mubr.msk.bf16.mxu0 %vm6503_vm1, %v6502_v2 }
 0xaeb   : > { %v2339_v38 = vpack.c.bf16 %v2334_v36, %v2334_v36  ;;  %v2774_v29 = vsel %vm576_vm0, %v2770_v27, 0.0  ;;  %v2586_v36 = vsel %vm2585_vm5, %v2581_v37, %v6109_v9 }
 0xaed   : > { %5759 = vmatmul.mubr.msk.bf16.vlgmr.msra.gmra.mxu1 %vm770_vm2, %v2339_v38  ;;  %v2587_v38 = vsel %vm2585_vm5, %v2582_v26, %v6110_v8 }
 0xaee   : > { %5769 = vmatpush3.bf16.msra.mxu1 %v6158_v54 }
 0xaef   : > { %5770 = vmatprep.subr.bf16.mxu1 %v6159_v10 }
 0xaf2   : > { %5771 = vmatpush3.bf16.msra.mxu1 %v6159_v10 }
 0xb0f   : > { %v2328_v41 = vpop.xlane.xlu1 %2327 }
 0xb10   : > { %6242 = vrcp.f32 %v2328_v41 }
 0xb13   : > { %v2486_v42 = vpop.permute.xlu1 %2485 }
 0xb14   : > { %v2491_v44 = vsel %vm1018_vm4, %v2486_v42, 0 }
 0xb15   : > { %5763 = vmatpush3.bf16.msra.mxu0 %v2491_v44 }
 0xb1d   : > { %v6243_v46 = vpop.eup %6242 }
 0xb1e   : > { %v2336_v49 = vmul.f32 %v6243_v46, %v6235_v1  ;;  %v2780_v1 = vsel %vm576_vm0, %v2772_v31, 0.0  ;;  %v6103_v46 = vpop.permute.xlu1 %6102 }
 0xb1f   : > { %v6104_v5 = vunpack.i.l.bf16 %v6103_v46 }
 0xb20   : > { %v2340_v50 = vpack.c.bf16 %v2336_v49, %v2336_v49 }
 0xb22   : > { %5765 = vmatmul.mubr.msk.bf16.vlgmr.msra.gmra.mxu0 %vm770_vm2, %v2340_v50  ;;  %v6113_v49 = vpop.permute.xlu1 %6112  ;;  %v6105_v50 = vunpack.i.h.bf16 %v6103_v46 }
 0xb23   : > { %v6115_v54 = vunpack.i.h.bf16 %v6113_v49 }
 0xba5   : > { %v2383_v58 = vpop.f32.mrf.mxu1 }
 0xba7   : > { %v5748_v56 = vpop.f32.mrf.mxu1 }
 0xba8   : > { %v2584_v56 = vsel %vm770_vm2, %v7018_v15, %v6105_v50  ;;  %v6160_v15 = vld [vmem:[%s7962_s5 + $0x8] sm:$0xff]  }
 0xba9   : > { %v2386_v57 = vpop.f32.mrf.mxu1  ;;  %v2431_v21 = vpop.f32.mrf.mxu0  ;;  %5784 = vmatprep.subr.bf16.mxu1 %v6160_v15 }
 0xbaa   : > { %v6116_v61 = vpack.i.bf16 %v2431_v21, %v2383_v58  ;;  %v6114_v58 = vunpack.i.l.bf16 %v6113_v49  ;;  %v2583_v57 = vsel %vm770_vm2, %v7016_v12, %v6104_v5  ;;  %v6161_v12 = vld [vmem:[%s7962_s5] sm:$0xff]  }
 0xbab   : > { %v5749_v62 = vpop.f32.mrf.mxu1  ;;  %v5754_v63 = vpop.f32.mrf.mxu0 }
 0xbac   : > { %6117 = vrot.lane.b32.xlu0 %v6116_v61, %s6517_s21  ;;  %v2588_v62 = vsel %vm2585_vm5, %v2583_v57, %v6114_v58  ;;  %v2589_v63 = vsel %vm2585_vm5, %v2584_v56, %v6115_v54 }
 0xbad   : > { %v2434_v18 = vpop.f32.mrf.mxu0  ;;  %v2479_v59 = vpop.f32.mrf.mxu1 }
 0xbaf   : > { %v5755_v16 = vpop.f32.mrf.mxu0  ;;  %v5760_v0 = vpop.f32.mrf.mxu1 }
 0xbb1   : > { %v2482_v6 = vpop.f32.mrf.mxu1 }
 0xbb3   : > { %v5761_v7 = vpop.f32.mrf.mxu1 }
 0xbcb   : > { %2755 = vadd.xlane.f32.xlu0 %v2754_v28 }
 0xbcf   : > { %2761 = vadd.xlane.f32.xlu0 %v2760_v43 }
 0xbd3   : > { %2764 = vadd.xlane.f32.xlu0 %v2763_v17 }
 0xbd7   : > { %2775 = vadd.xlane.f32.xlu0 %v2774_v29 }
 0xbdb   : > { %2781 = vadd.xlane.f32.xlu0 %v2780_v1 }
 0xbe2   : > { %v2527_v23 = vpop.f32.mrf.mxu0 }
 0xbe3   : > { %v6121_v25 = vpack.i.bf16 %v2527_v23, %v2479_v59 }
 0xbe4   : > { %v5766_v47 = vpop.f32.mrf.mxu0 }
 0xbe5   : > { %6122 = vrot.lane.b32.xlu1 %v6121_v25, %s6517_s21 }
 0xbe6   : > { %v2530_v30 = vpop.f32.mrf.mxu0 }
 0xbe8   : > { %v5767_v45 = vpop.f32.mrf.mxu0 }
 0xc09   : > { %2758 = vadd.xlane.f32.xlu1 %v2757_v55 }
 0xc0d   : > { %2778 = vadd.xlane.f32.xlu1 %v2777_v39 }
 0xc11   : > { %2784 = vadd.xlane.f32.xlu1 %v2783_v4 }
 0xc1e   : > { %v6118_v13 = vpop.permute.xlu0 %6117 }
 0xc1f   : > { %v6120_v32 = vunpack.i.h.bf16 %v6118_v13  ;;  %v6119_v33 = vunpack.i.l.bf16 %v6118_v13 }
 0xc21   : > { %v2592_v41 = vsel %vm2590_vm6, %v2587_v38, %v6120_v32  ;;  %v2591_v42 = vsel %vm2590_vm6, %v2586_v36, %v6119_v33  ;;  %v464_v32 = vld [vmem:[%s7964_s7 + $0x18] sm:$0xff] }
 0xc22   : > { %v2595_v44 = vpack.c.bf16 %v2592_v41, %v2591_v42  ;;  %v7305_v33 = vrot.slane %v464_v32, %v6815_v51 }
 0xc24   : > { %5772 = vmatprep.mubr.msk.bf16.mxu1 %vm576_vm0, %v2595_v44  ;;  %v7310_v44 = vrot.slane %v464_v32, %v6804_v20 }
 0xc54   : > { %v2756_v0 = vpop.xlane.xlu0 %2755 }
 0xc55   : > { %v2766_v25 = vmul.f32 0.03125, %v2756_v0  ;;  %v6333_v0 = vld [vmem:[%s6766_s15 + $0x10] sm:$0xff] }
 0xc57   : > { %v6123_v22 = vpop.permute.xlu1 %6122  ;;  %v2790_v31 = vmul.f32 %v2766_v25, %v2766_v25  ;;  %v2798_v41 = vsub.f32 %v7246_v11, %v2766_v25 }
 0xc58   : > { %v6125_v21 = vunpack.i.h.bf16 %v6123_v22  ;;  %v6124_v61 = vunpack.i.l.bf16 %v6123_v22  ;;  %v2762_v28 = vpop.xlane.xlu0 %2761 }
 0xc59   : > { %v2768_v1 = vmul.f32 0.03125, %v2762_v28 }
 0xc5a   : > { %v2593_v18 = vsel %vm2590_vm6, %v2588_v62, %v6124_v61  ;;  %v2594_v59 = vsel %vm2590_vm6, %v2589_v63, %v6125_v21  ;;  %v2670_v63 = vsub.s32 3, %v6801_v19 }
 0xc5b   : > { %v2596_v16 = vpack.c.bf16 %v2594_v59, %v2593_v18  ;;  %v2792_v4 = vmul.f32 %v2768_v1, %v2768_v1  ;;  %v2800_v50 = vsub.f32 %v7248_v14, %v2768_v1  ;;  %v6332_v18 = vld [vmem:[%s7964_s7] sm:$0xff] }
 0xc5c   : > { %v2765_v17 = vpop.xlane.xlu0 %2764  ;;  %v2671_v59 = vrot.slane %v6332_v18, %v2670_v63 }
 0xc5d   : > { %5773 = vmatmul.mubr.msk.bf16.vlgmr.msra.gmra.mxu1 %vm576_vm0, %v2596_v16  ;;  %v2769_v30 = vmul.f32 0.03125, %v2765_v17 }
 0xc5e   : > { %5785 = vmatpush3.bf16.msra.mxu1 %v6160_v15 }
 0xc5f   : > { %5786 = vmatprep.subr.bf16.mxu1 %v6161_v12  ;;  %v2793_v55 = vmul.f32 %v2769_v30, %v2769_v30  ;;  %v2801_v36 = vsub.f32 %v7254_v24, %v2769_v30  ;;  %v6336_v30 = vld [vmem:[%s6766_s15 + $0x8] sm:$0xff] }
 0xc60   : > { %v2776_v34 = vpop.xlane.xlu0 %2775 }
 0xc61   : > { %v2786_v39 = vmul.f32 0.03125, %v2776_v34 }
 0xc62   : > { %5787 = vmatpush3.bf16.msra.mxu1 %v6161_v12 }
 0xc63   : > { %5798 = vmatprep.subr.bf16.mxu1 %v6502_v2  ;;  %v2794_v3 = vsub.f32 %v2786_v39, %v2790_v31 }
 0xc64   : > { %v2782_v52 = vpop.xlane.xlu0 %2781 }
 0xc65   : > { %v2802_v53 = vadd.f32 1e-05, %v2794_v3  ;;  %v2788_v8 = vmul.f32 0.03125, %v2782_v52 }
 0xc67   : > { %v2796_v9 = vsub.f32 %v2788_v8, %v2792_v4  ;;  %v6162_v8 = vld [vmem:[%s7963_s6 + $0x18] sm:$0xff]  }
 0xc68   : > { %5776 = vmatprep.subr.bf16.mxu0 %v6162_v8 }
 0xc69   : > { %v2804_v13 = vadd.f32 1e-05, %v2796_v9  ;;  %v6163_v9 = vld [vmem:[%s7963_s6 + $0x10] sm:$0xff]   ;;  %5777 = vmatpush3.bf16.msra.mxu0 %v6162_v8 }
 0xc6a   : > { %5778 = vmatprep.subr.bf16.mxu0 %v6163_v9 }
 0xc6d   : > { %5779 = vmatpush3.bf16.msra.mxu0 %v6163_v9 }
 0xc6e   : > { %5792 = vmatprep.subr.bf16.mxu0 %v6502_v2 }
 0xc92   : > { %v2759_v6 = vpop.xlane.xlu1 %2758 }
 0xc93   : > { %v2767_v7 = vmul.f32 0.03125, %v2759_v6 }
 0xc95   : > { %v2791_v10 = vmul.f32 %v2767_v7, %v2767_v7  ;;  %v2799_v26 = vsub.f32 %v7265_v60, %v2767_v7  ;;  %v6334_v7 = vld [vmem:[%s6766_s15] sm:$0xff] }
 0xc96   : > { %v2779_v43 = vpop.xlane.xlu1 %2778 }
 0xc97   : > { %v2787_v23 = vmul.f32 0.03125, %v2779_v43 }
 0xc99   : > { %v2795_v47 = vsub.f32 %v2787_v23, %v2791_v10  ;;  %v6335_v23 = vld [vmem:[%s6766_s15 + $0x18] sm:$0xff]  ;;  %s5301_s15 = sshll.u32 %s6736_s16, 5 }
 0xc9a   : > { %v2785_v27 = vpop.xlane.xlu1 %2784  ;;  %s436_s24 = scalar_lea.vmem [#allocation8], %s5301_s15 }
 0xc9b   : > { %v2803_v45 = vadd.f32 1e-05, %v2795_v47  ;;  %v2789_v29 = vmul.f32 0.03125, %v2785_v27  ;;  %s5158_s28 = sshll.u32 %s436_s24, 4  ;;  %s7906_s28 = int_to_ptr.vmem [resolvable:$true] %s5158_s28 }
 0xc9d   : > { %6244 = vrsqrt.f32 %v2803_v45  ;;  %v2797_v40 = vsub.f32 %v2789_v29, %v2793_v55 }
 0xc9f   : > { %v2805_v48 = vadd.f32 1e-05, %v2797_v40 }
 0xca1   : > { %6246 = vrsqrt.f32 %v2805_v48 }
 0xca2   : > { %6248 = vrsqrt.f32 %v2802_v53 }
 0xca3   : > { %6250 = vrsqrt.f32 %v2804_v13  ;;  %v7373_v13 = vld [vmem:[%s7964_s7 + $0x10] sm:$0xff] }
 0xca4   : > { %v7381_v32 = vrot.slane %v7373_v13, %v6804_v20 }
 0xcaa   : > { %v6245_v37 = vpop.eup %6244 }
 0xcab   : > { %v2811_v38 = vmul.f32 %v6245_v37, %v2799_v26 }
 0xcad   : > { %v2815_v60 = vmul.f32 %v2811_v38, %v7305_v33 }
 0xcae   : > { %v6247_v42 = vpop.eup %6246 }
 0xcaf   : > { %v2813_v46 = vmul.f32 %v6247_v42, %v2801_v36  ;;  %v6249_v49 = vpop.eup %6248  ;;  %v2819_v58 = vadd.f32 %v2815_v60, %v7310_v44 }
 0xcb0   : > { %v2810_v5 = vmul.f32 %v6249_v49, %v2798_v41  ;;  %v6251_v22 = vpop.eup %6250 }
 0xcb1   : > { %v2817_v24 = vmul.f32 %v2813_v46, %v7305_v33  ;;  %v2812_v11 = vmul.f32 %v6251_v22, %v2800_v50 }
 0xcb2   : > { %v2814_v54 = vmul.f32 %v2810_v5, %v7305_v33 }
 0xcb3   : > { %v2816_v21 = vmul.f32 %v2812_v11, %v7305_v33  ;;  %v2821_v61 = vadd.f32 %v2817_v24, %v7310_v44 }
 0xcb4   : > { %v2818_v56 = vadd.f32 %v2814_v54, %v7310_v44 }
 0xcb5   : > { %v2820_v14 = vadd.f32 %v2816_v21, %v7310_v44 }
 0xcb6   : > { %v2822_v57 = vpack.c.bf16 %v2819_v58, %v2818_v56 }
 0xcb7   : > { %v2823_v62 = vpack.c.bf16 %v2821_v61, %v2820_v14 }
 0xcb8   : > { %5788 = vmatprep.mubr.msk.bf16.mxu1 %vm576_vm0, %v2822_v57 }
 0xcb9   : > { %5789 = vmatmul.mubr.msk.bf16.vlgmr.msra.gmra.mxu1 %vm576_vm0, %v2823_v62 }
 0xcba   : > { %5800 = vmatprep.mubr.msk.bf16.mxu1 %vm6503_vm1, %v6502_v2 }
 0xd1d   : > { %v5774_v16 = vpop.f32.mrf.mxu1 }
 0xd1e   : > { %v2666_v6 = vadd.f32 %v6333_v0, %v5774_v16 }
 0xd1f   : > { %v2649_v15 = vpop.f32.mrf.mxu1 }
 0xd20   : > { %v7332_v12 = vadd.f32 %v2671_v59, %v2666_v6  ;;  %v2664_v10 = vadd.f32 %v6334_v7, %v2649_v15 }
 0xd21   : > { %v5775_v28 = vpop.f32.mrf.mxu1 }
 0xd22   : > { %v7335_v43 = vadd.f32 %v2671_v59, %v2664_v10  ;;  %v2667_v25 = vadd.f32 %v6335_v23, %v5775_v28  ;;  %v2682_v47 = vsel %vm576_vm0, %v7332_v12, 0.0  ;;  %v2694_v4 = vmul.f32 %v7332_v12, %v7332_v12 }
 0xd23   : > { %v2652_v17 = vpop.f32.mrf.mxu1  ;;  %2683 = vadd.xlane.f32.xlu0 %v2682_v47 }
 0xd24   : > { %v7340_v27 = vadd.f32 %v2671_v59, %v2667_v25  ;;  %v2665_v45 = vadd.f32 %v6336_v30, %v2652_v17  ;;  %v2676_v1 = vsel %vm576_vm0, %v7335_v43, 0.0  ;;  %v2692_v55 = vmul.f32 %v7335_v43, %v7335_v43 }
 0xd25   : > { %v2702_v48 = vsel %vm576_vm0, %v2694_v4, 0.0 }
 0xd26   : > { %v7343_v29 = vadd.f32 %v2671_v59, %v2665_v45  ;;  %v2685_v31 = vsel %vm576_vm0, %v7340_v27, 0.0  ;;  %v2696_v39 = vsel %vm576_vm0, %v2692_v55, 0.0  ;;  %v2695_v52 = vmul.f32 %v7340_v27, %v7340_v27 }
 0xd27   : > { %2686 = vadd.xlane.f32.xlu1 %v2685_v31  ;;  %2677 = vadd.xlane.f32.xlu0 %v2676_v1 }
 0xd28   : > { %v2679_v34 = vsel %vm576_vm0, %v7343_v29, 0.0  ;;  %v2693_v40 = vmul.f32 %v7343_v29, %v7343_v29  ;;  %v2705_v53 = vsel %vm576_vm0, %v2695_v52, 0.0 }
 0xd2a   : > { %v2699_v3 = vsel %vm576_vm0, %v2693_v40, 0.0 }
 0xd2b   : > { %2680 = vadd.xlane.f32.xlu1 %v2679_v34  ;;  %2697 = vadd.xlane.f32.xlu0 %v2696_v39 }
 0xd2f   : > { %2700 = vadd.xlane.f32.xlu1 %v2699_v3  ;;  %2703 = vadd.xlane.f32.xlu0 %v2702_v48 }
 0xd33   : > { %2706 = vadd.xlane.f32.xlu1 %v2705_v53 }
 0xd79   : > { %v7375_v26 = vpop.f32.mrf.mxu1 }
 0xd7b   : > { %v7377_v37 = vpop.f32.mrf.mxu1 }
 0xd7c   : > { %v2966_v53 = vadd.f32 %v7381_v32, %v7377_v37 }
 0xd7d   : > { %v7383_v36 = vpop.f32.mrf.mxu1 }
 0xd7f   : > { %v7385_v38 = vpop.f32.mrf.mxu1 }
 0xd80   : > { %v2967_v41 = vadd.f32 %v7381_v32, %v7385_v38 }
 0xd82   : > { %v7389_v42 = vpack.c.bf16 %v2967_v41, %v2967_v41 }
 0xd84   : > { %v3044_v46 = vsel %vm770_vm2, %v7389_v42, 0 }
 0xd85   : > { %5799 = vmatpush3.bf16.xpose.msra.mxu1 %v3044_v46 }
 0xd86   : > { %5810 = vmatprep.subr.bf16.mxu1 %v6502_v2 }
 0xdac   : > { %v2684_v60 = vpop.xlane.xlu0 %2683 }
 0xdad   : > { %v2690_v54 = vmul.f32 0.03125, %v2684_v60 }
 0xdaf   : > { %v2714_v21 = vmul.f32 %v2690_v54, %v2690_v54  ;;  %v2722_v34 = vsub.f32 %v7332_v12, %v2690_v54 }
 0xdb0   : > { %v2687_v49 = vpop.xlane.xlu1 %2686  ;;  %v2678_v50 = vpop.xlane.xlu0 %2677 }
 0xdb1   : > { %v2688_v5 = vmul.f32 0.03125, %v2678_v50  ;;  %v2691_v61 = vmul.f32 0.03125, %v2687_v49 }
 0xdb3   : > { %v2712_v22 = vmul.f32 %v2688_v5, %v2688_v5  ;;  %v2715_v10 = vmul.f32 %v2691_v61, %v2691_v61  ;;  %v2720_v30 = vsub.f32 %v7335_v43, %v2688_v5  ;;  %v2723_v48 = vsub.f32 %v7340_v27, %v2691_v61 }
 0xdb4   : > { %v2681_v58 = vpop.xlane.xlu1 %2680  ;;  %v2698_v24 = vpop.xlane.xlu0 %2697  ;;  %v7406_v5 = vpack.c.bf16 %v2966_v53, %v2966_v53 }
 0xdb5   : > { %v2689_v11 = vmul.f32 0.03125, %v2681_v58  ;;  %v2708_v56 = vmul.f32 0.03125, %v2698_v24 }
 0xdb7   : > { %v2716_v57 = vsub.f32 %v2708_v56, %v2712_v22  ;;  %v2713_v18 = vmul.f32 %v2689_v11, %v2689_v11  ;;  %v2721_v1 = vsub.f32 %v7343_v29, %v2689_v11  ;;  %v2998_v22 = vsel %vm770_vm2, %v7406_v5, 0 }
 0xdb8   : > { %v2701_v14 = vpop.xlane.xlu1 %2700  ;;  %v2704_v62 = vpop.xlane.xlu0 %2703  ;;  %v2827_v56 = vrot.slane %v7373_v13, %v6815_v51 }
 0xdb9   : > { %v2724_v59 = vadd.f32 1e-05, %v2716_v57  ;;  %v2709_v16 = vmul.f32 0.03125, %v2701_v14  ;;  %v2710_v0 = vmul.f32 0.03125, %v2704_v62 }
 0xdbb   : > { %6252 = vrsqrt.f32 %v2724_v59  ;;  %v2717_v6 = vsub.f32 %v2709_v16, %v2713_v18  ;;  %v2718_v15 = vsub.f32 %v2710_v0, %v2714_v21  ;;  %v2969_v21 = vadd.f32 %v7383_v36, %v7381_v32 }
 0xdbc   : > { %v2707_v7 = vpop.xlane.xlu1 %2706 }
 0xdbd   : > { %v2725_v28 = vadd.f32 1e-05, %v2717_v6  ;;  %v2726_v23 = vadd.f32 1e-05, %v2718_v15  ;;  %v2711_v25 = vmul.f32 0.03125, %v2707_v7  ;;  %v7427_v59 = vpack.c.bf16 %v2969_v21, %v2969_v21 }
 0xdbf   : > { %6254 = vrsqrt.f32 %v2725_v28  ;;  %v2719_v47 = vsub.f32 %v2711_v25, %v2715_v10  ;;  %v3136_v15 = vsel %vm770_vm2, %v7427_v59, 0 }
 0xdc0   : > { %6256 = vrsqrt.f32 %v2726_v23  ;;  %v544_v23 = vld [vmem:[%s6740_s26] sm:$0x1] }
 0xdc1   : > { %v2727_v17 = vadd.f32 1e-05, %v2719_v47  ;;  %v548_v25 = vmul.f32 -1e+30, %v544_v23  ;;  %v545_v47 = vld [vmem:[%s6740_s26 + $0x1] sm:$0x1] }
 0xdc3   : > { %6258 = vrsqrt.f32 %v2727_v17  ;;  %v7460_v17 = vrot.slane %v548_v25, %v6815_v51 }
 0xdc8   : > { %v6253_v45 = vpop.eup %6252 }
 0xdc9   : > { %v2732_v31 = vmul.f32 %v6253_v45, %v2720_v30  ;;  %v549_v30 = vmul.f32 -1e+30, %v545_v47  ;;  %v546_v45 = vld [vmem:[%s6740_s26 + $0x2] sm:$0x1] }
 0xdcb   : > { %v2740_v4 = vmul.f32 %v7305_v33, %v2732_v31 }
 0xdcc   : > { %v6255_v55 = vpop.eup %6254 }
 0xdcd   : > { %v6257_v39 = vpop.eup %6256  ;;  %v2733_v40 = vmul.f32 %v6255_v55, %v2721_v1  ;;  %v2748_v41 = vadd.f32 %v7310_v44, %v2740_v4  ;;  %v7465_v55 = vrot.slane %v549_v30, %v6815_v51 }
 0xdce   : > { %v2734_v3 = vmul.f32 %v6257_v39, %v2722_v34  ;;  %v550_v34 = vmul.f32 -1e+30, %v546_v45 }
 0xdcf   : > { %v2741_v52 = vmul.f32 %v7305_v33, %v2733_v40  ;;  %v547_v40 = vld [vmem:[%s6740_s26 + $0x3] sm:$0x1]  ;;  %s8000_s26 = smov 72  }
 0xdd0   : > { %v6259_v8 = vpop.eup %6258  ;;  %v2742_v60 = vmul.f32 %v7305_v33, %v2734_v3  ;;  %v7471_v53 = vrot.slane %v550_v34, %v6815_v51 }
 0xdd1   : > { %v2735_v9 = vmul.f32 %v6259_v8, %v2723_v48  ;;  %v2749_v46 = vadd.f32 %v7310_v44, %v2741_v52  ;;  %v551_v8 = vmul.f32 -1e+30, %v547_v40 }
 0xdd2   : > { %v2750_v54 = vadd.f32 %v7310_v44, %v2742_v60 }
 0xdd3   : > { %v2752_v49 = vpack.c.bf16 %v2749_v46, %v2748_v41  ;;  %v2743_v50 = vmul.f32 %v7305_v33, %v2735_v9  ;;  %v2968_v33 = vadd.f32 %v7375_v26, %v7381_v32 }
 0xdd5   : > { %5780 = vmatprep.mubr.msk.bf16.mxu0 %vm576_vm0, %v2752_v49  ;;  %v2751_v58 = vadd.f32 %v7310_v44, %v2743_v50  ;;  %v7421_v57 = vpack.c.bf16 %v2968_v33, %v2968_v33 }
 0xdd7   : > { %v2753_v24 = vpack.c.bf16 %v2751_v58, %v2750_v54  ;;  %v3090_v0 = vsel %vm770_vm2, %v7421_v57, 0  ;;  %v7476_v54 = vrot.slane %v551_v8, %v6815_v51 }
 0xdd9   : > { %5781 = vmatmul.mubr.msk.bf16.vlgmr.msra.gmra.mxu0 %vm576_vm0, %v2753_v24 }
 0xdda   : > { %5793 = vmatpush3.bf16.xpose.msra.mxu0 %v2998_v22  ;;  %5794 = vmatprep.mubr.msk.bf16.mxu0 %vm6503_vm1, %v6502_v2 }
 0xddb   : > { %5804 = vmatprep.subr.bf16.mxu0 %v6502_v2 }
 0xe99   : > { %v5782_v11 = vpop.f32.mrf.mxu0 }
 0xe9a   : > { %v2889_v32 = vadd.f32 %v5782_v11, %v2827_v56 }
 0xe9b   : > { %v2880_v44 = vpop.f32.mrf.mxu0 }
 0xe9c   : > { %v2881_v61 = vadd.f32 %v2880_v44, %v2827_v56  ;;  %v7444_v7 = vpack.c.bf16 %v2889_v32, %v2889_v32 }
 0xe9d   : > { %v5783_v14 = vpop.f32.mrf.mxu0 }
 0xe9e   : > { %v7425_v62 = vpack.c.bf16 %v2881_v61, %v2881_v61  ;;  %v2892_v10 = vadd.f32 %v5783_v14, %v2827_v56 }
 0xe9f   : > { %v2883_v18 = vpop.f32.mrf.mxu0 }
 0xea0   : > { %v2884_v16 = vadd.f32 %v2883_v18, %v2827_v56  ;;  %5795 = vmatmul.mubr.msk.bf16.vlgmr.msra.gmra.mxu0 %vm770_vm2, %v7425_v62  ;;  %v7451_v28 = vpack.c.bf16 %v2892_v10, %v2892_v10 }
 0xea1   : > { %5805 = vmatpush3.bf16.xpose.msra.mxu0 %v3090_v0  ;;  %5806 = vmatprep.mubr.msk.bf16.mxu0 %vm6503_vm1, %v6502_v2 }
 0xea2   : > { %v7435_v6 = vpack.c.bf16 %v2884_v16, %v2884_v16  ;;  %5816 = vmatprep.subr.bf16.mxu0 %v6502_v2  ;;  %v2973_v16 = vrot.slane %v7373_v13, %v745_v35 }
 0xea4   : > { %5801 = vmatmul.mubr.msk.bf16.vlgmr.msra.gmra.mxu1 %vm770_vm2, %v7435_v6 }
 0xea5   : > { %5811 = vmatpush3.bf16.xpose.msra.mxu1 %v3136_v15  ;;  %5812 = vmatprep.mubr.msk.bf16.mxu1 %vm6503_vm1, %v6502_v2 }
 0xea6   : > { %5822 = vmatprep.subr.bf16.mxu1 %v6502_v2 }
 0xea8   : > { %5807 = vmatmul.mubr.msk.bf16.vlgmr.msra.gmra.mxu0 %vm770_vm2, %v7444_v7 }
 0xea9   : > { %5818 = vmatprep.mubr.msk.bf16.mxu0 %vm6503_vm1, %v6502_v2 }
 0xeac   : > { %5813 = vmatmul.mubr.msk.bf16.vlgmr.msra.gmra.mxu1 %vm770_vm2, %v7451_v28 }
 0xead   : > { %5824 = vmatprep.mubr.msk.bf16.mxu1 %vm6503_vm1, %v6502_v2 }
 0xf60   : > { %v3034_v31 = vpop.f32.mrf.mxu0 }
 0xf61   : > { %v3035_v1 = vadd.f32 %v3034_v31, %v7460_v17 }
 0xf62   : > { %v5796_v39 = vpop.f32.mrf.mxu0 }
 0xf63   : > { %v3178_v4 = vsel %vm770_vm2, %v3035_v1, -inf }
 0xf64   : > { %v3080_v3 = vpop.f32.mrf.mxu1  ;;  %3179 = vmax.xlane.f32.xlu0 %v3178_v4  ;;  %v3037_v48 = vpop.f32.mrf.mxu0 }
 0xf65   : > { %v3081_v52 = vadd.f32 %v3080_v3, %v7465_v55 }
 0xf66   : > { %v5797_v9 = vpop.f32.mrf.mxu0  ;;  %v5802_v41 = vpop.f32.mrf.mxu1 }
 0xf67   : > { %v3181_v46 = vsel %vm770_vm2, %v3081_v52, -inf }
 0xf68   : > { %3182 = vmax.xlane.f32.xlu1 %v3181_v46  ;;  %v3083_v60 = vpop.f32.mrf.mxu1  ;;  %v3126_v49 = vpop.f32.mrf.mxu0 }
 0xf69   : > { %v3127_v50 = vadd.f32 %v3126_v49, %v7471_v53 }
 0xf6a   : > { %v5803_v58 = vpop.f32.mrf.mxu1  ;;  %v5808_v24 = vpop.f32.mrf.mxu0 }
 0xf6b   : > { %v3184_v22 = vsel %vm770_vm2, %v3127_v50, -inf }
 0xf6c   : > { %v3172_v33 = vpop.f32.mrf.mxu1  ;;  %3185 = vmax.xlane.f32.xlu0 %v3184_v22  ;;  %v3129_v11 = vpop.f32.mrf.mxu0 }
 0xf6d   : > { %v3173_v56 = vadd.f32 %v3172_v33, %v7476_v54 }
 0xf6e   : > { %v5809_v44 = vpop.f32.mrf.mxu0  ;;  %v5814_v21 = vpop.f32.mrf.mxu1 }
 0xf6f   : > { %v3187_v61 = vsel %vm770_vm2, %v3173_v56, -inf }
 0xf70   : > { %3188 = vmax.xlane.f32.xlu1 %v3187_v61  ;;  %v3175_v14 = vpop.f32.mrf.mxu1 }
 0xf72   : > { %v5815_v18 = vpop.f32.mrf.mxu1 }
 0xf82   : > { %2975 = vrot.lane.b32.xlu0 %v2973_v16, %s6501_s2  ;;  %s8001_s2 = smov 8  }
 0xfed   : > { %v3180_v0 = vpop.xlane.xlu0 %3179 }
 0xff5   : > { %v3186_v32 = vpop.xlane.xlu0 %3185 }
 0xff6   : > { %v3192_v34 = vsub.f32 %v3127_v50, %v3186_v32 }
 0xff8   : > { %v3198_v40 = vmul.f32 1.442695, %v3192_v34 }
 0xff9   : > { %v2976_v15 = vpop.permute.xlu0 %2975 }
 0xffa   : > { %v2978_v10 = vadd.f32 %v2976_v15, %v7377_v37  ;;  %v2979_v23 = vadd.f32 %v2976_v15, %v7385_v38  ;;  %v2980_v25 = vadd.f32 %v7375_v26, %v2976_v15  ;;  %v2981_v35 = vadd.f32 %v7383_v36, %v2976_v15  ;;  %v3183_v38 = vpop.xlane.xlu1 %3182 }
 0xffb   : > { %v3190_v37 = vsub.f32 %v3035_v1, %v3180_v0  ;;  %v3191_v45 = vsub.f32 %v3081_v52, %v3183_v38 }
 0xffc   : > { %v7488_v47 = vpack.c.bf16 %v2978_v10, %v2978_v10  ;;  %v7490_v30 = vpack.c.bf16 %v2979_v23, %v2979_v23  ;;  %v7497_v13 = vpack.c.bf16 %v2980_v25, %v2980_v25  ;;  %v7503_v26 = vpack.c.bf16 %v2981_v35, %v2981_v35 }
 0xffd   : > { %v3194_v36 = vmul.f32 1.442695, %v3190_v37  ;;  %v3196_v31 = vmul.f32 1.442695, %v3191_v45 }
 0xffe   : > { %3276 = vrot.lane.b32.xlu0 %v7490_v30, %s6504_s20  ;;  %3227 = vrot.lane.b32.xlu1 %v7488_v47, %s6504_s20  ;;  %v3189_v39 = vpop.xlane.xlu1 %3188 }
 0xfff   : > { %6260 = vpow2.f32 %v3194_v36  ;;  %v3193_v4 = vsub.f32 %v3173_v56, %v3189_v39 }
0x1000   : > { %6262 = vpow2.f32 %v3196_v31 }
0x1001   : > { %6264 = vpow2.f32 %v3198_v40  ;;  %v3200_v1 = vmul.f32 1.442695, %v3193_v4 }
0x1002   : > { %3325 = vrot.lane.b32.xlu0 %v7497_v13, %s6504_s20  ;;  %3426 = vrot.lane.b32.xlu1 %v7406_v5, %s6507_s11 }
0x1003   : > { %6266 = vpow2.f32 %v3200_v1 }
0x1006   : > { %3374 = vrot.lane.b32.xlu0 %v7503_v26, %s6504_s20  ;;  %s8002_s20 = smov 16  }
0x100a   : > { %3478 = vrot.lane.b32.xlu0 %v7389_v42, %s6507_s11 }
0x100c   : > { %v6261_v3 = vpop.eup %6260 }
0x100d   : > { %v3202_v48 = vsel %vm770_vm2, %v6261_v3, 0.0  ;;  %v6263_v52 = vpop.eup %6262 }
0x100e   : > { %3475 = vrot.lane.b32.xlu0 %v7435_v6, %s6507_s11  ;;  %v3205_v8 = vsel %vm770_vm2, %v6263_v52, 0.0  ;;  %v6265_v9 = vpop.eup %6264 }
0x100f   : > { %v3208_v41 = vsel %vm770_vm2, %v6265_v9, 0.0 }
0x1010   : > { %v6267_v46 = vpop.eup %6266 }
0x1011   : > { %v3211_v60 = vsel %vm770_vm2, %v6267_v46, 0.0 }
0x1012   : > { %3582 = vrot.lane.b32.xlu0 %v7427_v59, %s6507_s11 }
0x1016   : > { %3579 = vrot.lane.b32.xlu0 %v7451_v28, %s6507_s11 }
0x1026   : > { %3203 = vadd.xlane.f32.xlu1 %v3202_v48 }
0x102a   : > { %3206 = vadd.xlane.f32.xlu1 %v3205_v8 }
0x102e   : > { %3209 = vadd.xlane.f32.xlu1 %v3208_v41 }
0x1032   : > { %3212 = vadd.xlane.f32.xlu1 %v3211_v60 }
0x1043   : > { %3423 = vrot.lane.b32.xlu1 %v7425_v62, %s6507_s11 }
0x1047   : > { %3530 = vrot.lane.b32.xlu1 %v7421_v57, %s6507_s11 }
0x104b   : > { %3527 = vrot.lane.b32.xlu1 %v7444_v7, %s6507_s11 }
0x1070   : > { %v3277_v49 = vpop.permute.xlu0 %3276  ;;  %v3228_v50 = vpop.permute.xlu1 %3227 }
0x1071   : > { %v3282_v58 = vsel %vm1018_vm4, %v3277_v49, 0  ;;  %v3233_v24 = vsel %vm1018_vm4, %v3228_v50, 0 }
0x1072   : > { %5817 = vmatpush3.bf16.msra.mxu0 %v3233_v24  ;;  %5823 = vmatpush3.bf16.msra.mxu1 %v3282_v58 }
0x1073   : > { %5828 = vmatprep.subr.bf16.mxu0 %v6502_v2  ;;  %5834 = vmatprep.subr.bf16.mxu1 %v6502_v2 }
0x1074   : > { %v3427_v22 = vpop.permute.xlu1 %3426  ;;  %v3326_v44 = vpop.permute.xlu0 %3325 }
0x1075   : > { %v3331_v32 = vsel %vm1018_vm4, %v3326_v44, 0  ;;  %v3432_v31 = vsel %vm770_vm2, %v3427_v22, 0 }
0x1078   : > { %v3375_v0 = vpop.permute.xlu0 %3374 }
0x1079   : > { %v3380_v25 = vsel %vm1018_vm4, %v3375_v0, 0 }
0x107c   : > { %v3479_v37 = vpop.permute.xlu0 %3478 }
0x107d   : > { %v3484_v4 = vsel %vm770_vm2, %v3479_v37, 0 }
0x1080   : > { %v3476_v40 = vpop.permute.xlu0 %3475 }
0x1084   : > { %v3583_v48 = vpop.permute.xlu0 %3582 }
0x10af   : > { %v3204_v33 = vpop.xlane.xlu1 %3203 }
0x10b0   : > { %6268 = vrcp.f32 %v3204_v33 }
0x10b3   : > { %v3207_v11 = vpop.xlane.xlu1 %3206 }
0x10b4   : > { %6270 = vrcp.f32 %v3207_v11 }
0x10b7   : > { %v3210_v56 = vpop.xlane.xlu1 %3209 }
0x10b8   : > { %6272 = vrcp.f32 %v3210_v56 }
0x10bb   : > { %v3213_v21 = vpop.xlane.xlu1 %3212 }
0x10bc   : > { %6274 = vrcp.f32 %v3213_v21 }
0x10bd   : > { %v6269_v61 = vpop.eup %6268 }
0x10be   : > { %v3215_v14 = vmul.f32 %v6269_v61, %v6261_v3 }
0x10bf   : > { %v3424_v45 = vpop.permute.xlu1 %3423 }
0x10c0   : > { %v3222_v18 = vpack.c.bf16 %v3215_v14, %v3215_v14 }
0x10c1   : > { %v6271_v16 = vpop.eup %6270 }
0x10c2   : > { %5819 = vmatmul.mubr.msk.bf16.vlgmr.msra.gmra.mxu0 %vm770_vm2, %v3222_v18  ;;  %v3217_v15 = vmul.f32 %v6271_v16, %v6263_v52  ;;  %v3588_v52 = vsel %vm770_vm2, %v3583_v48, 0 }
0x10c3   : > { %5829 = vmatpush3.bf16.msra.mxu0 %v3331_v32  ;;  %5830 = vmatprep.mubr.msk.bf16.mxu0 %vm6503_vm1, %v6502_v2  ;;  %v3531_v1 = vpop.permute.xlu1 %3530 }
0x10c4   : > { %v3223_v10 = vpack.c.bf16 %v3217_v15, %v3217_v15  ;;  %5840 = vmatprep.subr.bf16.mxu0 %v6502_v2  ;;  %v3536_v3 = vsel %vm770_vm2, %v3531_v1, 0 }
0x10c5   : > { %v6273_v23 = vpop.eup %6272 }
0x10c6   : > { %5825 = vmatmul.mubr.msk.bf16.vlgmr.msra.gmra.mxu1 %vm770_vm2, %v3223_v10  ;;  %v3219_v35 = vmul.f32 %v6273_v23, %v6265_v9  ;;  %v3580_v9 = vpop.permute.xlu0 %3579 }
0x10c7   : > { %5835 = vmatpush3.bf16.msra.mxu1 %v3380_v25  ;;  %5836 = vmatprep.mubr.msk.bf16.mxu1 %vm6503_vm1, %v6502_v2  ;;  %v3528_v8 = vpop.permute.xlu1 %3527 }
0x10c8   : > { %v3224_v38 = vpack.c.bf16 %v3219_v35, %v3219_v35  ;;  %5846 = vmatprep.subr.bf16.mxu1 %v6502_v2 }
0x10c9   : > { %v6275_v36 = vpop.eup %6274 }
0x10ca   : > { %5831 = vmatmul.mubr.msk.bf16.vlgmr.msra.gmra.mxu0 %vm770_vm2, %v3224_v38  ;;  %v3221_v34 = vmul.f32 %v6275_v36, %v6267_v46 }
0x10cb   : > { %5841 = vmatpush3.bf16.xpose.msra.mxu0 %v3432_v31  ;;  %5842 = vmatprep.mubr.msk.bf16.mxu0 %vm6503_vm1, %v6502_v2 }
0x10cc   : > { %v3225_v39 = vpack.c.bf16 %v3221_v34, %v3221_v34  ;;  %5852 = vmatprep.subr.bf16.mxu0 %v6502_v2 }
0x10ce   : > { %5837 = vmatmul.mubr.msk.bf16.vlgmr.msra.gmra.mxu1 %vm770_vm2, %v3225_v39 }
0x10cf   : > { %5847 = vmatpush3.bf16.xpose.msra.mxu1 %v3484_v4  ;;  %5848 = vmatprep.mubr.msk.bf16.mxu1 %vm6503_vm1, %v6502_v2 }
0x10d0   : > { %5858 = vmatprep.subr.bf16.mxu1 %v6502_v2 }
0x10d2   : > { %5843 = vmatmul.mubr.msk.bf16.vlgmr.msra.gmra.mxu0 %vm770_vm2, %v3424_v45 }
0x10d3   : > { %5853 = vmatpush3.bf16.xpose.msra.mxu0 %v3536_v3  ;;  %5854 = vmatprep.mubr.msk.bf16.mxu0 %vm6503_vm1, %v6502_v2 }
0x10d4   : > { %5864 = vmatprep.subr.bf16.mxu0 %v6502_v2 }
0x10d6   : > { %5849 = vmatmul.mubr.msk.bf16.vlgmr.msra.gmra.mxu1 %vm770_vm2, %v3476_v40 }
0x10d7   : > { %5859 = vmatpush3.bf16.xpose.msra.mxu1 %v3588_v52  ;;  %5860 = vmatprep.mubr.msk.bf16.mxu1 %vm6503_vm1, %v6502_v2 }
0x10d8   : > { %5870 = vmatprep.subr.bf16.mxu1 %v6502_v2 }
0x10da   : > { %5855 = vmatmul.mubr.msk.bf16.vlgmr.msra.gmra.mxu0 %vm770_vm2, %v3528_v8 }
0x10db   : > { %5866 = vmatprep.mubr.msk.bf16.mxu0 %vm6503_vm1, %v6502_v2 }
0x10de   : > { %5861 = vmatmul.mubr.msk.bf16.vlgmr.msra.gmra.mxu1 %vm770_vm2, %v3580_v9 }
0x10df   : > { %5872 = vmatprep.mubr.msk.bf16.mxu1 %vm6503_vm1, %v6502_v2 }
0x1182   : > { %v7565_v41 = vpop.f32.mrf.mxu0 }
0x1184   : > { %v5820_v46 = vpop.f32.mrf.mxu0 }
0x1186   : > { %v3272_v60 = vpop.f32.mrf.mxu0  ;;  %v7567_v49 = vpop.f32.mrf.mxu1 }
0x1188   : > { %v5821_v50 = vpop.f32.mrf.mxu0  ;;  %v5826_v58 = vpop.f32.mrf.mxu1 }
0x118a   : > { %v3321_v24 = vpop.f32.mrf.mxu1  ;;  %v7569_v22 = vpop.f32.mrf.mxu0 }
0x118c   : > { %v5827_v33 = vpop.f32.mrf.mxu1  ;;  %v5832_v11 = vpop.f32.mrf.mxu0 }
0x118e   : > { %v3370_v56 = vpop.f32.mrf.mxu0  ;;  %v7571_v44 = vpop.f32.mrf.mxu1 }
0x1190   : > { %v5833_v21 = vpop.f32.mrf.mxu0  ;;  %v5838_v61 = vpop.f32.mrf.mxu1 }
0x1192   : > { %v3419_v14 = vpop.f32.mrf.mxu1  ;;  %v3468_v18 = vpop.f32.mrf.mxu0 }
0x1193   : > { %v3469_v16 = vadd.f32 %v3468_v18, %v7460_v17 }
0x1194   : > { %v5839_v0 = vpop.f32.mrf.mxu1  ;;  %v5844_v32 = vpop.f32.mrf.mxu0 }
0x1195   : > { %v3630_v15 = vsel %vm770_vm2, %v3469_v16, -inf }
0x1196   : > { %v3520_v10 = vpop.f32.mrf.mxu1  ;;  %3631 = vmax.xlane.f32.xlu1 %v3630_v15  ;;  %v3471_v23 = vpop.f32.mrf.mxu0 }
0x1197   : > { %v3521_v25 = vadd.f32 %v3520_v10, %v7465_v55 }
0x1198   : > { %v5845_v35 = vpop.f32.mrf.mxu0  ;;  %v5850_v37 = vpop.f32.mrf.mxu1 }
0x1199   : > { %v3633_v38 = vsel %vm770_vm2, %v3521_v25, -inf }
0x119a   : > { %3634 = vmax.xlane.f32.xlu0 %v3633_v38  ;;  %v3523_v36 = vpop.f32.mrf.mxu1  ;;  %v3572_v45 = vpop.f32.mrf.mxu0 }
0x119b   : > { %v3573_v31 = vadd.f32 %v3572_v45, %v7471_v53 }
0x119c   : > { %v5851_v34 = vpop.f32.mrf.mxu1  ;;  %v5856_v39 = vpop.f32.mrf.mxu0 }
0x119d   : > { %v3636_v40 = vsel %vm770_vm2, %v3573_v31, -inf }
0x119e   : > { %v3624_v4 = vpop.f32.mrf.mxu1  ;;  %3637 = vmax.xlane.f32.xlu0 %v3636_v40  ;;  %v3575_v1 = vpop.f32.mrf.mxu0 }
0x119f   : > { %v3625_v3 = vadd.f32 %v3624_v4, %v7476_v54 }
0x11a0   : > { %v5857_v48 = vpop.f32.mrf.mxu0  ;;  %v5862_v52 = vpop.f32.mrf.mxu1 }
0x11a1   : > { %v3639_v8 = vsel %vm770_vm2, %v3625_v3, -inf }
0x11a2   : > { %v3627_v9 = vpop.f32.mrf.mxu1  ;;  %3640 = vmax.xlane.f32.xlu0 %v3639_v8 }
0x11a4   : > { %v5863_v46 = vpop.f32.mrf.mxu1 }
0x11a7   : > { %3678 = vrot.lane.b32.xlu1 %v7488_v47, %s6506_s23 }
0x121f   : > { %v3632_v60 = vpop.xlane.xlu1 %3631 }
0x1220   : > { %v3642_v50 = vsub.f32 %v3469_v16, %v3632_v60 }
0x1222   : > { %v3646_v58 = vmul.f32 1.442695, %v3642_v50 }
0x1223   : > { %v3635_v24 = vpop.xlane.xlu0 %3634  ;;  %v3679_v33 = vpop.permute.xlu1 %3678 }
0x1224   : > { %6276 = vpow2.f32 %v3646_v58  ;;  %v3643_v11 = vsub.f32 %v3521_v25, %v3635_v24  ;;  %v3684_v56 = vsel %vm1018_vm4, %v3679_v33, 0 }
0x1225   : > { %5865 = vmatpush3.bf16.msra.mxu0 %v3684_v56 }
0x1226   : > { %v3648_v21 = vmul.f32 1.442695, %v3643_v11  ;;  %5876 = vmatprep.subr.bf16.mxu0 %v6502_v2 }
0x1227   : > { %v3638_v16 = vpop.xlane.xlu0 %3637 }
0x1228   : > { %6278 = vpow2.f32 %v3648_v21  ;;  %v3644_v10 = vsub.f32 %v3573_v31, %v3638_v16 }
0x122a   : > { %v3650_v25 = vmul.f32 1.442695, %v3644_v10 }
0x122b   : > { %v3641_v32 = vpop.xlane.xlu0 %3640 }
0x122c   : > { %v3645_v15 = vsub.f32 %v3625_v3, %v3641_v32 }
0x122e   : > { %v3652_v23 = vmul.f32 1.442695, %v3645_v15 }
0x1230   : > { %6280 = vpow2.f32 %v3652_v23 }
0x1231   : > { %v6277_v61 = vpop.eup %6276  ;;  %6282 = vpow2.f32 %v3650_v25 }
0x1232   : > { %v3654_v14 = vsel %vm770_vm2, %v6277_v61, 0.0 }
0x1233   : > { %3655 = vadd.xlane.f32.xlu1 %v3654_v14 }
0x1235   : > { %v6279_v18 = vpop.eup %6278 }
0x1236   : > { %v3657_v0 = vsel %vm770_vm2, %v6279_v18, 0.0 }
0x1237   : > { %3658 = vadd.xlane.f32.xlu0 %v3657_v0 }
0x123d   : > { %v6281_v35 = vpop.eup %6280 }
0x123e   : > { %v3663_v37 = vsel %vm770_vm2, %v6281_v35, 0.0  ;;  %v6283_v38 = vpop.eup %6282 }
0x123f   : > { %v3660_v36 = vsel %vm770_vm2, %v6283_v38, 0.0 }
0x1244   : > { %3774 = vrot.lane.b32.xlu1 %v7497_v13, %s6506_s23 }
0x1248   : > { %3822 = vrot.lane.b32.xlu1 %v7503_v26, %s6506_s23 }
0x124c   : > { %3872 = vrot.lane.b32.xlu1 %v7406_v5, %s6510_s18 }
0x124d   : > { %3726 = vrot.lane.b32.xlu0 %v7490_v30, %s6506_s23  ;;  %s6518_s23 = smov [#allocation8]  }
0x124e   : > { %s6424_s11 = sshll.u32 %s6518_s23, 4  ;;  %s6425_s11 = int_to_ptr.vmem [resolvable:$false] %s6424_s11 }
0x124f   : > { %p6427_p5 = scmp.lt.s32.totalorder %s7906_s28, %s6425_s11 }
0x126c   : > { %3664 = vadd.xlane.f32.xlu0 %v3663_v37 }
0x1270   : > { %3661 = vadd.xlane.f32.xlu1 %v3660_v36 }
0x1281   : > { %3870 = vrot.lane.b32.xlu1 %v7425_v62, %s6510_s18 }
0x1282   : > { %3922 = vrot.lane.b32.xlu0 %v7389_v42, %s6510_s18 }
0x1285   : > { %3972 = vrot.lane.b32.xlu1 %v7421_v57, %s6510_s18 }
0x1286   : > { %3920 = vrot.lane.b32.xlu0 %v7435_v6, %s6510_s18 }
0x1289   : > { %3970 = vrot.lane.b32.xlu1 %v7444_v7, %s6510_s18 }
0x128a   : > { %4022 = vrot.lane.b32.xlu0 %v7427_v59, %s6510_s18 }
0x128e   : > { %4020 = vrot.lane.b32.xlu0 %v7451_v28, %s6510_s18 }
0x12bc   : > { %v3656_v45 = vpop.xlane.xlu1 %3655 }
0x12bd   : > { %6284 = vrcp.f32 %v3656_v45 }
0x12c0   : > { %v3659_v31 = vpop.xlane.xlu0 %3658  ;;  %v3775_v4 = vpop.permute.xlu1 %3774 }
0x12c1   : > { %6286 = vrcp.f32 %v3659_v31  ;;  %v3780_v52 = vsel %vm1018_vm4, %v3775_v4, 0 }
0x12c4   : > { %v3727_v34 = vpop.permute.xlu0 %3726  ;;  %v3823_v9 = vpop.permute.xlu1 %3822 }
0x12c5   : > { %v3732_v39 = vsel %vm1018_vm4, %v3727_v34, 0  ;;  %v3828_v60 = vsel %vm1018_vm4, %v3823_v9, 0 }
0x12c6   : > { %5871 = vmatpush3.bf16.msra.mxu1 %v3732_v39 }
0x12c7   : > { %5882 = vmatprep.subr.bf16.mxu1 %v6502_v2 }
0x12c8   : > { %v3873_v50 = vpop.permute.xlu1 %3872 }
0x12c9   : > { %v3878_v15 = vsel %vm770_vm2, %v3873_v50, 0 }
0x12ca   : > { %v6285_v40 = vpop.eup %6284 }
0x12cb   : > { %v3667_v1 = vmul.f32 %v6285_v40, %v6277_v61 }
0x12cd   : > { %v3674_v3 = vpack.c.bf16 %v3667_v1, %v3667_v1 }
0x12ce   : > { %v6287_v48 = vpop.eup %6286 }
0x12cf   : > { %5867 = vmatmul.mubr.msk.bf16.vlgmr.msra.gmra.mxu0 %vm770_vm2, %v3674_v3  ;;  %v3669_v8 = vmul.f32 %v6287_v48, %v6279_v18 }
0x12d0   : > { %5877 = vmatpush3.bf16.msra.mxu0 %v3780_v52  ;;  %5878 = vmatprep.mubr.msk.bf16.mxu0 %vm6503_vm1, %v6502_v2 }
0x12d1   : > { %v3675_v46 = vpack.c.bf16 %v3669_v8, %v3669_v8  ;;  %5888 = vmatprep.subr.bf16.mxu0 %v6502_v2 }
0x12d3   : > { %5873 = vmatmul.mubr.msk.bf16.vlgmr.msra.gmra.mxu1 %vm770_vm2, %v3675_v46 }
0x12d4   : > { %5883 = vmatpush3.bf16.msra.mxu1 %v3828_v60  ;;  %5884 = vmatprep.mubr.msk.bf16.mxu1 %vm6503_vm1, %v6502_v2 }
0x12d5   : > { %5894 = vmatprep.subr.bf16.mxu1 %v6502_v2 }
0x12f5   : > { %v3665_v58 = vpop.xlane.xlu0 %3664 }
0x12f6   : > { %6288 = vrcp.f32 %v3665_v58 }
0x12f9   : > { %v3662_v24 = vpop.xlane.xlu1 %3661  ;;  %v3923_v33 = vpop.permute.xlu0 %3922 }
0x12fa   : > { %6290 = vrcp.f32 %v3662_v24  ;;  %v3928_v18 = vsel %vm770_vm2, %v3923_v33, 0 }
0x12fd   : > { %v3921_v14 = vpop.permute.xlu0 %3920  ;;  %v3871_v32 = vpop.permute.xlu1 %3870 }
0x1301   : > { %v4023_v10 = vpop.permute.xlu0 %4022  ;;  %v3973_v25 = vpop.permute.xlu1 %3972 }
0x1302   : > { %v4028_v23 = vsel %vm770_vm2, %v4023_v10, 0 }
0x1303   : > { %v6289_v11 = vpop.eup %6288 }
0x1304   : > { %v3673_v56 = vmul.f32 %v6289_v11, %v6281_v35  ;;  %v3978_v35 = vsel %vm770_vm2, %v3973_v25, 0 }
0x1305   : > { %v4021_v37 = vpop.permute.xlu0 %4020 }
0x1306   : > { %v3677_v21 = vpack.c.bf16 %v3673_v56, %v3673_v56 }
0x1307   : > { %v6291_v61 = vpop.eup %6290 }
0x1308   : > { %5885 = vmatmul.mubr.msk.bf16.vlgmr.msra.gmra.mxu1 %vm770_vm2, %v3677_v21  ;;  %v3671_v0 = vmul.f32 %v6291_v61, %v6283_v38  ;;  %v3971_v38 = vpop.permute.xlu1 %3970 }
0x1309   : > { %5895 = vmatpush3.bf16.xpose.msra.mxu1 %v3928_v18  ;;  %5896 = vmatprep.mubr.msk.bf16.mxu1 %vm6503_vm1, %v6502_v2 }
0x130a   : > { %v3676_v16 = vpack.c.bf16 %v3671_v0, %v3671_v0  ;;  %5906 = vmatprep.subr.bf16.mxu1 %v6502_v2 }
0x130c   : > { %5879 = vmatmul.mubr.msk.bf16.vlgmr.msra.gmra.mxu0 %vm770_vm2, %v3676_v16 }
0x130d   : > { %5889 = vmatpush3.bf16.xpose.msra.mxu0 %v3878_v15  ;;  %5890 = vmatprep.mubr.msk.bf16.mxu0 %vm6503_vm1, %v6502_v2 }
0x130e   : > { %5900 = vmatprep.subr.bf16.mxu0 %v6502_v2 }
0x1310   : > { %5897 = vmatmul.mubr.msk.bf16.vlgmr.msra.gmra.mxu1 %vm770_vm2, %v3921_v14 }
0x1311   : > { %5907 = vmatpush3.bf16.xpose.msra.mxu1 %v4028_v23  ;;  %5908 = vmatprep.mubr.msk.bf16.mxu1 %vm6503_vm1, %v6502_v2 }
0x1312   : > { %5918 = vmatprep.subr.bf16.mxu1 %v6502_v2 }
0x1314   : > { %5891 = vmatmul.mubr.msk.bf16.vlgmr.msra.gmra.mxu0 %vm770_vm2, %v3871_v32 }
0x1315   : > { %5901 = vmatpush3.bf16.xpose.msra.mxu0 %v3978_v35  ;;  %5902 = vmatprep.mubr.msk.bf16.mxu0 %vm6503_vm1, %v6502_v2 }
0x1316   : > { %5912 = vmatprep.subr.bf16.mxu0 %v6502_v2 }
0x1318   : > { %5909 = vmatmul.mubr.msk.bf16.vlgmr.msra.gmra.mxu1 %vm770_vm2, %v4021_v37 }
0x1319   : > { %5920 = vmatprep.mubr.msk.bf16.mxu1 %vm6503_vm1, %v6502_v2 }
0x131c   : > { %5903 = vmatmul.mubr.msk.bf16.vlgmr.msra.gmra.mxu0 %vm770_vm2, %v3971_v38 }
0x131d   : > { %5914 = vmatprep.mubr.msk.bf16.mxu0 %vm6503_vm1, %v6502_v2 }
0x138f   : > { %v7649_v36 = vpop.f32.mrf.mxu0 }
0x1391   : > { %v5868_v45 = vpop.f32.mrf.mxu0 }
0x1393   : > { %v3723_v31 = vpop.f32.mrf.mxu0  ;;  %v7651_v34 = vpop.f32.mrf.mxu1 }
0x1394   : > { %v6126_v39 = vpack.i.bf16 %v7651_v34, %v7649_v36 }
0x1395   : > { %v5869_v40 = vpop.f32.mrf.mxu0  ;;  %v5874_v4 = vpop.f32.mrf.mxu1 }
0x1397   : > { %v3771_v1 = vpop.f32.mrf.mxu1 }
0x1399   : > { %v5875_v3 = vpop.f32.mrf.mxu1 }
0x13c8   : > { %v7655_v48 = vpop.f32.mrf.mxu1 }
0x13ca   : > { %v5886_v52 = vpop.f32.mrf.mxu1 }
0x13cc   : > { %v7657_v8 = vpop.f32.mrf.mxu0  ;;  %v3867_v9 = vpop.f32.mrf.mxu1 }
0x13cd   : > { %v6131_v46 = vpack.i.bf16 %v7655_v48, %v7657_v8 }
0x13ce   : > { %v5880_v60 = vpop.f32.mrf.mxu0  ;;  %v5887_v50 = vpop.f32.mrf.mxu1 }
0x13d0   : > { %v3819_v58 = vpop.f32.mrf.mxu0  ;;  %v3964_v24 = vpop.f32.mrf.mxu1 }
0x13d1   : > { %v3965_v33 = vadd.f32 %v3964_v24, %v7465_v55 }
0x13d2   : > { %v5881_v11 = vpop.f32.mrf.mxu0  ;;  %v5898_v56 = vpop.f32.mrf.mxu1 }
0x13d3   : > { %v4073_v21 = vsel %vm770_vm2, %v3965_v33, -inf }
0x13d4   : > { %4074 = vmax.xlane.f32.xlu0 %v4073_v21  ;;  %v3914_v61 = vpop.f32.mrf.mxu0  ;;  %v3967_v14 = vpop.f32.mrf.mxu1 }
0x13d5   : > { %v3915_v18 = vadd.f32 %v3914_v61, %v7460_v17 }
0x13d6   : > { %v5892_v0 = vpop.f32.mrf.mxu0  ;;  %v5899_v16 = vpop.f32.mrf.mxu1 }
0x13d7   : > { %v4070_v32 = vsel %vm770_vm2, %v3915_v18, -inf }
0x13d8   : > { %v4064_v15 = vpop.f32.mrf.mxu1  ;;  %4071 = vmax.xlane.f32.xlu1 %v4070_v32  ;;  %v3917_v10 = vpop.f32.mrf.mxu0 }
0x13d9   : > { %v4065_v40 = vadd.f32 %v4064_v15, %v7476_v54 }
0x13da   : > { %v5893_v23 = vpop.f32.mrf.mxu0  ;;  %v5910_v25 = vpop.f32.mrf.mxu1 }
0x13db   : > { %v4079_v52 = vsel %vm770_vm2, %v4065_v40, -inf }
0x13dc   : > { %v4014_v35 = vpop.f32.mrf.mxu0  ;;  %v4067_v37 = vpop.f32.mrf.mxu1 }
0x13dd   : > { %v4015_v38 = vadd.f32 %v4014_v35, %v7471_v53 }
0x13de   : > { %v5904_v45 = vpop.f32.mrf.mxu0  ;;  %v5911_v31 = vpop.f32.mrf.mxu1 }
0x13df   : > { %v4076_v4 = vsel %vm770_vm2, %v4015_v38, -inf }
0x13e0   : > { %4077 = vmax.xlane.f32.xlu0 %v4076_v4  ;;  %v4017_v1 = vpop.f32.mrf.mxu0 }
0x13e2   : > { %v5905_v3 = vpop.f32.mrf.mxu0 }
0x13e4   : > { %4080 = vmax.xlane.f32.xlu0 %v4079_v52 }
0x13e9   : > { %4118 = vrot.lane.b32.xlu1 %v7488_v47, %s6509_s25 }
0x145d   : > { %v4075_v9 = vpop.xlane.xlu0 %4074 }
0x145e   : > { %v4083_v60 = vsub.f32 %v3965_v33, %v4075_v9 }
0x1460   : > { %v4088_v50 = vmul.f32 1.442695, %v4083_v60 }
0x1461   : > { %v4072_v58 = vpop.xlane.xlu1 %4071 }
0x1462   : > { %6292 = vpow2.f32 %v4088_v50  ;;  %v4082_v24 = vsub.f32 %v3915_v18, %v4072_v58 }
0x1464   : > { %v4086_v11 = vmul.f32 1.442695, %v4082_v24 }
0x1465   : > { %v4119_v56 = vpop.permute.xlu1 %4118 }
0x1466   : > { %6294 = vpow2.f32 %v4086_v11  ;;  %v4124_v21 = vsel %vm1018_vm4, %v4119_v56, 0 }
0x1467   : > { %5913 = vmatpush3.bf16.msra.mxu0 %v4124_v21 }
0x1468   : > { %5924 = vmatprep.subr.bf16.mxu0 %v6502_v2 }
0x1469   : > { %v4078_v33 = vpop.xlane.xlu0 %4077 }
0x146a   : > { %v4084_v10 = vsub.f32 %v4015_v38, %v4078_v33 }
0x146c   : > { %v4090_v23 = vmul.f32 1.442695, %v4084_v10 }
0x146d   : > { %v4081_v18 = vpop.xlane.xlu0 %4080 }
0x146e   : > { %v4085_v32 = vsub.f32 %v4065_v40, %v4081_v18 }
0x146f   : > { %v6293_v61 = vpop.eup %6292 }
0x1470   : > { %v4097_v14 = vsel %vm770_vm2, %v6293_v61, 0.0  ;;  %v4092_v15 = vmul.f32 1.442695, %v4085_v32 }
0x1471   : > { %4098 = vadd.xlane.f32.xlu0 %v4097_v14 }
0x1472   : > { %6296 = vpow2.f32 %v4092_v15 }
0x1473   : > { %v6295_v0 = vpop.eup %6294  ;;  %6298 = vpow2.f32 %v4090_v23 }
0x1474   : > { %v4094_v16 = vsel %vm770_vm2, %v6295_v0, 0.0 }
0x1475   : > { %4095 = vadd.xlane.f32.xlu1 %v4094_v16 }
0x147f   : > { %v6297_v25 = vpop.eup %6296 }
0x1480   : > { %v4103_v35 = vsel %vm770_vm2, %v6297_v25, 0.0  ;;  %v6299_v37 = vpop.eup %6298 }
0x1481   : > { %v4100_v45 = vsel %vm770_vm2, %v6299_v37, 0.0 }
0x1486   : > { %4214 = vrot.lane.b32.xlu1 %v7497_v13, %s6509_s25 }
0x1487   : > { %4166 = vrot.lane.b32.xlu0 %v7490_v30, %s6509_s25 }
0x148a   : > { %4262 = vrot.lane.b32.xlu1 %v7503_v26, %s6509_s25  ;;  %s6426_s25 = scalar_lea.vmem %s6425_s11, 1024 }
0x148e   : > { %4312 = vrot.lane.b32.xlu1 %v7406_v5, %s6513_s29 }
0x14a6   : > { %4104 = vadd.xlane.f32.xlu0 %v4103_v35 }
0x14b2   : > { %4101 = vadd.xlane.f32.xlu1 %v4100_v45 }
0x14bc   : > { %4362 = vrot.lane.b32.xlu0 %v7389_v42, %s6513_s29 }
0x14c0   : > { %4360 = vrot.lane.b32.xlu0 %v7435_v6, %s6513_s29 }
0x14c3   : > { %4310 = vrot.lane.b32.xlu1 %v7425_v62, %s6513_s29 }
0x14c4   : > { %4462 = vrot.lane.b32.xlu0 %v7427_v59, %s6513_s29 }
0x14c7   : > { %4412 = vrot.lane.b32.xlu1 %v7421_v57, %s6513_s29 }
0x14c8   : > { %4460 = vrot.lane.b32.xlu0 %v7451_v28, %s6513_s29 }
0x14cb   : > { %4410 = vrot.lane.b32.xlu1 %v7444_v7, %s6513_s29 }
0x14fa   : > { %v4099_v5 = vpop.xlane.xlu0 %4098 }
0x14fb   : > { %6300 = vrcp.f32 %v4099_v5 }
0x14fe   : > { %v4096_v42 = vpop.xlane.xlu1 %4095  ;;  %v4167_v38 = vpop.permute.xlu0 %4166 }
0x14ff   : > { %6302 = vrcp.f32 %v4096_v42  ;;  %v4172_v6 = vsel %vm1018_vm4, %v4167_v38, 0 }
0x1500   : > { %5919 = vmatpush3.bf16.msra.mxu1 %v4172_v6 }
0x1501   : > { %5930 = vmatprep.subr.bf16.mxu1 %v6502_v2 }
0x1502   : > { %v4215_v62 = vpop.permute.xlu1 %4214 }
0x1503   : > { %v4220_v3 = vsel %vm1018_vm4, %v4215_v62, 0 }
0x1506   : > { %v4263_v57 = vpop.permute.xlu1 %4262 }
0x1507   : > { %v4268_v28 = vsel %vm1018_vm4, %v4263_v57, 0 }
0x1508   : > { %v6301_v59 = vpop.eup %6300 }
0x1509   : > { %v4109_v31 = vmul.f32 %v6301_v59, %v6293_v61 }
0x150a   : > { %v4313_v9 = vpop.permute.xlu1 %4312 }
0x150b   : > { %v4115_v40 = vpack.c.bf16 %v4109_v31, %v4109_v31  ;;  %v4318_v32 = vsel %vm770_vm2, %v4313_v9, 0 }
0x150c   : > { %v6303_v4 = vpop.eup %6302 }
0x150d   : > { %5921 = vmatmul.mubr.msk.bf16.vlgmr.msra.gmra.mxu1 %vm770_vm2, %v4115_v40  ;;  %v4107_v7 = vmul.f32 %v6303_v4, %v6295_v0 }
0x150e   : > { %5931 = vmatpush3.bf16.msra.mxu1 %v4268_v28  ;;  %5932 = vmatprep.mubr.msk.bf16.mxu1 %vm6503_vm1, %v6502_v2 }
0x150f   : > { %v4114_v1 = vpack.c.bf16 %v4107_v7, %v4107_v7  ;;  %5942 = vmatprep.subr.bf16.mxu1 %v6502_v2 }
0x1511   : > { %5915 = vmatmul.mubr.msk.bf16.vlgmr.msra.gmra.mxu0 %vm770_vm2, %v4114_v1 }
0x1512   : > { %5925 = vmatpush3.bf16.msra.mxu0 %v4220_v3  ;;  %5926 = vmatprep.mubr.msk.bf16.mxu0 %vm6503_vm1, %v6502_v2 }
0x1513   : > { %5936 = vmatprep.subr.bf16.mxu0 %v6502_v2 }
0x152f   : > { %v4105_v52 = vpop.xlane.xlu0 %4104 }
0x1530   : > { %6304 = vrcp.f32 %v4105_v52 }
0x1533   : > { %v4363_v60 = vpop.permute.xlu0 %4362 }
0x1534   : > { %v4368_v21 = vsel %vm770_vm2, %v4363_v60, 0 }
0x1537   : > { %v4361_v56 = vpop.permute.xlu0 %4360 }
0x153b   : > { %v4102_v50 = vpop.xlane.xlu1 %4101  ;;  %v4463_v61 = vpop.permute.xlu0 %4462 }
0x153c   : > { %6306 = vrcp.f32 %v4102_v50  ;;  %v4468_v16 = vsel %vm770_vm2, %v4463_v61, 0 }
0x153d   : > { %v6305_v58 = vpop.eup %6304 }
0x153e   : > { %v4113_v24 = vmul.f32 %v6305_v58, %v6297_v25 }
0x153f   : > { %v4311_v18 = vpop.permute.xlu1 %4310  ;;  %v4461_v15 = vpop.permute.xlu0 %4460 }
0x1540   : > { %v4117_v11 = vpack.c.bf16 %v4113_v24, %v4113_v24 }
0x1542   : > { %5933 = vmatmul.mubr.msk.bf16.vlgmr.msra.gmra.mxu1 %vm770_vm2, %v4117_v11 }
0x1543   : > { %5943 = vmatpush3.bf16.xpose.msra.mxu1 %v4368_v21  ;;  %5944 = vmatprep.mubr.msk.bf16.mxu1 %vm6503_vm1, %v6502_v2  ;;  %v4413_v10 = vpop.permute.xlu1 %4412 }
0x1544   : > { %5954 = vmatprep.subr.bf16.mxu1 %v6502_v2  ;;  %v4418_v23 = vsel %vm770_vm2, %v4413_v10, 0 }
0x1547   : > { %v4411_v25 = vpop.permute.xlu1 %4410 }
0x1549   : > { %v6307_v14 = vpop.eup %6306 }
0x154a   : > { %v4111_v0 = vmul.f32 %v6307_v14, %v6299_v37  ;;  %5945 = vmatmul.mubr.msk.bf16.vlgmr.msra.gmra.mxu1 %vm770_vm2, %v4361_v56 }
0x154b   : > { %5955 = vmatpush3.bf16.xpose.msra.mxu1 %v4468_v16  ;;  %5956 = vmatprep.mubr.msk.bf16.mxu1 %vm6503_vm1, %v6502_v2 }
0x154c   : > { %v4116_v33 = vpack.c.bf16 %v4111_v0, %v4111_v0  ;;  %5966 = vmatprep.subr.bf16.mxu1 %v6502_v2 }
0x154e   : > { %5927 = vmatmul.mubr.msk.bf16.vlgmr.msra.gmra.mxu0 %vm770_vm2, %v4116_v33 }
0x154f   : > { %5937 = vmatpush3.bf16.xpose.msra.mxu0 %v4318_v32  ;;  %5938 = vmatprep.mubr.msk.bf16.mxu0 %vm6503_vm1, %v6502_v2 }
0x1550   : > { %5948 = vmatprep.subr.bf16.mxu0 %v6502_v2 }
0x1552   : > { %5957 = vmatmul.mubr.msk.bf16.vlgmr.msra.gmra.mxu1 %vm770_vm2, %v4461_v15 }
0x1553   : > { %5968 = vmatprep.mubr.msk.bf16.mxu1 %vm6503_vm1, %v6502_v2 }
0x1556   : > { %5939 = vmatmul.mubr.msk.bf16.vlgmr.msra.gmra.mxu0 %vm770_vm2, %v4311_v18 }
0x1557   : > { %5949 = vmatpush3.bf16.xpose.msra.mxu0 %v4418_v23  ;;  %5950 = vmatprep.mubr.msk.bf16.mxu0 %vm6503_vm1, %v6502_v2 }
0x1558   : > { %5960 = vmatprep.subr.bf16.mxu0 %v6502_v2 }
0x155e   : > { %5951 = vmatmul.mubr.msk.bf16.vlgmr.msra.gmra.mxu0 %vm770_vm2, %v4411_v25 }
0x155f   : > { %5962 = vmatprep.mubr.msk.bf16.mxu0 %vm6503_vm1, %v6502_v2 }
0x15cd   : > { %v7737_v35 = vpop.f32.mrf.mxu1 }
0x15cf   : > { %v5922_v37 = vpop.f32.mrf.mxu1 }
0x15d1   : > { %v7739_v45 = vpop.f32.mrf.mxu0  ;;  %v4211_v5 = vpop.f32.mrf.mxu1 }
0x15d2   : > { %v6136_v42 = vpack.i.bf16 %v7737_v35, %v7739_v45 }
0x15d3   : > { %v5916_v38 = vpop.f32.mrf.mxu0  ;;  %v5923_v6 = vpop.f32.mrf.mxu1 }
0x15d5   : > { %v4163_v62 = vpop.f32.mrf.mxu0 }
0x15d7   : > { %v5917_v59 = vpop.f32.mrf.mxu0 }
0x1602   : > { %v7743_v31 = vpop.f32.mrf.mxu1 }
0x1604   : > { %v5934_v57 = vpop.f32.mrf.mxu1 }
0x1606   : > { %v4307_v40 = vpop.f32.mrf.mxu1 }
0x1608   : > { %v5935_v4 = vpop.f32.mrf.mxu1 }
0x160a   : > { %v4404_v28 = vpop.f32.mrf.mxu1 }
0x160b   : > { %v4405_v7 = vadd.f32 %v4404_v28, %v7465_v55 }
0x160c   : > { %v5946_v1 = vpop.f32.mrf.mxu1 }
0x160d   : > { %v4513_v3 = vsel %vm770_vm2, %v4405_v7, -inf }
0x160e   : > { %4514 = vmax.xlane.f32.xlu0 %v4513_v3  ;;  %v7747_v52 = vpop.f32.mrf.mxu0  ;;  %v4407_v9 = vpop.f32.mrf.mxu1 }
0x160f   : > { %v6141_v60 = vpack.i.bf16 %v7743_v31, %v7747_v52 }
0x1610   : > { %v5928_v50 = vpop.f32.mrf.mxu0  ;;  %v5947_v58 = vpop.f32.mrf.mxu1 }
0x1612   : > { %v4259_v24 = vpop.f32.mrf.mxu0  ;;  %v4504_v11 = vpop.f32.mrf.mxu1 }
0x1613   : > { %v4505_v25 = vadd.f32 %v4504_v11, %v7476_v54 }
0x1614   : > { %v5929_v56 = vpop.f32.mrf.mxu0  ;;  %v5958_v21 = vpop.f32.mrf.mxu1 }
0x1616   : > { %v4354_v61 = vpop.f32.mrf.mxu0  ;;  %v4507_v14 = vpop.f32.mrf.mxu1 }
0x1617   : > { %v4355_v55 = vadd.f32 %v4354_v61, %v7460_v17  ;;  %v4519_v17 = vsel %vm770_vm2, %v4505_v25, -inf }
0x1618   : > { %v5940_v0 = vpop.f32.mrf.mxu0  ;;  %v5959_v16 = vpop.f32.mrf.mxu1 }
0x1619   : > { %v4510_v33 = vsel %vm770_vm2, %v4355_v55, -inf }
0x161a   : > { %4511 = vmax.xlane.f32.xlu1 %v4510_v33  ;;  %v4357_v18 = vpop.f32.mrf.mxu0 }
0x161c   : > { %v5941_v32 = vpop.f32.mrf.mxu0 }
0x161e   : > { %v4454_v15 = vpop.f32.mrf.mxu0 }
0x161f   : > { %v4455_v10 = vadd.f32 %v4454_v15, %v7471_v53 }
0x1620   : > { %v5952_v23 = vpop.f32.mrf.mxu0 }
0x1621   : > { %v4516_v37 = vsel %vm770_vm2, %v4455_v10, -inf }
0x1622   : > { %4517 = vmax.xlane.f32.xlu0 %v4516_v37  ;;  %v4457_v5 = vpop.f32.mrf.mxu0 }
0x1624   : > { %v5953_v38 = vpop.f32.mrf.mxu0 }
0x1626   : > { %4520 = vmax.xlane.f32.xlu0 %v4519_v17 }
0x162b   : > { %4558 = vrot.lane.b32.xlu1 %v7488_v47, %s8000_s26 }
0x1697   : > { %v4515_v6 = vpop.xlane.xlu0 %4514 }
0x1698   : > { %v4523_v62 = vsub.f32 %v4405_v7, %v4515_v6 }
0x169a   : > { %v4528_v59 = vmul.f32 1.442695, %v4523_v62 }
0x169c   : > { %6308 = vpow2.f32 %v4528_v59 }
0x16a3   : > { %v4512_v57 = vpop.xlane.xlu1 %4511 }
0x16a4   : > { %v4522_v53 = vsub.f32 %v4355_v55, %v4512_v57 }
0x16a6   : > { %v4526_v40 = vmul.f32 1.442695, %v4522_v53 }
0x16a7   : > { %v4559_v4 = vpop.permute.xlu1 %4558 }
0x16a8   : > { %6310 = vpow2.f32 %v4526_v40  ;;  %v4564_v54 = vsel %vm1018_vm4, %v4559_v4, 0 }
0x16a9   : > { %v6309_v28 = vpop.eup %6308  ;;  %5961 = vmatpush3.bf16.msra.mxu0 %v4564_v54 }
0x16aa   : > { %v4537_v1 = vsel %vm770_vm2, %v6309_v28, 0.0  ;;  %5972 = vmatprep.subr.bf16.mxu0 %v6502_v2 }
0x16ab   : > { %4538 = vadd.xlane.f32.xlu0 %v4537_v1  ;;  %v4518_v3 = vpop.xlane.xlu0 %4517 }
0x16ac   : > { %v4524_v47 = vsub.f32 %v4455_v10, %v4518_v3  ;;  %v6164_v10 = vld [vmem:[%s7963_s6 + $0x28] sm:$0xff]  }
0x16ae   : > { %v4530_v9 = vmul.f32 1.442695, %v4524_v47 }
0x16af   : > { %v4521_v7 = vpop.xlane.xlu0 %4520 }
0x16b0   : > { %6312 = vpow2.f32 %v4530_v9  ;;  %v4525_v50 = vsub.f32 %v4505_v25, %v4521_v7 }
0x16b2   : > { %v4532_v58 = vmul.f32 1.442695, %v4525_v50 }
0x16b4   : > { %6314 = vpow2.f32 %v4532_v58 }
0x16b5   : > { %v6311_v24 = vpop.eup %6310 }
0x16b6   : > { %v4534_v11 = vsel %vm770_vm2, %v6311_v24, 0.0 }
0x16b7   : > { %4535 = vadd.xlane.f32.xlu1 %v4534_v11 }
0x16bd   : > { %v6313_v56 = vpop.eup %6312 }
0x16be   : > { %v4540_v21 = vsel %vm770_vm2, %v6313_v56, 0.0 }
0x16bf   : > { %4541 = vadd.xlane.f32.xlu1 %v4540_v21 }
0x16c1   : > { %v6315_v61 = vpop.eup %6314 }
0x16c2   : > { %v4543_v14 = vsel %vm770_vm2, %v6315_v61, 0.0 }
0x16c3   : > { %4544 = vadd.xlane.f32.xlu0 %v4543_v14 }
0x16d0   : > { %4654 = vrot.lane.b32.xlu1 %v7497_v13, %s8000_s26 }
0x16d4   : > { %4702 = vrot.lane.b32.xlu1 %v7503_v26, %s8000_s26 }
0x16d8   : > { %6127 = vrot.lane.b32.xlu1 %v6126_v39, %s8001_s2 }
0x16d9   : > { %4606 = vrot.lane.b32.xlu0 %v7490_v30, %s8000_s26  ;;  %s7912_s26 = scalar_lea.hbm %s7966_s9, %s5409_s22 }
0x16dc   : > { %6137 = vrot.lane.b32.xlu1 %v6136_v42, %s8002_s20 }
0x16dd   : > { %6132 = vrot.lane.b32.xlu0 %v6131_v46, %s8001_s2 }
0x16e1   : > { %6142 = vrot.lane.b32.xlu0 %v6141_v60, %s8002_s20  ;;  %s6420_s20 = scalar_lea.vmem %s7906_s28, 512 }
0x16e2   : > { %p6421_p10 = scmp.ne.s32.totalorder %s7906_s28, %s6420_s20  ;;  %p6428_p9 = scmp.lt.s32.totalorder %s6426_s25, %s6420_s20 }
0x16e4   : > { %p6422_p13 = pnand %p6421_p10, %p8003_p12  ;;  %p6429_p2 = por %p6428_p9, %p6427_p5 }
0x16e6   : > { %p6423_p0 = pneg %p6422_p13 }
0x16e8   : > { %p6430_p1 = pnand %p6429_p2, %p6423_p0 }
0x1734   : > { %v4539_v13 = vpop.xlane.xlu0 %4538 }
0x1735   : > { %6316 = vrcp.f32 %v4539_v13 }
0x1740   : > { %v4536_v26 = vpop.xlane.xlu1 %4535 }
0x1741   : > { %6318 = vrcp.f32 %v4536_v26 }
0x1742   : > { %v6317_v36 = vpop.eup %6316 }
0x1743   : > { %v4549_v45 = vmul.f32 %v6317_v36, %v6309_v28 }
0x1745   : > { %v4555_v31 = vpack.c.bf16 %v4549_v45, %v4549_v45 }
0x1748   : > { %v4542_v30 = vpop.xlane.xlu1 %4541 }
0x1749   : > { %6320 = vrcp.f32 %v4542_v30 }
0x174c   : > { %v4655_v34 = vpop.permute.xlu1 %4654  ;;  %v4545_v39 = vpop.xlane.xlu0 %4544 }
0x174d   : > { %6322 = vrcp.f32 %v4545_v39  ;;  %v4660_v52 = vsel %vm1018_vm4, %v4655_v34, 0 }
0x174e   : > { %v6319_v35 = vpop.eup %6318 }
0x174f   : > { %v4547_v42 = vmul.f32 %v6319_v35, %v6311_v24 }
0x1750   : > { %v4607_v48 = vpop.permute.xlu0 %4606  ;;  %v4703_v55 = vpop.permute.xlu1 %4702 }
0x1751   : > { %v4554_v8 = vpack.c.bf16 %v4547_v42, %v4547_v42  ;;  %v4612_v46 = vsel %vm1018_vm4, %v4607_v48, 0  ;;  %v4708_v60 = vsel %vm1018_vm4, %v4703_v55, 0 }
0x1752   : > { %5967 = vmatpush3.bf16.msra.mxu1 %v4612_v46 }
0x1753   : > { %5963 = vmatmul.mubr.msk.bf16.vlgmr.msra.gmra.mxu0 %vm770_vm2, %v4554_v8  ;;  %5978 = vmatprep.subr.bf16.mxu1 %v6502_v2 }
0x1754   : > { %5973 = vmatpush3.bf16.msra.mxu0 %v4660_v52  ;;  %5974 = vmatprep.mubr.msk.bf16.mxu0 %vm6503_vm1, %v6502_v2  ;;  %v6128_v9 = vpop.permute.xlu1 %6127 }
0x1755   : > { %5969 = vmatmul.mubr.msk.bf16.vlgmr.msra.gmra.mxu1 %vm770_vm2, %v4555_v31  ;;  %5984 = vmatprep.subr.bf16.mxu0 %v6164_v10  ;;  %v6130_v50 = vunpack.i.h.bf16 %v6128_v9  ;;  %v6129_v58 = vunpack.i.l.bf16 %v6128_v9 }
0x1756   : > { %v6321_v0 = vpop.eup %6320  ;;  %5979 = vmatpush3.bf16.msra.mxu1 %v4708_v60  ;;  %5980 = vmatprep.mubr.msk.bf16.mxu1 %vm6503_vm1, %v6502_v2  ;;  %v6165_v2 = vld [vmem:[%s7963_s6 + $0x20] sm:$0xff]  }
0x1757   : > { %v4551_v16 = vmul.f32 %v6321_v0, %v6313_v56  ;;  %v6133_v56 = vpop.permute.xlu0 %6132  ;;  %v4798_v14 = vsel %vm770_vm2, %v7565_v41, %v6129_v58 }
0x1758   : > { %v6138_v7 = vpop.permute.xlu1 %6137  ;;  %v6135_v42 = vunpack.i.h.bf16 %v6133_v56  ;;  %v6134_v48 = vunpack.i.l.bf16 %v6133_v56 }
0x1759   : > { %v4556_v33 = vpack.c.bf16 %v4551_v16, %v4551_v16  ;;  %v6140_v24 = vunpack.i.h.bf16 %v6138_v7  ;;  %v6139_v11 = vunpack.i.l.bf16 %v6138_v7 }
0x175a   : > { %v6323_v18 = vpop.eup %6322  ;;  %v4801_v41 = vsel %vm770_vm2, %v7571_v44, %v6135_v42  ;;  %v4800_v55 = vsel %vm770_vm2, %v7569_v22, %v6134_v48  ;;  %v6337_v44 = vld [vmem:[%s7964_s7 + $0x10] sm:$0xff] }
0x175b   : > { %v4553_v32 = vmul.f32 %v6323_v18, %v6315_v61  ;;  %5975 = vmatmul.mubr.msk.bf16.vlgmr.msra.gmra.mxu0 %vm770_vm2, %v4556_v33  ;;  %v4799_v61 = vsel %vm770_vm2, %v7567_v49, %v6130_v50  ;;  %v4802_v30 = vsel %vm2585_vm5, %v4798_v14, %v6139_v11  ;;  %v6143_v45 = vpop.permute.xlu0 %6142  ;;  %v4886_v22 = vrot.slane %v6337_v44, %v2670_v63 }
0x175c   : > { %5985 = vmatpush3.bf16.msra.mxu0 %v6164_v10  ;;  %v4803_v36 = vsel %vm2585_vm5, %v4799_v61, %v6140_v24  ;;  %v6145_v49 = vunpack.i.h.bf16 %v6143_v45  ;;  %v6144_v8 = vunpack.i.l.bf16 %v6143_v45 }
0x175d   : > { %v4557_v15 = vpack.c.bf16 %v4553_v32, %v4553_v32  ;;  %5986 = vmatprep.subr.bf16.mxu0 %v6165_v2 }
0x175e   : > { %v4804_v60 = vsel %vm2585_vm5, %v4800_v55, %v6144_v8  ;;  %v4805_v0 = vsel %vm2585_vm5, %v4801_v41, %v6145_v49 }
0x175f   : > { %5981 = vmatmul.mubr.msk.bf16.vlgmr.msra.gmra.mxu1 %vm770_vm2, %v4557_v15 }
0x1760   : > { %5987 = vmatpush3.bf16.msra.mxu0 %v6165_v2 }
0x1813   : > { %v4600_v23 = vpop.f32.mrf.mxu0 }
0x1815   : > { %v5964_v25 = vpop.f32.mrf.mxu0  ;;  %v4648_v37 = vpop.f32.mrf.mxu1 }
0x1816   : > { %v6146_v5 = vpack.i.bf16 %v4648_v37, %v4600_v23 }
0x1817   : > { %v4603_v38 = vpop.f32.mrf.mxu0  ;;  %v5970_v17 = vpop.f32.mrf.mxu1 }
0x1818   : > { %6147 = vrot.lane.b32.xlu1 %v6146_v5, %s6517_s21 }
0x1819   : > { %v5965_v6 = vpop.f32.mrf.mxu0  ;;  %v4651_v62 = vpop.f32.mrf.mxu1 }
0x181b   : > { %v5971_v59 = vpop.f32.mrf.mxu1  ;;  %v4696_v57 = vpop.f32.mrf.mxu0 }
0x181d   : > { %v5976_v53 = vpop.f32.mrf.mxu0 }
0x181f   : > { %v4699_v40 = vpop.f32.mrf.mxu0  ;;  %v4744_v4 = vpop.f32.mrf.mxu1 }
0x1820   : > { %v6151_v54 = vpack.i.bf16 %v4744_v4, %v4696_v57 }
0x1821   : > { %v5977_v28 = vpop.f32.mrf.mxu0  ;;  %v5982_v1 = vpop.f32.mrf.mxu1 }
0x1822   : > { %6152 = vrot.lane.b32.xlu0 %v6151_v54, %s6517_s21  ;;  %v6166_v28 = vld [vmem:[%s7962_s5 + $0x18] sm:$0xff]   ;;  %v6167_v1 = vld [vmem:[%s7962_s5 + $0x10] sm:$0xff]  }
0x1823   : > { %v4747_v3 = vpop.f32.mrf.mxu1  ;;  %5992 = vmatprep.subr.bf16.mxu1 %v6166_v28 }
0x1824   : > { %5993 = vmatpush3.bf16.msra.mxu1 %v6166_v28  ;;  %v6168_v3 = vld [vmem:[%s7963_s6 + $0x48] sm:$0xff]  }
0x1825   : > { %v5983_v47 = vpop.f32.mrf.mxu1  ;;  %5994 = vmatprep.subr.bf16.mxu1 %v6167_v1  ;;  %6000 = vmatprep.subr.bf16.mxu0 %v6168_v3 }
0x1828   : > { %5995 = vmatpush3.bf16.msra.mxu1 %v6167_v1 }
0x188a   : > { %v6148_v21 = vpop.permute.xlu1 %6147 }
0x188b   : > { %v6150_v13 = vunpack.i.h.bf16 %v6148_v21  ;;  %v6149_v26 = vunpack.i.l.bf16 %v6148_v21 }
0x188d   : > { %v4807_v34 = vsel %vm2590_vm6, %v4803_v36, %v6150_v13  ;;  %v4806_v39 = vsel %vm2590_vm6, %v4802_v30, %v6149_v26 }
0x188e   : > { %v4810_v35 = vpack.c.bf16 %v4807_v34, %v4806_v39 }
0x1890   : > { %5988 = vmatprep.mubr.msk.bf16.mxu0 %vm576_vm0, %v4810_v35 }
0x1894   : > { %v6153_v46 = vpop.permute.xlu0 %6152 }
0x1895   : > { %v6155_v31 = vunpack.i.h.bf16 %v6153_v46  ;;  %v6154_v52 = vunpack.i.l.bf16 %v6153_v46 }
0x1897   : > { %v4809_v16 = vsel %vm2590_vm6, %v4805_v0, %v6155_v31  ;;  %v4808_v33 = vsel %vm2590_vm6, %v4804_v60, %v6154_v52  ;;  %v466_v0 = vld [vmem:[%s7964_s7 + $0x28] sm:$0xff] }
0x1898   : > { %v4811_v18 = vpack.c.bf16 %v4809_v16, %v4808_v33 }
0x189a   : > { %5989 = vmatmul.mubr.msk.bf16.vlgmr.msra.gmra.mxu0 %vm576_vm0, %v4811_v18  ;;  %v4954_v18 = vrot.slane %v466_v0, %v6815_v51 }
0x189b   : > { %6001 = vmatpush3.bf16.msra.mxu0 %v6168_v3  ;;  %v5391_v3 = vld [vmem:[%s7965_s8] ss:$0 sm:$0xff] }
0x195a   : > { %v5990_v32 = vpop.f32.mrf.mxu0 }
0x195b   : > { %v4881_v15 = vadd.f32 %v5990_v32, %v7332_v12 }
0x195c   : > { %v4864_v10 = vpop.f32.mrf.mxu0 }
0x195d   : > { %v7831_v23 = vadd.f32 %v4886_v22, %v4881_v15  ;;  %v4879_v25 = vadd.f32 %v4864_v10, %v7335_v43 }
0x195e   : > { %v5991_v37 = vpop.f32.mrf.mxu0 }
0x195f   : > { %v7834_v2 = vadd.f32 %v4886_v22, %v4879_v25  ;;  %v4882_v5 = vadd.f32 %v5991_v37, %v7340_v27  ;;  %v4897_v38 = vsel %vm576_vm0, %v7831_v23, 0.0  ;;  %v4909_v59 = vmul.f32 %v7831_v23, %v7831_v23 }
0x1960   : > { %4898 = vadd.xlane.f32.xlu0 %v4897_v38  ;;  %v4867_v17 = vpop.f32.mrf.mxu0 }
0x1961   : > { %v7839_v19 = vadd.f32 %v4886_v22, %v4882_v5  ;;  %v4880_v63 = vadd.f32 %v4867_v17, %v7343_v29  ;;  %v4891_v12 = vsel %vm576_vm0, %v7834_v2, 0.0  ;;  %v4907_v43 = vmul.f32 %v7834_v2, %v7834_v2 }
0x1962   : > { %4892 = vadd.xlane.f32.xlu1 %v4891_v12  ;;  %v4917_v53 = vsel %vm576_vm0, %v4909_v59, 0.0  ;;  %v4962_v5 = vrot.slane %v466_v0, %v6804_v20  ;;  %v6169_v20 = vld [vmem:[%s7963_s6 + $0x40] sm:$0xff]  }
0x1963   : > { %v7846_v6 = vadd.f32 %v4886_v22, %v4880_v63  ;;  %v4900_v27 = vsel %vm576_vm0, %v7839_v19, 0.0  ;;  %v4911_v62 = vsel %vm576_vm0, %v4907_v43, 0.0  ;;  %v4910_v4 = vmul.f32 %v7839_v19, %v7839_v19  ;;  %6002 = vmatprep.subr.bf16.mxu0 %v6169_v20 }
0x1964   : > { %4901 = vadd.xlane.f32.xlu0 %v4900_v27  ;;  %6003 = vmatpush3.bf16.msra.mxu0 %v6169_v20 }
0x1965   : > { %v4894_v29 = vsel %vm576_vm0, %v7846_v6, 0.0  ;;  %v4908_v57 = vmul.f32 %v7846_v6, %v7846_v6  ;;  %v4920_v54 = vsel %vm576_vm0, %v4910_v4, 0.0  ;;  %v6170_v4 = vld [vmem:[%s7963_s6 + $0x38] sm:$0xff]  }
0x1966   : > { %4912 = vadd.xlane.f32.xlu1 %v4911_v62  ;;  %6004 = vmatprep.subr.bf16.mxu0 %v6170_v4 }
0x1967   : > { %v4914_v40 = vsel %vm576_vm0, %v4908_v57, 0.0 }
0x1968   : > { %4895 = vadd.xlane.f32.xlu0 %v4894_v29  ;;  %6005 = vmatpush3.bf16.msra.mxu0 %v6170_v4 }
0x196a   : > { %4918 = vadd.xlane.f32.xlu1 %v4917_v53 }
0x196c   : > { %4915 = vadd.xlane.f32.xlu0 %v4914_v40 }
0x1970   : > { %4921 = vadd.xlane.f32.xlu0 %v4920_v54  ;;  %v6171_v54 = vld [vmem:[%s7963_s6 + $0x30] sm:$0xff]  }
0x1971   : > { %6006 = vmatprep.subr.bf16.mxu0 %v6171_v54 }
0x1972   : > { %6007 = vmatpush3.bf16.msra.mxu0 %v6171_v54 }
0x19e9   : > { %v4899_v47 = vpop.xlane.xlu0 %4898 }
0x19ea   : > { %v4905_v24 = vmul.f32 0.03125, %v4899_v47 }
0x19eb   : > { %v4893_v9 = vpop.xlane.xlu1 %4892 }
0x19ec   : > { %v4903_v7 = vmul.f32 0.03125, %v4893_v9  ;;  %v4929_v26 = vmul.f32 %v4905_v24, %v4905_v24  ;;  %v4937_v22 = vsub.f32 %v7831_v23, %v4905_v24 }
0x19ed   : > { %v4902_v50 = vpop.xlane.xlu0 %4901 }
0x19ee   : > { %v4927_v11 = vmul.f32 %v4903_v7, %v4903_v7  ;;  %v4906_v34 = vmul.f32 0.03125, %v4902_v50  ;;  %v4935_v16 = vsub.f32 %v7834_v2, %v4903_v7 }
0x19ef   : > { %v4913_v58 = vpop.xlane.xlu1 %4912 }
0x19f0   : > { %v4923_v56 = vmul.f32 0.03125, %v4913_v58  ;;  %v4930_v46 = vmul.f32 %v4906_v34, %v4906_v34  ;;  %v4938_v38 = vsub.f32 %v7839_v19, %v4906_v34 }
0x19f1   : > { %v4896_v21 = vpop.xlane.xlu0 %4895 }
0x19f2   : > { %v4931_v61 = vsub.f32 %v4923_v56, %v4927_v11  ;;  %v4904_v14 = vmul.f32 0.03125, %v4896_v21 }
0x19f3   : > { %v4919_v13 = vpop.xlane.xlu1 %4918 }
0x19f4   : > { %v4939_v30 = vadd.f32 1e-05, %v4931_v61  ;;  %v4925_v36 = vmul.f32 0.03125, %v4919_v13  ;;  %v4928_v35 = vmul.f32 %v4904_v14, %v4904_v14  ;;  %v4936_v32 = vsub.f32 %v7846_v6, %v4904_v14 }
0x19f5   : > { %v4916_v39 = vpop.xlane.xlu0 %4915 }
0x19f6   : > { %6324 = vrsqrt.f32 %v4939_v30  ;;  %v4933_v45 = vsub.f32 %v4925_v36, %v4929_v26  ;;  %v4924_v42 = vmul.f32 0.03125, %v4916_v39  ;;  %v465_v26 = vld [vmem:[%s7964_s7 + $0x20] sm:$0xff] }
0x19f7   : > { %v5135_v30 = vrot.slane %v465_v26, %v6815_v51 }
0x19f8   : > { %v4941_v48 = vadd.f32 1e-05, %v4933_v45  ;;  %v4932_v49 = vsub.f32 %v4924_v42, %v4928_v35 }
0x19f9   : > { %v4922_v8 = vpop.xlane.xlu0 %4921 }
0x19fa   : > { %6326 = vrsqrt.f32 %v4941_v48  ;;  %v4940_v41 = vadd.f32 1e-05, %v4932_v49  ;;  %v4926_v55 = vmul.f32 0.03125, %v4922_v8 }
0x19fc   : > { %6328 = vrsqrt.f32 %v4940_v41  ;;  %v4934_v31 = vsub.f32 %v4926_v55, %v4930_v46 }
0x19fe   : > { %v4942_v52 = vadd.f32 1e-05, %v4934_v31 }
0x1a00   : > { %6330 = vrsqrt.f32 %v4942_v52 }
0x1a03   : > { %v6325_v60 = vpop.eup %6324 }
0x1a04   : > { %v4947_v33 = vmul.f32 %v6325_v60, %v4935_v16 }
0x1a06   : > { %v4955_v37 = vmul.f32 %v4954_v18, %v4947_v33 }
0x1a07   : > { %v6327_v44 = vpop.eup %6326 }
0x1a08   : > { %v4949_v10 = vmul.f32 %v6327_v44, %v4937_v22  ;;  %v4963_v43 = vadd.f32 %v4962_v5, %v4955_v37 }
0x1a09   : > { %v6329_v15 = vpop.eup %6328 }
0x1a0a   : > { %v4948_v25 = vmul.f32 %v6329_v15, %v4936_v32  ;;  %v4957_v62 = vmul.f32 %v4954_v18, %v4949_v10 }
0x1a0c   : > { %v4956_v17 = vmul.f32 %v4954_v18, %v4948_v25  ;;  %v4965_v57 = vadd.f32 %v4962_v5, %v4957_v62 }
0x1a0d   : > { %v6331_v63 = vpop.eup %6330 }
0x1a0e   : > { %v4950_v12 = vmul.f32 %v6331_v63, %v4938_v38  ;;  %v4964_v27 = vadd.f32 %v4962_v5, %v4956_v17 }
0x1a10   : > { %v4967_v59 = vpack.c.bf16 %v4964_v27, %v4963_v43  ;;  %v4958_v29 = vmul.f32 %v4954_v18, %v4950_v12 }
0x1a12   : > { %5996 = vmatprep.mubr.msk.bf16.mxu1 %vm576_vm0, %v4967_v59  ;;  %v4966_v53 = vadd.f32 %v4962_v5, %v4958_v29 }
0x1a14   : > { %v4968_v40 = vpack.c.bf16 %v4966_v53, %v4965_v57 }
0x1a16   : > { %5997 = vmatmul.mubr.msk.bf16.vlgmr.msra.gmra.mxu1 %vm576_vm0, %v4968_v40 }
0x1ad6   : > { %v5998_v28 = vpop.f32.mrf.mxu1 }
0x1ad7   : > { %v5036_v50 = vadd.f32 %v5998_v28, %v5391_v3 }
0x1ad8   : > { %v5027_v1 = vpop.f32.mrf.mxu1 }
0x1ad9   : > { %v5028_v9 = vadd.f32 %v5391_v3, %v5027_v1  ;;  %v5044_v61 = vmax.f32 %v5036_v50, 0.0 }
0x1ada   : > { %v5999_v47 = vpop.f32.mrf.mxu1 }
0x1adb   : > { %v5039_v7 = vadd.f32 %v5999_v47, %v5391_v3  ;;  %v5042_v56 = vmax.f32 %v5028_v9, 0.0 }
0x1adc   : > { %v5030_v58 = vpop.f32.mrf.mxu1 }
0x1add   : > { %v5031_v24 = vadd.f32 %v5391_v3, %v5030_v58  ;;  %v5045_v11 = vmax.f32 %v5039_v7, 0.0 }
0x1adf   : > { %v5043_v21 = vmax.f32 %v5031_v24, 0.0  ;;  %v5047_v13 = vpack.c.bf16 %v5045_v11, %v5044_v61 }
0x1ae1   : > { %v5046_v14 = vpack.c.bf16 %v5043_v21, %v5042_v56 }
0x1ae3   : > { %6008 = vmatprep.mubr.msk.bf16.mxu0 %vm5072_vm7, %v5046_v14 }
0x1ae4   : > { %6009 = vmatmul.mubr.msk.bf16.vlgmr.msra.gmra.mxu0 %vm5072_vm7, %v5047_v13 }
0x1ba4   : > { %v6010_v36 = vpop.f32.mrf.mxu0 }
0x1ba5   : > { %v5130_v34 = vadd.f32 %v6010_v36, %v7831_v23 }
0x1ba6   : > { %v5113_v39 = vpop.f32.mrf.mxu0 }
0x1ba7   : > { %v5138_v35 = vadd.f32 %v5135_v30, %v5130_v34  ;;  %v5128_v45 = vadd.f32 %v5113_v39, %v7834_v2 }
0x1ba8   : > { %v6011_v42 = vpop.f32.mrf.mxu0 }
0x1ba9   : > { %5142 = vst.msk [vmem:[%s436_s24 + $0x10] sm:$0xff] %vm576_vm0, %v5138_v35  ;;  %v5136_v48 = vadd.f32 %v5135_v30, %v5128_v45  ;;  %v5131_v49 = vadd.f32 %v6011_v42, %v7839_v19 }
0x1baa   : > { %v5116_v8 = vpop.f32.mrf.mxu0 }
0x1bab   : > { %5140 = vst.msk [vmem:[%s436_s24] sm:$0xff] %vm576_vm0, %v5136_v48  ;;  %v5139_v51 = vadd.f32 %v5135_v30, %v5131_v49  ;;  %v5129_v23 = vadd.f32 %v5116_v8, %v7846_v6 }
0x1bad   : > { %5143 = vst.msk [vmem:[%s436_s24 + $0x18] sm:$0xff] %vm576_vm0, %v5139_v51  ;;  %v5137_v2 = vadd.f32 %v5135_v30, %v5129_v23 }
0x1baf   : > { %5141 = vst.msk [vmem:[%s436_s24 + $0x8] sm:$0xff] %vm576_vm0, %v5137_v2 }
0x1bb0   : > { %6433 = shalt.err (!%p6430_p1)
}
0x1bb1   : > { %s6434_s18 = scalar_lea.hbm %s7912_s26, 512  ;;  %s6438_s27 = scalar_lea.hbm %s7966_s9, 1024 }
0x1bb2   : > { %p6435_p4 = scmp.ne.s32.totalorder %s7912_s26, %s6434_s18  ;;  %p6439_p8 = scmp.lt.s32.totalorder %s7912_s26, %s7966_s9 }
0x1bb3   : > { %p6440_p11 = scmp.lt.s32.totalorder %s6438_s27, %s6434_s18 }
0x1bb4   : > { %p6436_p3 = pnand %p6435_p4, %p8003_p12 }
0x1bb5   : > { %p6441_p6 = por %p6440_p11, %p6439_p8 }
0x1bb6   : > { %p6437_p7 = pneg %p6436_p3 }
0x1bb8   : > { %p6442_p10 = pnand %p6441_p6, %p6437_p7 }
0x1bba   : > { %6445 = shalt.err (!%p6442_p10)
}
0x1bbb   : > { %s6519_s24 = smov 128  }
0x1bbc   : > { %6020 = dma.vmem_to_hbm [thread:$0]  (%p8003_p12), %s7906_s28, 512, %s7912_s26, %s5145_s13, %s6519_s24, %s6519_s24, %s8001_s2  }
0x1bbd PF: > { %s8004_s22 = sld [smem:[#allocation14_spill]]  ;;  %s5173_s19 = sand.u32 1, %s6480_s30  }
0x1bbe   : > { %p8006_p0 = scmp.ge.s32.totalorder %s6492_s12, 2  ;;  %s5174_s17 = scalar_lea.sflag [#allocation4], %s5173_s19 }
0x1bc3   : > { %p8005_p13 = scmp.ne.s32.totalorder %s8004_s22, 0 }
0x1bc5   : > { %p6034_p5 = pnand %p8006_p0, %p8005_p13 }
0x1bc7   : > { %p6035_p9 = pneg %p6034_p5 }
0x1bc9   : > { %6475 = dma.done.wait (%p6035_p9), %s5174_s17, 512  }
0x1bca   : > { %6477 = vsyncadd (%p6035_p9), %s5174_s17, 4294966784  ;;  %s8007_s12 = sld [smem:[#allocation15_spill]]  ;;  %s8010_s30 = smov %s6484_s10 }
0x1bcb   : > { %s8008_s14 = sld [smem:[#allocation13_spill]] }
0x1bcc   : > { %s8009_s11 = sld [smem:[#allocation16_spill]] }
0x1bd0   : > { %p25_p2 = scmp.ge.s32.totalorder %s8007_s12, 4  }
0x1bd1   : > { %s8011_s10 = smov %s8008_s14 }
0x1bd2   :  { %27 = sbr.rel (!%p25_p2) target bundleno = 10 (0xa), region = 124 }
0x1bd7   :  { %5179 = vsyncpa [#allocation3], 1 }
0x1bd8   :  { %5181 = vsyncpa [#allocation3 + $0x1], 1 }
0x1bd9   :  { %5182 = vsyncpa [#allocation6], 1 }
0x1bda   :  { %5184 = vsyncpa [#allocation6 + $0x1], 1 }
0x1bdb   :  { %5185 = vsyncpa [#allocation4], 1 }
0x1bdc   :  { %5187 = vsyncpa [#allocation4 + $0x1], 1 }

</bundles_post_ra>
